<compile_context>
chip_gen: v7x
topology: tpu7x:2x2x1
jax: 0.10.0
libtpu: 0.0.40
codegen_flags: <defaults>
</compile_context>

<pallas_src>
import functools

import jax
import jax.numpy as jnp
import numpy as np
from jax.experimental import pallas as pl
from jax.experimental.pallas import tpu as pltpu

C = 256  # fixed by the module: Conv2d(256, 256, 3), Linear(256, ...)


def _bilinear_matrix(out_size, in_size):
  """1-D bilinear interpolation matrix (align_corners=True), shape (out, in)."""
  m = np.zeros((out_size, in_size), dtype=np.float32)
  if out_size == 1:
    m[0, 0] = 1.0
    return jnp.asarray(m)
  scale = (in_size - 1) / (out_size - 1)
  for o in range(out_size):
    src = o * scale
    i0 = min(int(np.floor(src)), in_size - 1)
    i1 = min(i0 + 1, in_size - 1)
    f = src - i0
    m[o, i0] += 1.0 - f
    m[o, i1] += f
  return jnp.asarray(m)


# ---------------------------------------------------------------------------
# Fused kernel: conv3x3 + separable bilinear resize + ReLU + spatial mean
#               + packed head matmul  (one batch-block per grid step)
# ---------------------------------------------------------------------------
def _fused_pose_head_kernel(x_ref, wconv_ref, bconv_ref, wh_ref, ww_ref,
                            wcat_ref, bcat_ref, out_ref,
                            xscr, imcol, tscr,
                            *, bb, H, W, OH, OW, compute_dtype):
  M = bb * H * W

  # ---- halo'd input in VMEM scratch (replaces HBM-side jnp.pad) -----------
  xscr[...] = jnp.zeros_like(xscr)
  xscr[:, 1:H + 1, 1:W + 1, :] = x_ref[...].astype(compute_dtype)

  # ---- 3x3 conv as one im2col matmul: (M, 9C) @ (9C, C), f32 accumulation -
  for kh in range(3):
    for kw in range(3):
      t = kh * 3 + kw
      imcol[:, t * C:(t + 1) * C] = (
          xscr[:, kh:kh + H, kw:kw + W, :].reshape(M, C))
  conv = jnp.dot(imcol[...], wconv_ref[...],
                 preferred_element_type=jnp.float32) + bconv_ref[...]
  conv = conv.reshape(bb, H, W, C)

  wh = wh_ref[...]                 # (OH, H)  float32 resize weights
  ww = ww_ref[...]                 # (OW, W)  float32 resize weights
  inv_area = 1.0 / float(OH * OW)

  rows = []
  for b in range(bb):              # static, small (<= B)
    y = conv[b]                    # (H, W, C)

    # separable resize, stage 1 (along H): one small MXU dot per input column.
    for w in range(W):
      tscr[:, w, :] = jnp.dot(wh, y[:, w, :],
                              preferred_element_type=jnp.float32)

    # stage 2 (along W) + ReLU + running spatial sum, streamed row by row so
    # the (OH*OW, C) resized tensor is never materialized.
    def body(o, s):
      z = jnp.dot(ww, tscr[o], preferred_element_type=jnp.float32)  # (OW, C)
      return s + jnp.sum(jnp.maximum(z, 0.0), axis=0, keepdims=True)

    pooled = jax.lax.fori_loop(0, OH, body,
                               jnp.zeros((1, C), jnp.float32)) * inv_area

    # fused head: [pose_conv(1x1) | scale_fc | intrinsics_fc] packed (C, 128).
    rows.append(jnp.dot(pooled, wcat_ref[...],
                        preferred_element_type=jnp.float32) + bcat_ref[...])

  out_ref[...] = jnp.concatenate(rows, axis=0)[None]


def fused_pose_head(x_nhwc, w_conv_flat, b_conv, wh, ww, w_cat, b_cat,
                    *, compute_dtype=jnp.bfloat16, batch_block=None):
  """Returns (B, Ncat) rows of the packed head output."""
  B, H, W, Cin = x_nhwc.shape
  assert Cin == C
  OH, OW = int(wh.shape[0]), int(ww.shape[0])
  Ncat = int(w_cat.shape[1])

  # One grid step per TensorCore when the batch splits evenly (v7x megacore),
  # stacking the remaining batch elements into the matmul M dimension.
  if batch_block is None:
    batch_block = B // 2 if (B > 1 and B % 2 == 0) else B
  bb = batch_block
  assert B % bb == 0
  steps = B // bb

  kernel = functools.partial(_fused_pose_head_kernel, bb=bb, H=H, W=W,
                             OH=OH, OW=OW, compute_dtype=compute_dtype)

  out = pl.pallas_call(
      kernel,
      out_shape=jax.ShapeDtypeStruct((steps, bb, Ncat), jnp.float32),
      grid=(steps,),
      in_specs=[
          pl.BlockSpec((bb, H, W, C), lambda i: (i, 0, 0, 0)),
          # Constant-index operands (whole-array blocks). They are small here;
          # at large scale pipeline_mode=pl.Buffered(1) would avoid the
          # default double-buffer reservation.
          pl.BlockSpec((9 * C, C), lambda i: (0, 0)),
          pl.BlockSpec((1, C), lambda i: (0, 0)),
          pl.BlockSpec((OH, H), lambda i: (0, 0)),
          pl.BlockSpec((OW, W), lambda i: (0, 0)),
          pl.BlockSpec((C, Ncat), lambda i: (0, 0)),
          pl.BlockSpec((1, Ncat), lambda i: (0, 0)),
      ],
      out_specs=pl.BlockSpec((1, bb, Ncat), lambda i: (i, 0, 0)),
      scratch_shapes=[
          pltpu.VMEM((bb, H + 2, W + 2, C), compute_dtype),   # haloed input
          pltpu.VMEM((bb * H * W, 9 * C), compute_dtype),     # im2col patches
          pltpu.VMEM((OH, W, C), jnp.float32),                # H-resized rows
      ],
      compiler_params=pltpu.CompilerParams(
          dimension_semantics=("parallel",),          # megacore-friendly batch
          vmem_limit_bytes=32 * 1024 * 1024),         # safe on v5e/v6e/v7x
  )(x_nhwc, w_conv_flat.astype(compute_dtype), b_conv, wh, ww, w_cat, b_cat)

  return out.reshape(B, Ncat)


# ---------------------------------------------------------------------------
# Module
# ---------------------------------------------------------------------------
class DepthAnythingPoseEstimationHead:

  def __init__(self, num_frames_to_predict_for=1, predict_intrinsics=False,
               simplified_intrinsic=False, image_width=None, image_height=None,
               key=None, compute_dtype=jnp.bfloat16):
    if key is None:
      key = jax.random.PRNGKey(42)
    self.num_frames = num_frames_to_predict_for
    self.predict_intrinsics = predict_intrinsics
    self.compute_dtype = compute_dtype
    if predict_intrinsics:
      assert image_width is not None and image_height is not None
      self.image_width = float(image_width)
      self.image_height = float(image_height)
      self.num_param_to_predict = 2 if simplified_intrinsic else 4
    else:
      self.num_param_to_predict = 0

    F = num_frames_to_predict_for
    P = self.num_param_to_predict
    ks = jax.random.split(key, 8)

    # conv 3x3 weights stored (9, Cin, Cout); PyTorch layout is (Cout, Cin, 3, 3).
    self.w_conv = jax.random.normal(ks[0], (9, C, C), jnp.float32) / np.sqrt(9 * C)
    self.b_conv = jax.random.normal(ks[1], (1, C), jnp.float32) * 0.01
    # pose_conv is a 1x1 conv -> plain linear (C, 6F)
    self.w_pose = jax.random.normal(ks[2], (C, 6 * F), jnp.float32) / np.sqrt(C)
    self.b_pose = jax.random.normal(ks[3], (6 * F,), jnp.float32) * 0.01
    self.w_scale = jax.random.normal(ks[4], (C, F), jnp.float32) / np.sqrt(C)
    self.b_scale = jax.random.normal(ks[5], (F,), jnp.float32) * 0.01
    if P:
      self.w_intr = jax.random.normal(ks[6], (C, P), jnp.float32) / np.sqrt(C)
      self.b_intr = jax.random.normal(ks[7], (P,), jnp.float32) * 0.01

    # Pack all head weights into one lane-dense (C, >=128) slab.
    ncols = 7 * F + P
    n_cat = max(128, int(np.ceil(ncols / 128.0)) * 128)
    w_cat = jnp.zeros((C, n_cat), jnp.float32)
    b_cat = jnp.zeros((1, n_cat), jnp.float32)
    w_cat = w_cat.at[:, :6 * F].set(self.w_pose)
    w_cat = w_cat.at[:, 6 * F:7 * F].set(self.w_scale)
    b_cat = b_cat.at[0, :6 * F].set(self.b_pose)
    b_cat = b_cat.at[0, 6 * F:7 * F].set(self.b_scale)
    if P:
      w_cat = w_cat.at[:, 7 * F:7 * F + P].set(self.w_intr)
      b_cat = b_cat.at[0, 7 * F:7 * F + P].set(self.b_intr)
    self.w_cat, self.b_cat = w_cat, b_cat

  # -- forward ---------------------------------------------------------------
  def __call__(self, hidden_states, height, width):
    B, Cin, H, W = hidden_states.shape
    assert Cin == C
    F = self.num_frames
    height, width = int(height), int(width)

    x = jnp.transpose(hidden_states, (0, 2, 3, 1))      # NCHW -> NHWC
    wh = _bilinear_matrix(height, H)                    # (outH, H), align_corners=True
    ww = _bilinear_matrix(width, W)                     # (outW, W)

    head = fused_pose_head(x, self.w_conv.reshape(9 * C, C), self.b_conv,
                           wh, ww, self.w_cat, self.b_cat,
                           compute_dtype=self.compute_dtype)   # (B, n_cat)

    pose_lin = head[:, :6 * F]                          # (B, 6F)
    scale_lin = head[:, 6 * F:7 * F]                    # (B, F)
    dynamic_scale = jax.nn.sigmoid(scale_lin) * 10.0 + 0.1
    pose = pose_lin.reshape(B, F, 6)
    pose = 0.001 * dynamic_scale[..., None] * pose
    pose = pose.reshape(B, F, 1, 6)
    axisangle = pose[..., :3]
    translation = pose[..., 3:]

    if self.predict_intrinsics:
      P = self.num_param_to_predict
      intr = head[:, 7 * F:7 * F + P]
      wh_img = jnp.array([self.image_width, self.image_height], jnp.float32)
      foci = (intr[:, :2] + 0.5) * wh_img
      # NOTE: matches PyTorch exactly: softplus is applied AFTER diag_embed,
      # so off-diagonal entries become softplus(0) = ln(2).
      foci_mat = jax.nn.softplus(foci[:, :, None] * jnp.eye(2, dtype=jnp.float32))
      if P == 4:
        offsets = (intr[:, 2:4] + 0.5) * wh_img
      else:
        offsets = jnp.ones((B, 2), jnp.float32) * 0.5
      intrinsics_mat = jnp.tile(jnp.eye(4, dtype=jnp.float32)[None], (B, 1, 1))
      intrinsics_mat = intrinsics_mat.at[:, :2, :2].set(foci_mat)
      intrinsics_mat = intrinsics_mat.at[:, :2, 2].set(offsets)
      return axisangle, translation, intrinsics_mat
    return axisangle, translation

  # -- pure-JAX reference (for correctness check) -----------------------------
  def reference(self, hidden_states, height, width):
    B = hidden_states.shape[0]
    F = self.num_frames
    w_oihw = jnp.transpose(self.w_conv.reshape(3, 3, C, C), (3, 2, 0, 1))
    x = jax.lax.conv_general_dilated(
        hidden_states, w_oihw, (1, 1), "SAME",
        dimension_numbers=("NCHW", "OIHW", "NCHW"))
    x = x + self.b_conv[0][None, :, None, None]
    Wh = _bilinear_matrix(int(height), x.shape[2])
    Ww = _bilinear_matrix(int(width), x.shape[3])
    x = jnp.einsum("oh,bchw->bcow", Wh, x)
    x = jnp.einsum("pw,bcow->bcop", Ww, x)
    x = jnp.maximum(x, 0.0)
    feat = x.mean(axis=(2, 3))                          # (B, C)
    pose = feat @ self.w_pose + self.b_pose
    scale = jax.nn.sigmoid(feat @ self.w_scale + self.b_scale) * 10.0 + 0.1
    pose = 0.001 * scale[..., None] * pose.reshape(B, F, 6)
    pose = pose.reshape(B, F, 1, 6)
    return pose[..., :3], pose[..., 3:]


if __name__ == "__main__":
  key = jax.random.PRNGKey(0)
  k_in, k_par = jax.random.split(key)

  B, H, W = 2, 8, 8                 # small input feature map
  height, width = 16, 16            # upsample target

  hidden_states = jax.random.normal(k_in, (B, C, H, W), jnp.float32)

  # --- f32 compute path: tight check against the pure-JAX reference ---------
  head_f32 = DepthAnythingPoseEstimationHead(
      num_frames_to_predict_for=1, key=k_par, compute_dtype=jnp.float32)
  axisangle, translation = head_f32(hidden_states, height, width)
  jax.block_until_ready((axisangle, translation))

  ref_aa, ref_tr = head_f32.reference(hidden_states, height, width)
  np.testing.assert_allclose(np.asarray(axisangle), np.asarray(ref_aa),
                             rtol=3e-4, atol=3e-6)
  np.testing.assert_allclose(np.asarray(translation), np.asarray(ref_tr),
                             rtol=3e-4, atol=3e-6)
  assert axisangle.shape == (B, 1, 1, 3) and translation.shape == (B, 1, 1, 3)

  # --- bf16 MXU-operand path (v6e/v7x feedback): loose check -----------------
  head_bf16 = DepthAnythingPoseEstimationHead(
      num_frames_to_predict_for=1, key=k_par, compute_dtype=jnp.bfloat16)
  aa16, tr16 = head_bf16(hidden_states, height, width)
  jax.block_until_ready((aa16, tr16))
  np.testing.assert_allclose(np.asarray(aa16), np.asarray(ref_aa),
                             rtol=1e-1, atol=5e-4)
  np.testing.assert_allclose(np.asarray(tr16), np.asarray(ref_tr),
                             rtol=1e-1, atol=5e-4)

  # --- intrinsics branch smoke test ------------------------------------------
  head_intr = DepthAnythingPoseEstimationHead(
      num_frames_to_predict_for=2, predict_intrinsics=True,
      image_width=64, image_height=32, key=k_par)
  aa2, tr2, K2 = head_intr(hidden_states, height, width)
  jax.block_until_ready((aa2, tr2, K2))
  assert aa2.shape == (B, 2, 1, 3) and tr2.shape == (B, 2, 1, 3)
  assert K2.shape == (B, 4, 4)
  assert bool(jnp.all(jnp.isfinite(K2)))

  print("KERNEL_OK")
</pallas_src>

<mosaic_0001>
module attributes {stable_mosaic.version = 11 : i64} {
  func.func @_fused_pose_head_kernel(%arg0: i32, %arg1: memref<1x8x8x256xf32, #tpu.memory_space<vmem>>, %arg2: memref<2304x256xf32, #tpu.memory_space<vmem>>, %arg3: memref<1x256xf32, #tpu.memory_space<vmem>>, %arg4: memref<16x8xf32, #tpu.memory_space<vmem>>, %arg5: memref<16x8xf32, #tpu.memory_space<vmem>>, %arg6: memref<256x128xf32, #tpu.memory_space<vmem>>, %arg7: memref<1x128xf32, #tpu.memory_space<vmem>>, %arg8: memref<1x1x128xf32, #tpu.memory_space<vmem>>, %arg9: memref<1x10x10x256xf32, #tpu.memory_space<vmem>>, %arg10: memref<64x2304xf32, #tpu.memory_space<vmem>>, %arg11: memref<16x8x256xf32, #tpu.memory_space<vmem>>) attributes {dimension_semantics = [#tpu.dimension_semantics<parallel>], iteration_bounds = array<i64: 2>, scalar_prefetch = 0 : i64, scratch_operands = 3 : i64, tpu.core_type = #tpu.core_type<tc>, window_params = [{transform_indices = @transform_0, window_bounds = array<i64: 1, 8, 8, 256>}, {pipeline_mode = #tpu.pipeline_mode<synchronous>, transform_indices = @transform_1, window_bounds = array<i64: 2304, 256>}, {pipeline_mode = #tpu.pipeline_mode<synchronous>, transform_indices = @transform_2, window_bounds = array<i64: 1, 256>}, {pipeline_mode = #tpu.pipeline_mode<synchronous>, transform_indices = @transform_3, window_bounds = array<i64: 16, 8>}, {pipeline_mode = #tpu.pipeline_mode<synchronous>, transform_indices = @transform_4, window_bounds = array<i64: 16, 8>}, {pipeline_mode = #tpu.pipeline_mode<synchronous>, transform_indices = @transform_5, window_bounds = array<i64: 256, 128>}, {pipeline_mode = #tpu.pipeline_mode<synchronous>, transform_indices = @transform_6, window_bounds = array<i64: 1, 128>}, {transform_indices = @transform_7, window_bounds = array<i64: 1, 1, 128>}]} {
    %cst = arith.constant 0.000000e+00 : f32
    %0 = vector.broadcast %cst : f32 to vector<1x10x10x256xf32>
    %c0 = arith.constant 0 : index
    %c0_0 = arith.constant 0 : index
    %c0_1 = arith.constant 0 : index
    %c0_2 = arith.constant 0 : index
    %1 = vector.load %arg9[%c0, %c0_0, %c0_1, %c0_2] : memref<1x10x10x256xf32, #tpu.memory_space<vmem>>, vector<1x10x10x256xf32>
    tpu.vector_store %arg9[%c0, %c0_0, %c0_1, %c0_2], %0 {strides = array<i32>} : memref<1x10x10x256xf32, #tpu.memory_space<vmem>>, vector<1x10x10x256xf32>,
    %c0_3 = arith.constant 0 : index
    %c0_4 = arith.constant 0 : index
    %c0_5 = arith.constant 0 : index
    %c0_6 = arith.constant 0 : index
    %2 = vector.load %arg1[%c0_3, %c0_4, %c0_5, %c0_6] : memref<1x8x8x256xf32, #tpu.memory_space<vmem>>, vector<1x8x8x256xf32>
    %c0_7 = arith.constant 0 : index
    %c1 = arith.constant 1 : index
    %c1_8 = arith.constant 1 : index
    %c0_9 = arith.constant 0 : index
    %3 = vector.load %arg9[%c0_7, %c1, %c1_8, %c0_9] : memref<1x10x10x256xf32, #tpu.memory_space<vmem>>, vector<1x8x8x256xf32>
    tpu.vector_store %arg9[%c0_7, %c1, %c1_8, %c0_9], %2 {strides = array<i32>} : memref<1x10x10x256xf32, #tpu.memory_space<vmem>>, vector<1x8x8x256xf32>,
    %c0_10 = arith.constant 0 : index
    %c0_11 = arith.constant 0 : index
    %c0_12 = arith.constant 0 : index
    %c0_13 = arith.constant 0 : index
    %4 = vector.load %arg9[%c0_10, %c0_11, %c0_12, %c0_13] : memref<1x10x10x256xf32, #tpu.memory_space<vmem>>, vector<1x8x8x256xf32>
    %5 = vector.shape_cast %4 : vector<1x8x8x256xf32> to vector<64x256xf32>
    %c0_14 = arith.constant 0 : index
    %c0_15 = arith.constant 0 : index
    %6 = vector.load %arg10[%c0_14, %c0_15] : memref<64x2304xf32, #tpu.memory_space<vmem>>, vector<64x256xf32>
    tpu.vector_store %arg10[%c0_14, %c0_15], %5 {strides = array<i32>} : memref<64x2304xf32, #tpu.memory_space<vmem>>, vector<64x256xf32>,
    %c0_16 = arith.constant 0 : index
    %c0_17 = arith.constant 0 : index
    %c1_18 = arith.constant 1 : index
    %c0_19 = arith.constant 0 : index
    %7 = vector.load %arg9[%c0_16, %c0_17, %c1_18, %c0_19] : memref<1x10x10x256xf32, #tpu.memory_space<vmem>>, vector<1x8x8x256xf32>
    %8 = vector.shape_cast %7 : vector<1x8x8x256xf32> to vector<64x256xf32>
    %c0_20 = arith.constant 0 : index
    %c256 = arith.constant 256 : index
    %9 = vector.load %arg10[%c0_20, %c256] : memref<64x2304xf32, #tpu.memory_space<vmem>>, vector<64x256xf32>
    tpu.vector_store %arg10[%c0_20, %c256], %8 {strides = array<i32>} : memref<64x2304xf32, #tpu.memory_space<vmem>>, vector<64x256xf32>,
    %c0_21 = arith.constant 0 : index
    %c0_22 = arith.constant 0 : index
    %c2 = arith.constant 2 : index
    %c0_23 = arith.constant 0 : index
    %10 = vector.load %arg9[%c0_21, %c0_22, %c2, %c0_23] : memref<1x10x10x256xf32, #tpu.memory_space<vmem>>, vector<1x8x8x256xf32>
    %11 = vector.shape_cast %10 : vector<1x8x8x256xf32> to vector<64x256xf32>
    %c0_24 = arith.constant 0 : index
    %c512 = arith.constant 512 : index
    %12 = vector.load %arg10[%c0_24, %c512] : memref<64x2304xf32, #tpu.memory_space<vmem>>, vector<64x256xf32>
    tpu.vector_store %arg10[%c0_24, %c512], %11 {strides = array<i32>} : memref<64x2304xf32, #tpu.memory_space<vmem>>, vector<64x256xf32>,
    %c0_25 = arith.constant 0 : index
    %c1_26 = arith.constant 1 : index
    %c0_27 = arith.constant 0 : index
    %c0_28 = arith.constant 0 : index
    %13 = vector.load %arg9[%c0_25, %c1_26, %c0_27, %c0_28] : memref<1x10x10x256xf32, #tpu.memory_space<vmem>>, vector<1x8x8x256xf32>
    %14 = vector.shape_cast %13 : vector<1x8x8x256xf32> to vector<64x256xf32>
    %c0_29 = arith.constant 0 : index
    %c768 = arith.constant 768 : index
    %15 = vector.load %arg10[%c0_29, %c768] : memref<64x2304xf32, #tpu.memory_space<vmem>>, vector<64x256xf32>
    tpu.vector_store %arg10[%c0_29, %c768], %14 {strides = array<i32>} : memref<64x2304xf32, #tpu.memory_space<vmem>>, vector<64x256xf32>,
    %c0_30 = arith.constant 0 : index
    %c1_31 = arith.constant 1 : index
    %c1_32 = arith.constant 1 : index
    %c0_33 = arith.constant 0 : index
    %16 = vector.load %arg9[%c0_30, %c1_31, %c1_32, %c0_33] : memref<1x10x10x256xf32, #tpu.memory_space<vmem>>, vector<1x8x8x256xf32>
    %17 = vector.shape_cast %16 : vector<1x8x8x256xf32> to vector<64x256xf32>
    %c0_34 = arith.constant 0 : index
    %c1024 = arith.constant 1024 : index
    %18 = vector.load %arg10[%c0_34, %c1024] : memref<64x2304xf32, #tpu.memory_space<vmem>>, vector<64x256xf32>
    tpu.vector_store %arg10[%c0_34, %c1024], %17 {strides = array<i32>} : memref<64x2304xf32, #tpu.memory_space<vmem>>, vector<64x256xf32>,
    %c0_35 = arith.constant 0 : index
    %c1_36 = arith.constant 1 : index
    %c2_37 = arith.constant 2 : index
    %c0_38 = arith.constant 0 : index
    %19 = vector.load %arg9[%c0_35, %c1_36, %c2_37, %c0_38] : memref<1x10x10x256xf32, #tpu.memory_space<vmem>>, vector<1x8x8x256xf32>
    %20 = vector.shape_cast %19 : vector<1x8x8x256xf32> to vector<64x256xf32>
    %c0_39 = arith.constant 0 : index
    %c1280 = arith.constant 1280 : index
    %21 = vector.load %arg10[%c0_39, %c1280] : memref<64x2304xf32, #tpu.memory_space<vmem>>, vector<64x256xf32>
    tpu.vector_store %arg10[%c0_39, %c1280], %20 {strides = array<i32>} : memref<64x2304xf32, #tpu.memory_space<vmem>>, vector<64x256xf32>,
    %c0_40 = arith.constant 0 : index
    %c2_41 = arith.constant 2 : index
    %c0_42 = arith.constant 0 : index
    %c0_43 = arith.constant 0 : index
    %22 = vector.load %arg9[%c0_40, %c2_41, %c0_42, %c0_43] : memref<1x10x10x256xf32, #tpu.memory_space<vmem>>, vector<1x8x8x256xf32>
    %23 = vector.shape_cast %22 : vector<1x8x8x256xf32> to vector<64x256xf32>
    %c0_44 = arith.constant 0 : index
    %c1536 = arith.constant 1536 : index
    %24 = vector.load %arg10[%c0_44, %c1536] : memref<64x2304xf32, #tpu.memory_space<vmem>>, vector<64x256xf32>
    tpu.vector_store %arg10[%c0_44, %c1536], %23 {strides = array<i32>} : memref<64x2304xf32, #tpu.memory_space<vmem>>, vector<64x256xf32>,
    %c0_45 = arith.constant 0 : index
    %c2_46 = arith.constant 2 : index
    %c1_47 = arith.constant 1 : index
    %c0_48 = arith.constant 0 : index
    %25 = vector.load %arg9[%c0_45, %c2_46, %c1_47, %c0_48] : memref<1x10x10x256xf32, #tpu.memory_space<vmem>>, vector<1x8x8x256xf32>
    %26 = vector.shape_cast %25 : vector<1x8x8x256xf32> to vector<64x256xf32>
    %c0_49 = arith.constant 0 : index
    %c1792 = arith.constant 1792 : index
    %27 = vector.load %arg10[%c0_49, %c1792] : memref<64x2304xf32, #tpu.memory_space<vmem>>, vector<64x256xf32>
    tpu.vector_store %arg10[%c0_49, %c1792], %26 {strides = array<i32>} : memref<64x2304xf32, #tpu.memory_space<vmem>>, vector<64x256xf32>,
    %c0_50 = arith.constant 0 : index
    %c2_51 = arith.constant 2 : index
    %c2_52 = arith.constant 2 : index
    %c0_53 = arith.constant 0 : index
    %28 = vector.load %arg9[%c0_50, %c2_51, %c2_52, %c0_53] : memref<1x10x10x256xf32, #tpu.memory_space<vmem>>, vector<1x8x8x256xf32>
    %29 = vector.shape_cast %28 : vector<1x8x8x256xf32> to vector<64x256xf32>
    %c0_54 = arith.constant 0 : index
    %c2048 = arith.constant 2048 : index
    %30 = vector.load %arg10[%c0_54, %c2048] : memref<64x2304xf32, #tpu.memory_space<vmem>>, vector<64x256xf32>
    tpu.vector_store %arg10[%c0_54, %c2048], %29 {strides = array<i32>} : memref<64x2304xf32, #tpu.memory_space<vmem>>, vector<64x256xf32>,
    %c0_55 = arith.constant 0 : index
    %c0_56 = arith.constant 0 : index
    %31 = vector.load %arg10[%c0_55, %c0_56] : memref<64x2304xf32, #tpu.memory_space<vmem>>, vector<64x2304xf32>
    %c0_57 = arith.constant 0 : index
    %c0_58 = arith.constant 0 : index
    %32 = vector.load %arg2[%c0_57, %c0_58] : memref<2304x256xf32, #tpu.memory_space<vmem>>, vector<2304x256xf32>
    %cst_59 = arith.constant dense<0.000000e+00> : vector<64x256xf32>
    %33 = tpu.matmul %31, %32, %cst_59 {dimension_numbers = #tpu.dot_dimension_numbers<[1], [0], [0], [1], [0, 0, 1, 1], [], []>} : vector<64x2304xf32>, vector<2304x256xf32>, vector<64x256xf32> -> vector<64x256xf32>
    %c0_60 = arith.constant 0 : index
    %c0_61 = arith.constant 0 : index
    %34 = vector.load %arg3[%c0_60, %c0_61] : memref<1x256xf32, #tpu.memory_space<vmem>>, vector<1x256xf32>
    %35 = vector.broadcast %34 : vector<1x256xf32> to vector<64x256xf32>
    %36 = arith.addf %33, %35 : vector<64x256xf32>
    %37 = vector.shape_cast %36 : vector<64x256xf32> to vector<1x8x8x256xf32>
    %c0_62 = arith.constant 0 : index
    %c0_63 = arith.constant 0 : index
    %38 = vector.load %arg4[%c0_62, %c0_63] : memref<16x8xf32, #tpu.memory_space<vmem>>, vector<16x8xf32>
    %c0_64 = arith.constant 0 : index
    %c0_65 = arith.constant 0 : index
    %39 = vector.load %arg5[%c0_64, %c0_65] : memref<16x8xf32, #tpu.memory_space<vmem>>, vector<16x8xf32>
    %40 = vector.shape_cast %37 : vector<1x8x8x256xf32> to vector<8x8x256xf32>
    %41 = vector.extract_strided_slice %40 {offsets = [0, 0, 0], sizes = [8, 1, 256], strides = [1, 1, 1]} : vector<8x8x256xf32> to vector<8x1x256xf32>
    %42 = vector.shape_cast %41 : vector<8x1x256xf32> to vector<8x256xf32>
    %cst_66 = arith.constant dense<0.000000e+00> : vector<16x256xf32>
    %43 = tpu.matmul %38, %42, %cst_66 {dimension_numbers = #tpu.dot_dimension_numbers<[1], [0], [0], [1], [0, 0, 1, 1], [], []>} : vector<16x8xf32>, vector<8x256xf32>, vector<16x256xf32> -> vector<16x256xf32>
    %c0_67 = arith.constant 0 : index
    %c0_68 = arith.constant 0 : index
    %c0_69 = arith.constant 0 : index
    %44 = vector.load %arg11[%c0_67, %c0_68, %c0_69] : memref<16x8x256xf32, #tpu.memory_space<vmem>>, vector<16x1x256xf32>
    %45 = vector.shape_cast %44 : vector<16x1x256xf32> to vector<16x256xf32>
    %46 = vector.shape_cast %43 : vector<16x256xf32> to vector<16x1x256xf32>
    tpu.vector_store %arg11[%c0_67, %c0_68, %c0_69], %46 {strides = array<i32>} : memref<16x8x256xf32, #tpu.memory_space<vmem>>, vector<16x1x256xf32>,
    %47 = vector.extract_strided_slice %40 {offsets = [0, 1, 0], sizes = [8, 1, 256], strides = [1, 1, 1]} : vector<8x8x256xf32> to vector<8x1x256xf32>
    %48 = vector.shape_cast %47 : vector<8x1x256xf32> to vector<8x256xf32>
    %cst_70 = arith.constant dense<0.000000e+00> : vector<16x256xf32>
    %49 = tpu.matmul %38, %48, %cst_70 {dimension_numbers = #tpu.dot_dimension_numbers<[1], [0], [0], [1], [0, 0, 1, 1], [], []>} : vector<16x8xf32>, vector<8x256xf32>, vector<16x256xf32> -> vector<16x256xf32>
    %c0_71 = arith.constant 0 : index
    %c1_72 = arith.constant 1 : index
    %c0_73 = arith.constant 0 : index
    %50 = vector.load %arg11[%c0_71, %c1_72, %c0_73] : memref<16x8x256xf32, #tpu.memory_space<vmem>>, vector<16x1x256xf32>
    %51 = vector.shape_cast %50 : vector<16x1x256xf32> to vector<16x256xf32>
    %52 = vector.shape_cast %49 : vector<16x256xf32> to vector<16x1x256xf32>
    tpu.vector_store %arg11[%c0_71, %c1_72, %c0_73], %52 {strides = array<i32>} : memref<16x8x256xf32, #tpu.memory_space<vmem>>, vector<16x1x256xf32>,
    %53 = vector.extract_strided_slice %40 {offsets = [0, 2, 0], sizes = [8, 1, 256], strides = [1, 1, 1]} : vector<8x8x256xf32> to vector<8x1x256xf32>
    %54 = vector.shape_cast %53 : vector<8x1x256xf32> to vector<8x256xf32>
    %cst_74 = arith.constant dense<0.000000e+00> : vector<16x256xf32>
    %55 = tpu.matmul %38, %54, %cst_74 {dimension_numbers = #tpu.dot_dimension_numbers<[1], [0], [0], [1], [0, 0, 1, 1], [], []>} : vector<16x8xf32>, vector<8x256xf32>, vector<16x256xf32> -> vector<16x256xf32>
    %c0_75 = arith.constant 0 : index
    %c2_76 = arith.constant 2 : index
    %c0_77 = arith.constant 0 : index
    %56 = vector.load %arg11[%c0_75, %c2_76, %c0_77] : memref<16x8x256xf32, #tpu.memory_space<vmem>>, vector<16x1x256xf32>
    %57 = vector.shape_cast %56 : vector<16x1x256xf32> to vector<16x256xf32>
    %58 = vector.shape_cast %55 : vector<16x256xf32> to vector<16x1x256xf32>
    tpu.vector_store %arg11[%c0_75, %c2_76, %c0_77], %58 {strides = array<i32>} : memref<16x8x256xf32, #tpu.memory_space<vmem>>, vector<16x1x256xf32>,
    %59 = vector.extract_strided_slice %40 {offsets = [0, 3, 0], sizes = [8, 1, 256], strides = [1, 1, 1]} : vector<8x8x256xf32> to vector<8x1x256xf32>
    %60 = vector.shape_cast %59 : vector<8x1x256xf32> to vector<8x256xf32>
    %cst_78 = arith.constant dense<0.000000e+00> : vector<16x256xf32>
    %61 = tpu.matmul %38, %60, %cst_78 {dimension_numbers = #tpu.dot_dimension_numbers<[1], [0], [0], [1], [0, 0, 1, 1], [], []>} : vector<16x8xf32>, vector<8x256xf32>, vector<16x256xf32> -> vector<16x256xf32>
    %c0_79 = arith.constant 0 : index
    %c3 = arith.constant 3 : index
    %c0_80 = arith.constant 0 : index
    %62 = vector.load %arg11[%c0_79, %c3, %c0_80] : memref<16x8x256xf32, #tpu.memory_space<vmem>>, vector<16x1x256xf32>
    %63 = vector.shape_cast %62 : vector<16x1x256xf32> to vector<16x256xf32>
    %64 = vector.shape_cast %61 : vector<16x256xf32> to vector<16x1x256xf32>
    tpu.vector_store %arg11[%c0_79, %c3, %c0_80], %64 {strides = array<i32>} : memref<16x8x256xf32, #tpu.memory_space<vmem>>, vector<16x1x256xf32>,
    %65 = vector.extract_strided_slice %40 {offsets = [0, 4, 0], sizes = [8, 1, 256], strides = [1, 1, 1]} : vector<8x8x256xf32> to vector<8x1x256xf32>
    %66 = vector.shape_cast %65 : vector<8x1x256xf32> to vector<8x256xf32>
    %cst_81 = arith.constant dense<0.000000e+00> : vector<16x256xf32>
    %67 = tpu.matmul %38, %66, %cst_81 {dimension_numbers = #tpu.dot_dimension_numbers<[1], [0], [0], [1], [0, 0, 1, 1], [], []>} : vector<16x8xf32>, vector<8x256xf32>, vector<16x256xf32> -> vector<16x256xf32>
    %c0_82 = arith.constant 0 : index
    %c4 = arith.constant 4 : index
    %c0_83 = arith.constant 0 : index
    %68 = vector.load %arg11[%c0_82, %c4, %c0_83] : memref<16x8x256xf32, #tpu.memory_space<vmem>>, vector<16x1x256xf32>
    %69 = vector.shape_cast %68 : vector<16x1x256xf32> to vector<16x256xf32>
    %70 = vector.shape_cast %67 : vector<16x256xf32> to vector<16x1x256xf32>
    tpu.vector_store %arg11[%c0_82, %c4, %c0_83], %70 {strides = array<i32>} : memref<16x8x256xf32, #tpu.memory_space<vmem>>, vector<16x1x256xf32>,
    %71 = vector.extract_strided_slice %40 {offsets = [0, 5, 0], sizes = [8, 1, 256], strides = [1, 1, 1]} : vector<8x8x256xf32> to vector<8x1x256xf32>
    %72 = vector.shape_cast %71 : vector<8x1x256xf32> to vector<8x256xf32>
    %cst_84 = arith.constant dense<0.000000e+00> : vector<16x256xf32>
    %73 = tpu.matmul %38, %72, %cst_84 {dimension_numbers = #tpu.dot_dimension_numbers<[1], [0], [0], [1], [0, 0, 1, 1], [], []>} : vector<16x8xf32>, vector<8x256xf32>, vector<16x256xf32> -> vector<16x256xf32>
    %c0_85 = arith.constant 0 : index
    %c5 = arith.constant 5 : index
    %c0_86 = arith.constant 0 : index
    %74 = vector.load %arg11[%c0_85, %c5, %c0_86] : memref<16x8x256xf32, #tpu.memory_space<vmem>>, vector<16x1x256xf32>
    %75 = vector.shape_cast %74 : vector<16x1x256xf32> to vector<16x256xf32>
    %76 = vector.shape_cast %73 : vector<16x256xf32> to vector<16x1x256xf32>
    tpu.vector_store %arg11[%c0_85, %c5, %c0_86], %76 {strides = array<i32>} : memref<16x8x256xf32, #tpu.memory_space<vmem>>, vector<16x1x256xf32>,
    %77 = vector.extract_strided_slice %40 {offsets = [0, 6, 0], sizes = [8, 1, 256], strides = [1, 1, 1]} : vector<8x8x256xf32> to vector<8x1x256xf32>
    %78 = vector.shape_cast %77 : vector<8x1x256xf32> to vector<8x256xf32>
    %cst_87 = arith.constant dense<0.000000e+00> : vector<16x256xf32>
    %79 = tpu.matmul %38, %78, %cst_87 {dimension_numbers = #tpu.dot_dimension_numbers<[1], [0], [0], [1], [0, 0, 1, 1], [], []>} : vector<16x8xf32>, vector<8x256xf32>, vector<16x256xf32> -> vector<16x256xf32>
    %c0_88 = arith.constant 0 : index
    %c6 = arith.constant 6 : index
    %c0_89 = arith.constant 0 : index
    %80 = vector.load %arg11[%c0_88, %c6, %c0_89] : memref<16x8x256xf32, #tpu.memory_space<vmem>>, vector<16x1x256xf32>
    %81 = vector.shape_cast %80 : vector<16x1x256xf32> to vector<16x256xf32>
    %82 = vector.shape_cast %79 : vector<16x256xf32> to vector<16x1x256xf32>
    tpu.vector_store %arg11[%c0_88, %c6, %c0_89], %82 {strides = array<i32>} : memref<16x8x256xf32, #tpu.memory_space<vmem>>, vector<16x1x256xf32>,
    %83 = vector.extract_strided_slice %40 {offsets = [0, 7, 0], sizes = [8, 1, 256], strides = [1, 1, 1]} : vector<8x8x256xf32> to vector<8x1x256xf32>
    %84 = vector.shape_cast %83 : vector<8x1x256xf32> to vector<8x256xf32>
    %cst_90 = arith.constant dense<0.000000e+00> : vector<16x256xf32>
    %85 = tpu.matmul %38, %84, %cst_90 {dimension_numbers = #tpu.dot_dimension_numbers<[1], [0], [0], [1], [0, 0, 1, 1], [], []>} : vector<16x8xf32>, vector<8x256xf32>, vector<16x256xf32> -> vector<16x256xf32>
    %c0_91 = arith.constant 0 : index
    %c7 = arith.constant 7 : index
    %c0_92 = arith.constant 0 : index
    %86 = vector.load %arg11[%c0_91, %c7, %c0_92] : memref<16x8x256xf32, #tpu.memory_space<vmem>>, vector<16x1x256xf32>
    %87 = vector.shape_cast %86 : vector<16x1x256xf32> to vector<16x256xf32>
    %88 = vector.shape_cast %85 : vector<16x256xf32> to vector<16x1x256xf32>
    tpu.vector_store %arg11[%c0_91, %c7, %c0_92], %88 {strides = array<i32>} : memref<16x8x256xf32, #tpu.memory_space<vmem>>, vector<16x1x256xf32>,
    %cst_93 = arith.constant 0.000000e+00 : f32
    %89 = vector.broadcast %cst_93 : f32 to vector<1x256xf32>
    %c0_i32 = arith.constant 0 : i32
    %c16_i32 = arith.constant 16 : i32
    %90 = arith.addi %c0_i32, %c16_i32 : i32
    %c1_i32 = arith.constant 1 : i32
    %91 = scf.for %arg12 = %c0_i32 to %90 step %c1_i32 iter_args(%arg13 = %89) -> (vector<1x256xf32>)  : i32 {
      %100 = arith.index_cast %arg12 : i32 to index
      %c0_104 = arith.constant 0 : index
      %c0_105 = arith.constant 0 : index
      %101 = vector.load %arg11[%100, %c0_104, %c0_105] : memref<16x8x256xf32, #tpu.memory_space<vmem>>, vector<1x8x256xf32>
      %102 = vector.shape_cast %101 : vector<1x8x256xf32> to vector<8x256xf32>
      %cst_106 = arith.constant dense<0.000000e+00> : vector<16x256xf32>
      %103 = tpu.matmul %39, %102, %cst_106 {dimension_numbers = #tpu.dot_dimension_numbers<[1], [0], [0], [1], [0, 0, 1, 1], [], []>} : vector<16x8xf32>, vector<8x256xf32>, vector<16x256xf32> -> vector<16x256xf32>
      %cst_107 = arith.constant 0.000000e+00 : f32
      %104 = vector.broadcast %cst_107 : f32 to vector<16x256xf32>
      %105 = arith.maximumf %103, %104 : vector<16x256xf32>
      %cst_108 = arith.constant dense<0.000000e+00> : vector<256xf32>
      %106 = vector.multi_reduction <add>, %105, %cst_108 [0] : vector<16x256xf32> to vector<256xf32>
      %107 = vector.shape_cast %106 : vector<256xf32> to vector<1x256xf32>
      %108 = arith.addf %arg13, %107 : vector<1x256xf32>
      scf.yield %108 : vector<1x256xf32>
    }
    %c16_i32_94 = arith.constant 16 : i32
    %cst_95 = arith.constant 3.906250e-03 : f32
    %92 = vector.broadcast %cst_95 : f32 to vector<1x256xf32>
    %93 = arith.mulf %91, %92 : vector<1x256xf32>
    %c0_96 = arith.constant 0 : index
    %c0_97 = arith.constant 0 : index
    %94 = vector.load %arg6[%c0_96, %c0_97] : memref<256x128xf32, #tpu.memory_space<vmem>>, vector<256x128xf32>
    %cst_98 = arith.constant dense<0.000000e+00> : vector<1x128xf32>
    %95 = tpu.matmul %93, %94, %cst_98 {dimension_numbers = #tpu.dot_dimension_numbers<[1], [0], [0], [1], [0, 0, 1, 1], [], []>} : vector<1x256xf32>, vector<256x128xf32>, vector<1x128xf32> -> vector<1x128xf32>
    %c0_99 = arith.constant 0 : index
    %c0_100 = arith.constant 0 : index
    %96 = vector.load %arg7[%c0_99, %c0_100] : memref<1x128xf32, #tpu.memory_space<vmem>>, vector<1x128xf32>
    %97 = arith.addf %95, %96 : vector<1x128xf32>
    %98 = vector.shape_cast %97 : vector<1x128xf32> to vector<1x1x128xf32>
    %c0_101 = arith.constant 0 : index
    %c0_102 = arith.constant 0 : index
    %c0_103 = arith.constant 0 : index
    %99 = vector.load %arg8[%c0_101, %c0_102, %c0_103] : memref<1x1x128xf32, #tpu.memory_space<vmem>>, vector<1x1x128xf32>
    tpu.vector_store %arg8[%c0_101, %c0_102, %c0_103], %98 {strides = array<i32>} : memref<1x1x128xf32, #tpu.memory_space<vmem>>, vector<1x1x128xf32>,
    return
  }
  func.func @transform_0(%arg0: i32) -> (i32, i32, i32, i32) {
    %c0_i32 = arith.constant 0 : i32
    %c0_i32_0 = arith.constant 0 : i32
    %c0_i32_1 = arith.constant 0 : i32
    %c0_i32_2 = arith.constant 0 : i32
    return %arg0, %c0_i32, %c0_i32_0, %c0_i32_1 : i32, i32, i32, i32
  }
  func.func @transform_1(%arg0: i32) -> (i32, i32) {
    %c0_i32 = arith.constant 0 : i32
    %c0_i32_0 = arith.constant 0 : i32
    %c0_i32_1 = arith.constant 0 : i32
    return %c0_i32, %c0_i32_0 : i32, i32
  }
  func.func @transform_2(%arg0: i32) -> (i32, i32) {
    %c0_i32 = arith.constant 0 : i32
    %c0_i32_0 = arith.constant 0 : i32
    %c0_i32_1 = arith.constant 0 : i32
    return %c0_i32, %c0_i32_0 : i32, i32
  }
  func.func @transform_3(%arg0: i32) -> (i32, i32) {
    %c0_i32 = arith.constant 0 : i32
    %c0_i32_0 = arith.constant 0 : i32
    %c0_i32_1 = arith.constant 0 : i32
    return %c0_i32, %c0_i32_0 : i32, i32
  }
  func.func @transform_4(%arg0: i32) -> (i32, i32) {
    %c0_i32 = arith.constant 0 : i32
    %c0_i32_0 = arith.constant 0 : i32
    %c0_i32_1 = arith.constant 0 : i32
    return %c0_i32, %c0_i32_0 : i32, i32
  }
  func.func @transform_5(%arg0: i32) -> (i32, i32) {
    %c0_i32 = arith.constant 0 : i32
    %c0_i32_0 = arith.constant 0 : i32
    %c0_i32_1 = arith.constant 0 : i32
    return %c0_i32, %c0_i32_0 : i32, i32
  }
  func.func @transform_6(%arg0: i32) -> (i32, i32) {
    %c0_i32 = arith.constant 0 : i32
    %c0_i32_0 = arith.constant 0 : i32
    %c0_i32_1 = arith.constant 0 : i32
    return %c0_i32, %c0_i32_0 : i32, i32
  }
  func.func @transform_7(%arg0: i32) -> (i32, i32, i32) {
    %c0_i32 = arith.constant 0 : i32
    %c0_i32_0 = arith.constant 0 : i32
    %c0_i32_1 = arith.constant 0 : i32
    return %arg0, %c0_i32, %c0_i32_0 : i32, i32, i32
  }
}

</mosaic_0001>

<bundles_post_ra>
// kernel: tpu_custom_call.1
= control target key start
LH: loop header
LB: loop body
LE: loop exit
PB: predicated region body
PF: predicated region fallthrough
CT: control target
= control target key end

     0   :  { %s8699_s0 = inlined_call_operand.hbm [shape: f32[2,8,8,256], index: 0, kind: input, shape index: {}]   ;;  %s8700_s1 = inlined_call_operand.hbm [shape: f32[2304,256], index: 1, kind: input, shape index: {}]   ;;  %s8701_s2 = inlined_call_operand.hbm [shape: f32[1,256], index: 2, kind: input, shape index: {}]   ;;  %s8702_s3 = inlined_call_operand.vmem [shape: f32[16,8], index: 3, kind: input, shape index: {}]   ;;  %s8703_s4 = inlined_call_operand.vmem [shape: f32[16,8], index: 4, kind: input, shape index: {}]   ;;  %s8704_s5 = inlined_call_operand.hbm [shape: f32[256,128], index: 5, kind: input, shape index: {}]   ;;  %s8705_s6 = inlined_call_operand.hbm [shape: f32[1,128], index: 6, kind: input, shape index: {}]   ;;  %s8706_s7 = inlined_call_operand.hbm [shape: f32[2,1,128], index: 7, kind: output, shape index: {}]  }
   0x1   :  { %8712 = sst [smem:[#allocation19_spill]] %s8700_s1 }
   0x2   :  { %12 = vsyncpa [#allocation6], 0 }
   0x3   :  { %14 = vsyncpa [#allocation6 + $0x1], 0 }
   0x4   :  { %15 = vsyncpa [#allocation9], 0 }
   0x5   :  { %16 = vsyncpa [#allocation12], 0 }
   0x6   :  { %17 = vsyncpa [#allocation7], 0 }
   0x7   :  { %19 = vsyncpa [#allocation7 + $0x1], 0  ;;  %s7033_s24 = smov 0   ;;  %s7035_s25 = smov 0  }
   0x8   :  { %s7037_s26 = smov 0   ;;  %s7039_s27 = smov 0  }
   0x9 LB: > { %s7054_s28 = sadd.s32 4294967295, %s6966_s27   ;;  %s5788_s29 = sadd.s32 4294967294, %s6966_s27   ;;  %s6966_s27 = sphi %s7039_s27, %s8738_s27   ;;  %s6962_s26 = sphi %s7037_s26, %s8737_s26   ;;  %s6958_s25 = sphi %s7035_s25, %s8736_s25   ;;  %s6954_s24 = sphi %s7033_s24, %s8735_s24  }
   0xa   : > { %p45_p0 = scmp.ne.s32.totalorder %s6958_s25, %s6954_s24  ;;  %p8707_p1 = scmp.eq.s32.totalorder %s7054_s28, 0 }
   0xb   : > { %p201_p3 = scmp.eq.s32.totalorder %s5788_s29, 1  ;;  %p5789_p5 = scmp.ge.s32.totalorder %s6966_s27, 1 }
   0xc   : > { %p7063_p4 = por %p8707_p1, %p45_p0  ;;  %p208_p7 = scmp.lt.s32.totalorder %s6966_s27, 3 }
   0xd   : > { %p7068_p6 = por %p201_p3, %p45_p0  ;;  %s6980_s10 = smov [#allocation8]  }
   0xe   : > { %s8713_s30 = scalar_select %p7063_p4, 1, 0 }
   0xf   : > { %s8714_s8 = scalar_select %p7068_p6, 1, 0 }
  0x10   : > { %p7073_p8 = pnand %p5789_p5, %p208_p7  ;;  %s220_s11 = sshll.u32 %s6980_s10, 4  ;;  %s7077_s11 = int_to_ptr.vmem [resolvable:$true] %s220_s11 }
  0x11   : > { %s6981_s13 = smov [#allocation11]   ;;  %s8717_s1 = sld [smem:[#allocation19_spill]] }
  0x12   : > { %s8715_s9 = scalar_select %p7073_p8, 1, 0 }
  0x13   : > { %p6638_p9 = pneg %p7073_p8  ;;  %s250_s14 = sshll.u32 %s6981_s13, 4  ;;  %s7088_s14 = int_to_ptr.vmem [resolvable:$true] %s250_s14 }
  0x15   : > { %p7084_p11 = pnand %p6638_p9, %p8707_p1 }
  0x17   : > { %s6738_s17 = scalar_lea.hbm %s8717_s1, 73728  ;;  %p7098_p13 = pneg %p7084_p11 }
  0x18   : > { %p6739_p12 = scmp.ne.s32.totalorder %s8717_s1, %s6738_s17  ;;  %p6745_p5 = scmp.lt.u32.totalorder %s6738_s17, %s8717_s1 }
  0x1a   : > { %p6741_p0 = pnand %p7098_p13, %p6739_p12 }
  0x1c   : > { %p6742_p3 = pneg %p6741_p0 }
  0x1e   : > { %p6747_p7 = pnand %p6745_p5, %p6742_p3 }
  0x20   : > { %6750 = shalt.err (!%p6747_p7)
}
  0x21   : > { %s6751_s23 = scalar_lea.vmem %s7077_s11, 73728  ;;  %p6759_p2 = scmp.lt.s32.totalorder %s7077_s11, %s7077_s11 }
  0x22   : > { %p6752_p9 = scmp.ne.s32.totalorder %s7077_s11, %s6751_s23  ;;  %p6760_p6 = scmp.lt.s32.totalorder %s6751_s23, %s6751_s23 }
  0x24   : > { %p6754_p10 = pnand %p6752_p9, %p7098_p13  ;;  %p6761_p12 = por %p6760_p6, %p6759_p2 }
  0x26   : > { %p6755_p1 = pneg %p6754_p10 }
  0x28   : > { %p6762_p0 = pnand %p6761_p12, %p6755_p1 }
  0x2a   : > { %6765 = shalt.err (!%p6762_p0)
}
  0x2b   : > { %s8708_s29 = smov 256   ;;  %s8709_s10 = smov 16  }
  0x2c   : > { %6641 = dma.hbm_to_vmem [thread:$0]  (!%p7084_p11), %s8717_s1, 73728, %s7077_s11, [#allocation9], %s8708_s29, %s8708_s29, %s8709_s10  }
  0x2d   : > { %s6766_s18 = scalar_lea.hbm %s8704_s5, 4096 }
  0x2e   : > { %p6767_p1 = scmp.ne.s32.totalorder %s8704_s5, %s6766_s18  ;;  %p6773_p10 = scmp.lt.u32.totalorder %s6766_s18, %s8704_s5 }
  0x30   : > { %p6769_p2 = pnand %p6767_p1, %p7098_p13 }
  0x32   : > { %p6770_p6 = pneg %p6769_p2 }
  0x34   : > { %p6775_p3 = pnand %p6773_p10, %p6770_p6 }
  0x36   : > { %6778 = shalt.err (!%p6775_p3)
}
  0x37   : > { %s6779_s11 = scalar_lea.vmem %s7088_s14, 4096  ;;  %p6787_p12 = scmp.lt.s32.totalorder %s7088_s14, %s7088_s14 }
  0x38   : > { %p6780_p5 = scmp.ne.s32.totalorder %s7088_s14, %s6779_s11  ;;  %p6788_p0 = scmp.lt.s32.totalorder %s6779_s11, %s6779_s11 }
  0x3a   : > { %p6782_p7 = pnand %p6780_p5, %p7098_p13  ;;  %p6789_p1 = por %p6788_p0, %p6787_p12 }
  0x3c   : > { %p6783_p9 = pneg %p6782_p7 }
  0x3e   : > { %p6790_p2 = pnand %p6789_p1, %p6783_p9 }
  0x40   : > { %6793 = shalt.err (!%p6790_p2)
}
  0x41   : > { %s6984_s13 = smov 128   ;;  %s6985_s15 = smov 8  }
  0x42   : > { %6647 = dma.hbm_to_vmem [thread:$0]  (!%p7084_p11), %s8704_s5, 4096, %s7088_s14, [#allocation12], %s6984_s13, %s6984_s13, %s6985_s15  }
  0x43   : > { %s6986_s18 = smov [#allocation10]   ;;  %s6987_s21 = smov [#allocation13]  }
  0x44   : > { %s234_s19 = sshll.u32 %s6986_s18, 4  ;;  %s264_s22 = sshll.u32 %s6987_s21, 4  ;;  %s235_s19 = int_to_ptr.vmem [resolvable:$true] %s234_s19  ;;  %s7145_s22 = int_to_ptr.vmem [resolvable:$true] %s264_s22 }
  0x45   : > { %s6794_s29 = scalar_lea.hbm %s8701_s2, 32 }
  0x46   : > { %p6795_p6 = scmp.ne.s32.totalorder %s8701_s2, %s6794_s29  ;;  %p6801_p5 = scmp.lt.u32.totalorder %s6794_s29, %s8701_s2 }
  0x48   : > { %p6797_p10 = pnand %p6795_p6, %p7098_p13 }
  0x4a   : > { %p6798_p3 = pneg %p6797_p10 }
  0x4c   : > { %p6803_p7 = pnand %p6801_p5, %p6798_p3 }
  0x4e   : > { %6806 = shalt.err (!%p6803_p7)
}
  0x4f   : > { %s6807_s13 = scalar_lea.vmem %s235_s19, 32  ;;  %p6815_p1 = scmp.lt.s32.totalorder %s235_s19, %s235_s19 }
  0x50   : > { %p6808_p9 = scmp.ne.s32.totalorder %s235_s19, %s6807_s13  ;;  %p6816_p2 = scmp.lt.s32.totalorder %s6807_s13, %s6807_s13 }
  0x52   : > { %p6810_p12 = pnand %p6808_p9, %p7098_p13  ;;  %p6817_p4 = por %p6816_p2, %p6815_p1 }
  0x54   : > { %p6811_p0 = pneg %p6810_p12 }
  0x56   : > { %p6818_p8 = pnand %p6817_p4, %p6811_p0 }
  0x58   : > { %6821 = shalt.err (!%p6818_p8)
}
  0x59   : > { %6644 = dma.hbm_to_vmem [thread:$0]  (!%p7084_p11), %s8701_s2, 32, %s235_s19, [#allocation9]  }
  0x5a   : > { %s6822_s17 = scalar_lea.hbm %s8705_s6, 16 }
  0x5b   : > { %p6823_p6 = scmp.ne.s32.totalorder %s8705_s6, %s6822_s17  ;;  %p6829_p4 = scmp.lt.u32.totalorder %s6822_s17, %s8705_s6 }
  0x5d   : > { %p6825_p10 = pnand %p6823_p6, %p7098_p13 }
  0x5f   : > { %p6826_p3 = pneg %p6825_p10 }
  0x61   : > { %p6831_p8 = pnand %p6829_p4, %p6826_p3 }
  0x63   : > { %6834 = shalt.err (!%p6831_p8)
}
  0x64   : > { %s6835_s19 = scalar_lea.vmem %s7145_s22, 16  ;;  %s6842_s16 = scalar_lea.vmem %s7145_s22, 32 }
  0x65   : > { %p6836_p5 = scmp.ne.s32.totalorder %s7145_s22, %s6835_s19  ;;  %p6843_p12 = scmp.lt.s32.totalorder %s7145_s22, %s7145_s22 }
  0x66   : > { %p6844_p0 = scmp.lt.s32.totalorder %s6842_s16, %s6835_s19 }
  0x67   : > { %p6838_p7 = pnand %p6836_p5, %p7098_p13 }
  0x68   : > { %p6845_p1 = por %p6844_p0, %p6843_p12 }
  0x69   : > { %p6839_p9 = pneg %p6838_p7 }
  0x6b   : > { %p6846_p2 = pnand %p6845_p1, %p6839_p9 }
  0x6d   : > { %6849 = shalt.err (!%p6846_p2)
}
  0x6e   : > { %6650 = dma.hbm_to_vmem [thread:$0]  (!%p7084_p11), %s8705_s6, 16, %s7145_s22, [#allocation12]  }
  0x6f   : > { %s7190_s20 = sadd.s32 1, %s6966_s27   ;;  %s32_s1 = sadd.s32 1, %s6962_s26 }
  0x70   : > { %s29_s12 = ssub.s32 %s6966_s27, %s7190_s20  ;;  %p39_p6 = scmp.ne.s32.totalorder %s6962_s26, %s6958_s25 }
  0x71   : > { %p30_p13 = scmp.eq.s32.totalorder %s29_s12, 0  ;;  %p40_p10 = scmp.eq.s32.totalorder %s6966_s27, 0 }
  0x72   : > { %p8719_p4 = scmp.eq.s32.totalorder %s7054_s28, 1  ;;  %p6663_p5 = scmp.lt.s32.totalorder %s6966_s27, 2 }
  0x73   : > { %s7199_s10 = scalar_select %p30_p13, %s6962_s26, %s32_s1  }
  0x74   : > { %p41_p3 = por %p40_p10, %p39_p6  ;;  %p7203_p8 = por %p8719_p4, %p39_p6 }
  0x75   : > { %s275_s15 = sand.u32 1, %s6962_s26   ;;  %s5827_s22 = sshll.u32 %s6966_s27, 11 }
  0x76   : > { %s5795_s17 = sshll.u32 %s275_s15, 7  ;;  %s7213_s23 = scalar_lea.hbm %s8699_s0, %s5827_s22 }
  0x77   : > { %s279_s11 = scalar_lea.vmem [#allocation5], %s5795_s17  ;;  %p7217_p11 = pnand %p6663_p5, %p41_p3 }
  0x78   : > { %s286_s19 = sshll.u32 %s279_s11, 4  ;;  %s7221_s14 = scalar_lea.sflag [#allocation6], %s275_s15  ;;  %s7215_s19 = int_to_ptr.vmem [resolvable:$true] %s286_s19 }
  0x79   : > { %s6850_s13 = scalar_lea.hbm %s7213_s23, 2048  ;;  %p6852_p9 = pneg %p7217_p11 }
  0x7a   : > { %p6851_p7 = scmp.ne.s32.totalorder %s7213_s23, %s6850_s13  ;;  %s6855_s17 = scalar_lea.hbm %s8699_s0, 4096 }
  0x7b   : > { %p6856_p1 = scmp.lt.u32.totalorder %s7213_s23, %s8699_s0  ;;  %p6857_p2 = scmp.lt.u32.totalorder %s6855_s17, %s6850_s13 }
  0x7c   : > { %p6853_p12 = pnand %p6852_p9, %p6851_p7  ;;  %p6859_p6 = scmp.lt.u32.totalorder %s6850_s13, %s7213_s23 }
  0x7d   : > { %p6858_p13 = por %p6857_p2, %p6856_p1 }
  0x7e   : > { %p6854_p0 = pneg %p6853_p12 }
  0x7f   : > { %p6860_p10 = por %p6859_p6, %p6858_p13 }
  0x81   : > { %p6861_p3 = pnand %p6860_p10, %p6854_p0 }
  0x83   : > { %6864 = shalt.err (!%p6861_p3)
}
  0x84   : > { %s6865_s15 = scalar_lea.vmem %s7215_s19, 2048  ;;  %s6988_s21 = smov [#allocation5]  }
  0x85   : > { %p6866_p4 = scmp.ne.s32.totalorder %s7215_s19, %s6865_s15  ;;  %s6870_s11 = sshll.u32 %s6988_s21, 4  ;;  %s6871_s11 = int_to_ptr.vmem [resolvable:$false] %s6870_s11 }
  0x86   : > { %s6872_s12 = scalar_lea.vmem %s6871_s11, 4096  ;;  %p6873_p12 = scmp.lt.s32.totalorder %s7215_s19, %s6871_s11 }
  0x87   : > { %p6868_p5 = pnand %p6866_p4, %p6852_p9  ;;  %p6874_p1 = scmp.lt.s32.totalorder %s6872_s12, %s6865_s15 }
  0x89   : > { %p6869_p7 = pneg %p6868_p5  ;;  %p6875_p2 = por %p6874_p1, %p6873_p12 }
  0x8b   : > { %p6876_p13 = pnand %p6875_p2, %p6869_p7 }
  0x8d   : > { %6879 = shalt.err (!%p6876_p13)
}
  0x8e   : > { %s8722_s13 = smov 16   ;;  %s8723_s1 = smov 256  }
  0x8f   : > { %6654 = dma.hbm_to_vmem [thread:$0]  (!%p7217_p11), %s7213_s23, 2048, %s7215_s19, %s7221_s14, %s8723_s1, %s8723_s1, %s8722_s13  }
  0x90   : > { %p8724_p9 = scmp.ne.s32.totalorder %s8715_s9, 0 }
  0x91   : > { %s7255_s17 = sand.u32 (!%p8724_p9), 1, %s6958_s25   ;;  %p8725_p0 = scmp.ne.s32.totalorder (!%p8724_p9), %s8713_s30, 0 }
  0x92   : > { %298 = sbr.rel (%p8724_p9) target bundleno = 1519 (0x5ef), region = 48  ;;  %s5799_s22 = sshll.u32 (!%p8724_p9), %s7255_s17, 7 }
  0x93   : > { %s301_s18 = scalar_lea.sflag (!%p8724_p9), [#allocation6], %s7255_s17  ;;  %s7259_s15 = scalar_lea.vmem (!%p8724_p9), [#allocation5], %s5799_s22 }
  0x99   : > { %6937 = dma.done.wait (%p8725_p0), %s301_s18, 2048  }
  0x9a   : > { %6939 = vsyncadd (%p8725_p0), %s301_s18, 4294965248  ;;  %p8726_p11 = scmp.eq.s32.totalorder %s7054_s28, 0 }
  0x9c   : > { %6941 = dma.done.wait (%p8726_p11), [#allocation9], 73760   ;;  %p8727_p6 = pmov %p8726_p11 }
  0x9e   : > { %6943 = vsyncadd (%p8727_p6), [#allocation9], 4294893536  ;;  %p8728_p10 = pmov %p8727_p6 }
  0x9f   : > { %p8729_p3 = pmov %p8727_p6 }
  0xa0   : > { %6945 = dma.done.wait (%p8728_p10), [#allocation12], 4112  }
  0xa1   : > { %6947 = vsyncadd (%p8729_p3), [#allocation12], 4294963184  ;;  %v6989_v0 = vmov 0.0   ;;  %v7317_v1 = vld [vmem:[%s8703_s4] sm:$0xff]  ;;  %v7322_v2 = vld [vmem:[%s8703_s4 + $0x8] sm:$0xff]  ;;  %vm583_vm0 = vcmask 1046528  }
  0xa2   : > { %351 = vst [vmem:[#allocation2 + $0x8] sm:$0xff] %v6989_v0  ;;  %2246 = vmatprep.mubr.f32.mxu1 %v6989_v0  ;;  %350 = vst [vmem:[#allocation2] sm:$0xff] %v6989_v0  ;;  %v1595_v3 = vld [vmem:[#allocation8 + $0x8] sm:$0xff]  ;;  %v1597_v4 = vld [vmem:[#allocation8 + $0x18] sm:$0xff]  ;;  %vm728_vm1 = vcmask 1045504   ;;  %vm3220_vm2 = vcmask 1041409  }
  0xa3   : > { %352 = vst [vmem:[#allocation2 + $0x10] sm:$0x3] %v6989_v0  ;;  %353 = vst [vmem:[#allocation2 + $0x18] sm:$0x3] %v6989_v0  ;;  %v1851_v5 = vld [vmem:[#allocation8 + $0x808] sm:$0xff]  ;;  %v1853_v6 = vld [vmem:[#allocation8 + $0x818] sm:$0xff]  ;;  %v5864_v7 = vpack.c.bf16 %v1597_v4, %v1595_v3 }
  0xa4   : > { %354 = vst [vmem:[#allocation2 + $0x20] sm:$0xff] %v6989_v0  ;;  %355 = vst [vmem:[#allocation2 + $0x28] sm:$0xff] %v6989_v0  ;;  %v6120_v8 = vpack.c.bf16 %v1853_v6, %v1851_v5  ;;  %v1594_v9 = vld [vmem:[#allocation8] sm:$0xff]  ;;  %v1596_v10 = vld [vmem:[#allocation8 + $0x10] sm:$0xff]  ;;  %vm3223_vm3 = vcmask 1042434   ;;  %vm3226_vm4 = vcmask 1043459  }
  0xa5   : > { %356 = vst [vmem:[#allocation2 + $0x30] sm:$0x3] %v6989_v0  ;;  %357 = vst [vmem:[#allocation2 + $0x38] sm:$0x3] %v6989_v0  ;;  %v1850_v11 = vld [vmem:[#allocation8 + $0x800] sm:$0xff]  ;;  %v5866_v12 = vpack.c.bf16 %v1596_v10, %v1594_v9  ;;  %v1852_v13 = vld [vmem:[#allocation8 + $0x810] sm:$0xff]  ;;  %5865 = vmatprep.subr.bf16.mxu1 %v5864_v7 }
  0xa6   : > { %358 = vst [vmem:[#allocation2 + $0x40] sm:$0xff] %v6989_v0  ;;  %359 = vst [vmem:[#allocation2 + $0x48] sm:$0xff] %v6989_v0  ;;  %v1599_v14 = vld [vmem:[#allocation8 + $0x28] sm:$0xff]  ;;  %v1601_v15 = vld [vmem:[#allocation8 + $0x38] sm:$0xff]  ;;  %6121 = vmatprep.subr.bf16.mxu0 %v6120_v8  ;;  %v6122_v16 = vpack.c.bf16 %v1852_v13, %v1850_v11  ;;  %vm3229_vm5 = vcmask 1044484   ;;  %vm3232_vm6 = vcmask 1045509  }
  0xa7   : > { %360 = vst [vmem:[#allocation2 + $0x50] sm:$0x3] %v6989_v0  ;;  %361 = vst [vmem:[#allocation2 + $0x58] sm:$0x3] %v6989_v0  ;;  %v5868_v17 = vpack.c.bf16 %v1601_v15, %v1599_v14  ;;  %v1855_v18 = vld [vmem:[#allocation8 + $0x828] sm:$0xff]  ;;  %v1857_v19 = vld [vmem:[#allocation8 + $0x838] sm:$0xff]  ;;  %5867 = vmatpush1.bf16.msra.mxu1 %v5866_v12 }
  0xa8   : > { %362 = vst [vmem:[#allocation2 + $0x60] sm:$0xff] %v6989_v0  ;;  %363 = vst [vmem:[#allocation2 + $0x68] sm:$0xff] %v6989_v0  ;;  %v1598_v20 = vld [vmem:[#allocation8 + $0x20] sm:$0xff]  ;;  %v6124_v21 = vpack.c.bf16 %v1857_v19, %v1855_v18  ;;  %v1600_v22 = vld [vmem:[#allocation8 + $0x30] sm:$0xff]  ;;  %6123 = vmatpush1.bf16.msra.mxu0 %v6122_v16  ;;  %vm3235_vm7 = vcmask 1046534   ;;  %vm3238_vm8 = vcmask 1047559  }
  0xa9   : > { %364 = vst [vmem:[#allocation2 + $0x70] sm:$0x3] %v6989_v0  ;;  %365 = vst [vmem:[#allocation2 + $0x78] sm:$0x3] %v6989_v0  ;;  %v1854_v23 = vld [vmem:[#allocation8 + $0x820] sm:$0xff]  ;;  %v1856_v24 = vld [vmem:[#allocation8 + $0x830] sm:$0xff]  ;;  %5869 = vmatprep.subr.bf16.mxu1 %v5868_v17  ;;  %v5870_v25 = vpack.c.bf16 %v1600_v22, %v1598_v20 }
  0xaa   : > { %366 = vst [vmem:[#allocation2 + $0x80] sm:$0xff] %v6989_v0  ;;  %367 = vst [vmem:[#allocation2 + $0x88] sm:$0xff] %v6989_v0  ;;  %v6126_v26 = vpack.c.bf16 %v1856_v24, %v1854_v23  ;;  %v1603_v27 = vld [vmem:[#allocation8 + $0x48] sm:$0xff]  ;;  %v1605_v28 = vld [vmem:[#allocation8 + $0x58] sm:$0xff]  ;;  %6125 = vmatprep.subr.bf16.mxu0 %v6124_v21  ;;  %vm3256_vm9 = vcmask 64512   ;;  %s349_s12 = scalar_lea.vmem [#allocation14], %s7255_s17 }
  0xab   : > { %368 = vst [vmem:[#allocation2 + $0x90] sm:$0x3] %v6989_v0  ;;  %369 = vst [vmem:[#allocation2 + $0x98] sm:$0x3] %v6989_v0  ;;  %v1859_v29 = vld [vmem:[#allocation8 + $0x848] sm:$0xff]  ;;  %v5872_v30 = vpack.c.bf16 %v1605_v28, %v1603_v27  ;;  %v1861_v31 = vld [vmem:[#allocation8 + $0x858] sm:$0xff]  ;;  %5871 = vmatpush1.bf16.msra.mxu1 %v5870_v25 }
  0xac   : > { %370 = vst [vmem:[#allocation2 + $0xa0] sm:$0xff] %v6989_v0  ;;  %371 = vst [vmem:[#allocation2 + $0xa8] sm:$0xff] %v6989_v0  ;;  %v1602_v32 = vld [vmem:[#allocation8 + $0x40] sm:$0xff]  ;;  %v1604_v33 = vld [vmem:[#allocation8 + $0x50] sm:$0xff]  ;;  %v6128_v34 = vpack.c.bf16 %v1861_v31, %v1859_v29  ;;  %6127 = vmatpush1.bf16.msra.mxu0 %v6126_v26  ;;  %s8630_s13 = smov 0  }
  0xad   : > { %372 = vst [vmem:[#allocation2 + $0xb0] sm:$0x3] %v6989_v0  ;;  %373 = vst [vmem:[#allocation2 + $0xb8] sm:$0x3] %v6989_v0  ;;  %v1858_v35 = vld [vmem:[#allocation8 + $0x840] sm:$0xff]  ;;  %v1860_v36 = vld [vmem:[#allocation8 + $0x850] sm:$0xff]  ;;  %v5874_v38 = vpack.c.bf16 %v1604_v33, %v1602_v32  ;;  %5873 = vmatprep.subr.bf16.mxu1 %v5872_v30 }
  0xae   : > { %374 = vst [vmem:[#allocation2 + $0xc0] sm:$0xff] %v6989_v0  ;;  %375 = vst [vmem:[#allocation2 + $0xc8] sm:$0xff] %v6989_v0  ;;  %v1607_v37 = vld [vmem:[#allocation8 + $0x68] sm:$0xff]  ;;  %v1609_v39 = vld [vmem:[#allocation8 + $0x78] sm:$0xff]  ;;  %v6130_v42 = vpack.c.bf16 %v1860_v36, %v1858_v35  ;;  %6129 = vmatprep.subr.bf16.mxu0 %v6128_v34 }
  0xaf   : > { %376 = vst [vmem:[#allocation2 + $0xd0] sm:$0x3] %v6989_v0  ;;  %377 = vst [vmem:[#allocation2 + $0xd8] sm:$0x3] %v6989_v0  ;;  %v1863_v40 = vld [vmem:[#allocation8 + $0x868] sm:$0xff]  ;;  %v1865_v41 = vld [vmem:[#allocation8 + $0x878] sm:$0xff]  ;;  %v5876_v43 = vpack.c.bf16 %v1609_v39, %v1607_v37  ;;  %5875 = vmatpush1.bf16.msra.mxu1 %v5874_v38 }
  0xb0   : > { %378 = vst [vmem:[#allocation2 + $0xe0] sm:$0xff] %v6989_v0  ;;  %379 = vst [vmem:[#allocation2 + $0xe8] sm:$0xff] %v6989_v0  ;;  %v1606_v44 = vld [vmem:[#allocation8 + $0x60] sm:$0xff]  ;;  %v1608_v45 = vld [vmem:[#allocation8 + $0x70] sm:$0xff]  ;;  %v6132_v47 = vpack.c.bf16 %v1865_v41, %v1863_v40  ;;  %6131 = vmatpush1.bf16.msra.mxu0 %v6130_v42 }
  0xb1   : > { %380 = vst [vmem:[#allocation2 + $0xf0] sm:$0x3] %v6989_v0  ;;  %381 = vst [vmem:[#allocation2 + $0xf8] sm:$0x3] %v6989_v0  ;;  %v1862_v46 = vld [vmem:[#allocation8 + $0x860] sm:$0xff]  ;;  %v1864_v48 = vld [vmem:[#allocation8 + $0x870] sm:$0xff]  ;;  %v5878_v53 = vpack.c.bf16 %v1608_v45, %v1606_v44  ;;  %5877 = vmatprep.subr.bf16.mxu1 %v5876_v43 }
  0xb2   : > { %382 = vst [vmem:[#allocation2 + $0x100] sm:$0xff] %v6989_v0  ;;  %383 = vst [vmem:[#allocation2 + $0x108] sm:$0xff] %v6989_v0  ;;  %v1611_v49 = vld [vmem:[#allocation8 + $0x88] sm:$0xff]  ;;  %v1613_v50 = vld [vmem:[#allocation8 + $0x98] sm:$0xff]  ;;  %v6134_v54 = vpack.c.bf16 %v1864_v48, %v1862_v46  ;;  %6133 = vmatprep.subr.bf16.mxu0 %v6132_v47 }
  0xb3   : > { %384 = vst [vmem:[#allocation2 + $0x110] sm:$0x3] %v6989_v0  ;;  %385 = vst [vmem:[#allocation2 + $0x118] sm:$0x3] %v6989_v0  ;;  %v1867_v51 = vld [vmem:[#allocation8 + $0x888] sm:$0xff]  ;;  %v1869_v52 = vld [vmem:[#allocation8 + $0x898] sm:$0xff]  ;;  %v5880_v55 = vpack.c.bf16 %v1613_v50, %v1611_v49  ;;  %5879 = vmatpush1.bf16.msra.mxu1 %v5878_v53 }
  0xb4   : > { %386 = vst [vmem:[#allocation2 + $0x120] sm:$0xff] %v6989_v0  ;;  %387 = vst [vmem:[#allocation2 + $0x128] sm:$0xff] %v6989_v0  ;;  %v1610_v56 = vld [vmem:[#allocation8 + $0x80] sm:$0xff]  ;;  %v1612_v57 = vld [vmem:[#allocation8 + $0x90] sm:$0xff]  ;;  %v6136_v59 = vpack.c.bf16 %v1869_v52, %v1867_v51  ;;  %6135 = vmatpush1.bf16.msra.mxu0 %v6134_v54 }
  0xb5   : > { %388 = vst [vmem:[#allocation2 + $0x130] sm:$0x3] %v6989_v0  ;;  %389 = vst [vmem:[#allocation2 + $0x138] sm:$0x3] %v6989_v0  ;;  %v1866_v58 = vld [vmem:[#allocation8 + $0x880] sm:$0xff]  ;;  %v1868_v60 = vld [vmem:[#allocation8 + $0x890] sm:$0xff]  ;;  %v5882_v4 = vpack.c.bf16 %v1612_v57, %v1610_v56  ;;  %5881 = vmatprep.subr.bf16.mxu1 %v5880_v55 }
  0xb6   : > { %v1615_v61 = vld [vmem:[#allocation8 + $0xa8] sm:$0xff]  ;;  %v1617_v62 = vld [vmem:[#allocation8 + $0xb8] sm:$0xff]  ;;  %v6138_v5 = vpack.c.bf16 %v1868_v60, %v1866_v58  ;;  %v1614_v7 = vld [vmem:[#allocation8 + $0xa0] sm:$0xff]  ;;  %6137 = vmatprep.subr.bf16.mxu0 %v6136_v59 }
  0xb7   : > { %v1871_v63 = vld [vmem:[#allocation8 + $0x8a8] sm:$0xff]  ;;  %v1873_v3 = vld [vmem:[#allocation8 + $0x8b8] sm:$0xff]  ;;  %v5884_v6 = vpack.c.bf16 %v1617_v62, %v1615_v61  ;;  %v1616_v8 = vld [vmem:[#allocation8 + $0xb0] sm:$0xff]  ;;  %5883 = vmatpush1.bf16.msra.mxu1 %v5882_v4 }
  0xb8   : > { %v1870_v9 = vld [vmem:[#allocation8 + $0x8a0] sm:$0xff]  ;;  %v6140_v10 = vpack.c.bf16 %v1873_v3, %v1871_v63  ;;  %v1872_v11 = vld [vmem:[#allocation8 + $0x8b0] sm:$0xff]  ;;  %v1619_v12 = vld [vmem:[#allocation8 + $0xc8] sm:$0xff]  ;;  %v5886_v16 = vpack.c.bf16 %v1616_v8, %v1614_v7  ;;  %6139 = vmatpush1.bf16.msra.mxu0 %v6138_v5 }
  0xb9   : > { %v1621_v13 = vld [vmem:[#allocation8 + $0xd8] sm:$0xff]  ;;  %v1875_v14 = vld [vmem:[#allocation8 + $0x8c8] sm:$0xff]  ;;  %5885 = vmatprep.subr.bf16.mxu1 %v5884_v6  ;;  %v6142_v17 = vpack.c.bf16 %v1872_v11, %v1870_v9  ;;  %v1618_v19 = vld [vmem:[#allocation8 + $0xc0] sm:$0xff] }
  0xba   : > { %v1877_v15 = vld [vmem:[#allocation8 + $0x8d8] sm:$0xff]  ;;  %v5888_v18 = vpack.c.bf16 %v1621_v13, %v1619_v12  ;;  %v1620_v20 = vld [vmem:[#allocation8 + $0xd0] sm:$0xff]  ;;  %v1874_v21 = vld [vmem:[#allocation8 + $0x8c0] sm:$0xff]  ;;  %6141 = vmatprep.subr.bf16.mxu0 %v6140_v10 }
  0xbb   : > { %v6144_v22 = vpack.c.bf16 %v1877_v15, %v1875_v14  ;;  %v1876_v23 = vld [vmem:[#allocation8 + $0x8d0] sm:$0xff]  ;;  %v1623_v24 = vld [vmem:[#allocation8 + $0xe8] sm:$0xff]  ;;  %v1625_v25 = vld [vmem:[#allocation8 + $0xf8] sm:$0xff]  ;;  %5887 = vmatpush1.bf16.msra.mxu1 %v5886_v16  ;;  %v5890_v28 = vpack.c.bf16 %v1620_v20, %v1618_v19 }
  0xbc   : > { %v1879_v26 = vld [vmem:[#allocation8 + $0x8e8] sm:$0xff]  ;;  %v1881_v27 = vld [vmem:[#allocation8 + $0x8f8] sm:$0xff]  ;;  %6143 = vmatpush1.bf16.msra.mxu0 %v6142_v17  ;;  %5889 = vmatprep.subr.bf16.mxu1 %v5888_v18  ;;  %v6146_v29 = vpack.c.bf16 %v1876_v23, %v1874_v21  ;;  %v5892_v30 = vpack.c.bf16 %v1625_v25, %v1623_v24  ;;  %v1622_v31 = vld [vmem:[#allocation8 + $0xe0] sm:$0xff] }
  0xbd   : > { %v1624_v32 = vld [vmem:[#allocation8 + $0xf0] sm:$0xff]  ;;  %v1878_v33 = vld [vmem:[#allocation8 + $0x8e0] sm:$0xff]  ;;  %6145 = vmatprep.subr.bf16.mxu0 %v6144_v22  ;;  %v6148_v34 = vpack.c.bf16 %v1881_v27, %v1879_v26  ;;  %v1627_v36 = vld [vmem:[#allocation8 + $0x108] sm:$0xff] }
  0xbe   : > { %v1880_v35 = vld [vmem:[#allocation8 + $0x8f0] sm:$0xff]  ;;  %v1629_v37 = vld [vmem:[#allocation8 + $0x118] sm:$0xff]  ;;  %v1883_v38 = vld [vmem:[#allocation8 + $0x908] sm:$0xff]  ;;  %v5894_v40 = vpack.c.bf16 %v1624_v32, %v1622_v31 }
  0xbf   : > { %v1885_v39 = vld [vmem:[#allocation8 + $0x918] sm:$0xff]  ;;  %5891 = vmatpush1.bf16.msra.mxu1 %v5890_v28  ;;  %v6150_v41 = vpack.c.bf16 %v1880_v35, %v1878_v33  ;;  %v5896_v42 = vpack.c.bf16 %v1629_v37, %v1627_v36  ;;  %v1626_v43 = vld [vmem:[#allocation8 + $0x100] sm:$0xff]  ;;  %v1628_v44 = vld [vmem:[#allocation8 + $0x110] sm:$0xff] }
  0xc0   : > { %6147 = vmatpush1.bf16.msra.mxu0 %v6146_v29  ;;  %5893 = vmatprep.subr.bf16.mxu1 %v5892_v30  ;;  %v1882_v45 = vld [vmem:[#allocation8 + $0x900] sm:$0xff]  ;;  %v6152_v46 = vpack.c.bf16 %v1885_v39, %v1883_v38  ;;  %v1884_v47 = vld [vmem:[#allocation8 + $0x910] sm:$0xff]  ;;  %v1631_v48 = vld [vmem:[#allocation8 + $0x128] sm:$0xff]  ;;  %v5898_v52 = vpack.c.bf16 %v1628_v44, %v1626_v43 }
  0xc1   : > { %6149 = vmatprep.subr.bf16.mxu0 %v6148_v34  ;;  %v1633_v49 = vld [vmem:[#allocation8 + $0x138] sm:$0xff]  ;;  %v1887_v50 = vld [vmem:[#allocation8 + $0x928] sm:$0xff]  ;;  %v6154_v53 = vpack.c.bf16 %v1884_v47, %v1882_v45  ;;  %v1630_v55 = vld [vmem:[#allocation8 + $0x120] sm:$0xff] }
  0xc2   : > { %v1889_v51 = vld [vmem:[#allocation8 + $0x938] sm:$0xff]  ;;  %v5900_v54 = vpack.c.bf16 %v1633_v49, %v1631_v48  ;;  %v1632_v56 = vld [vmem:[#allocation8 + $0x130] sm:$0xff]  ;;  %v1886_v57 = vld [vmem:[#allocation8 + $0x920] sm:$0xff] }
  0xc3   : > { %5895 = vmatpush1.bf16.msra.mxu1 %v5894_v40  ;;  %v6156_v58 = vpack.c.bf16 %v1889_v51, %v1887_v50  ;;  %v1888_v59 = vld [vmem:[#allocation8 + $0x930] sm:$0xff]  ;;  %v1635_v60 = vld [vmem:[#allocation8 + $0x148] sm:$0xff]  ;;  %v1637_v61 = vld [vmem:[#allocation8 + $0x158] sm:$0xff]  ;;  %v5902_v3 = vpack.c.bf16 %v1632_v56, %v1630_v55 }
  0xc4   : > { %6151 = vmatpush1.bf16.msra.mxu0 %v6150_v41  ;;  %5897 = vmatprep.subr.bf16.mxu1 %v5896_v42  ;;  %v1891_v62 = vld [vmem:[#allocation8 + $0x948] sm:$0xff]  ;;  %v1893_v63 = vld [vmem:[#allocation8 + $0x958] sm:$0xff]  ;;  %v6158_v4 = vpack.c.bf16 %v1888_v59, %v1886_v57  ;;  %v5904_v5 = vpack.c.bf16 %v1637_v61, %v1635_v60  ;;  %v1634_v6 = vld [vmem:[#allocation8 + $0x140] sm:$0xff] }
  0xc5   : > { %6153 = vmatprep.subr.bf16.mxu0 %v6152_v46  ;;  %v1636_v7 = vld [vmem:[#allocation8 + $0x150] sm:$0xff]  ;;  %v1890_v8 = vld [vmem:[#allocation8 + $0x940] sm:$0xff]  ;;  %v6160_v9 = vpack.c.bf16 %v1893_v63, %v1891_v62  ;;  %v1639_v11 = vld [vmem:[#allocation8 + $0x168] sm:$0xff] }
  0xc6   : > { %v1892_v10 = vld [vmem:[#allocation8 + $0x950] sm:$0xff]  ;;  %v1641_v12 = vld [vmem:[#allocation8 + $0x178] sm:$0xff]  ;;  %v1895_v13 = vld [vmem:[#allocation8 + $0x968] sm:$0xff]  ;;  %v5906_v15 = vpack.c.bf16 %v1636_v7, %v1634_v6 }
  0xc7   : > { %5899 = vmatpush1.bf16.msra.mxu1 %v5898_v52  ;;  %v1897_v14 = vld [vmem:[#allocation8 + $0x978] sm:$0xff]  ;;  %v6162_v16 = vpack.c.bf16 %v1892_v10, %v1890_v8  ;;  %v5908_v17 = vpack.c.bf16 %v1641_v12, %v1639_v11  ;;  %v1638_v18 = vld [vmem:[#allocation8 + $0x160] sm:$0xff]  ;;  %v1640_v19 = vld [vmem:[#allocation8 + $0x170] sm:$0xff] }
  0xc8   : > { %6155 = vmatpush1.bf16.msra.mxu0 %v6154_v53  ;;  %5901 = vmatprep.subr.bf16.mxu1 %v5900_v54  ;;  %v1894_v20 = vld [vmem:[#allocation8 + $0x960] sm:$0xff]  ;;  %v6164_v21 = vpack.c.bf16 %v1897_v14, %v1895_v13  ;;  %v1896_v22 = vld [vmem:[#allocation8 + $0x970] sm:$0xff]  ;;  %v1643_v23 = vld [vmem:[#allocation8 + $0x188] sm:$0xff]  ;;  %v5910_v28 = vpack.c.bf16 %v1640_v19, %v1638_v18 }
  0xc9   : > { %6157 = vmatprep.subr.bf16.mxu0 %v6156_v58  ;;  %v1645_v24 = vld [vmem:[#allocation8 + $0x198] sm:$0xff]  ;;  %v1899_v25 = vld [vmem:[#allocation8 + $0x988] sm:$0xff]  ;;  %v390_v30 = vld [vmem:[%s7259_s15] sm:$0xff]  ;;  %v6166_v31 = vpack.c.bf16 %v1896_v22, %v1894_v20 }
  0xca   : > { %v1901_v26 = vld [vmem:[#allocation8 + $0x998] sm:$0xff]  ;;  %v391_v27 = vld [vmem:[%s7259_s15 + $0x8] sm:$0xff]  ;;  %v5912_v32 = vpack.c.bf16 %v1645_v24, %v1643_v23  ;;  %v1642_v33 = vld [vmem:[#allocation8 + $0x180] sm:$0xff]  ;;  %v422_v36 = vrot.slane %v390_v30, 7 }
  0xcb   : > { %5903 = vmatpush1.bf16.msra.mxu1 %v5902_v3  ;;  %v423_v29 = vrot.slane %v391_v27, 7  ;;  %v1644_v34 = vld [vmem:[#allocation8 + $0x190] sm:$0xff]  ;;  %v1898_v35 = vld [vmem:[#allocation8 + $0x980] sm:$0xff]  ;;  %v6168_v37 = vpack.c.bf16 %v1901_v26, %v1899_v25  ;;  %v1647_v39 = vld [vmem:[#allocation8 + $0x1a8] sm:$0xff] }
  0xcc   : > { %6159 = vmatpush1.bf16.msra.mxu0 %v6158_v4  ;;  %5905 = vmatprep.subr.bf16.mxu1 %v5904_v5  ;;  %v1900_v38 = vld [vmem:[#allocation8 + $0x990] sm:$0xff]  ;;  %v1649_v40 = vld [vmem:[#allocation8 + $0x1b8] sm:$0xff]  ;;  %v1903_v41 = vld [vmem:[#allocation8 + $0x9a8] sm:$0xff]  ;;  %455 = vst [vmem:[#allocation2 + $0x20] sm:$0xfe] %v422_v36  ;;  %v5914_v43 = vpack.c.bf16 %v1644_v34, %v1642_v33 }
  0xcd   : > { %6161 = vmatprep.subr.bf16.mxu0 %v6160_v9  ;;  %456 = vst [vmem:[#allocation2 + $0x28] sm:$0xfe] %v423_v29  ;;  %458 = vst [vmem:[#allocation2 + $0x38] sm:$0x1] %v423_v29  ;;  %v1905_v42 = vld [vmem:[#allocation8 + $0x9b8] sm:$0xff]  ;;  %v6170_v44 = vpack.c.bf16 %v1900_v38, %v1898_v35  ;;  %v5916_v45 = vpack.c.bf16 %v1649_v40, %v1647_v39  ;;  %v1646_v46 = vld [vmem:[#allocation8 + $0x1a0] sm:$0xff] }
  0xce   : > { %457 = vst [vmem:[#allocation2 + $0x30] sm:$0x1] %v422_v36  ;;  %v1648_v47 = vld [vmem:[#allocation8 + $0x1b0] sm:$0xff]  ;;  %v1902_v48 = vld [vmem:[#allocation8 + $0x9a0] sm:$0xff]  ;;  %v6172_v49 = vpack.c.bf16 %v1905_v42, %v1903_v41  ;;  %v1651_v51 = vld [vmem:[#allocation8 + $0x1c8] sm:$0xff] }
  0xcf   : > { %5907 = vmatpush1.bf16.msra.mxu1 %v5906_v15  ;;  %v1904_v50 = vld [vmem:[#allocation8 + $0x9b0] sm:$0xff]  ;;  %v1653_v52 = vld [vmem:[#allocation8 + $0x1d8] sm:$0xff]  ;;  %v1907_v53 = vld [vmem:[#allocation8 + $0x9c8] sm:$0xff]  ;;  %v5918_v55 = vpack.c.bf16 %v1648_v47, %v1646_v46 }
  0xd0   : > { %6163 = vmatpush1.bf16.msra.mxu0 %v6162_v16  ;;  %5909 = vmatprep.subr.bf16.mxu1 %v5908_v17  ;;  %v1909_v54 = vld [vmem:[#allocation8 + $0x9d8] sm:$0xff]  ;;  %v1650_v56 = vld [vmem:[#allocation8 + $0x1c0] sm:$0xff]  ;;  %v1652_v57 = vld [vmem:[#allocation8 + $0x1d0] sm:$0xff]  ;;  %v6174_v58 = vpack.c.bf16 %v1904_v50, %v1902_v48  ;;  %v5920_v59 = vpack.c.bf16 %v1653_v52, %v1651_v51 }
  0xd1   : > { %6165 = vmatprep.subr.bf16.mxu0 %v6164_v21  ;;  %v1906_v60 = vld [vmem:[#allocation8 + $0x9c0] sm:$0xff]  ;;  %v6176_v63 = vpack.c.bf16 %v1909_v54, %v1907_v53  ;;  %v1908_v3 = vld [vmem:[#allocation8 + $0x9d0] sm:$0xff]  ;;  %v1655_v4 = vld [vmem:[#allocation8 + $0x1e8] sm:$0xff]  ;;  %v5922_v10 = vpack.c.bf16 %v1652_v57, %v1650_v56 }
  0xd2   : > { %v1657_v5 = vld [vmem:[#allocation8 + $0x1f8] sm:$0xff]  ;;  %v1911_v8 = vld [vmem:[#allocation8 + $0x9e8] sm:$0xff]  ;;  %v1654_v11 = vld [vmem:[#allocation8 + $0x1e0] sm:$0xff]  ;;  %v6178_v14 = vpack.c.bf16 %v1908_v3, %v1906_v60 }
  0xd3   : > { %5911 = vmatpush1.bf16.msra.mxu1 %v5910_v28  ;;  %v1913_v9 = vld [vmem:[#allocation8 + $0x9f8] sm:$0xff]  ;;  %v1656_v12 = vld [vmem:[#allocation8 + $0x1f0] sm:$0xff]  ;;  %v5924_v15 = vpack.c.bf16 %v1657_v5, %v1655_v4  ;;  %v1910_v16 = vld [vmem:[#allocation8 + $0x9e0] sm:$0xff] }
  0xd4   : > { %6167 = vmatpush1.bf16.msra.mxu0 %v6166_v31  ;;  %5913 = vmatprep.subr.bf16.mxu1 %v5912_v32  ;;  %v842_v61 = vld [vmem:[#allocation2 + $0x28] sm:$0xfe]  ;;  %v844_v62 = vld [vmem:[#allocation2 + $0x38] sm:$0x1]  ;;  %v1912_v17 = vld [vmem:[#allocation8 + $0x9f0] sm:$0xff]  ;;  %v6180_v19 = vpack.c.bf16 %v1913_v9, %v1911_v8  ;;  %v5926_v25 = vpack.c.bf16 %v1656_v12, %v1654_v11 }
  0xd5   : > { %6169 = vmatprep.subr.bf16.mxu0 %v6168_v37  ;;  %v908_v6 = vrot.slane %v842_v61, 1  ;;  %v909_v7 = vrot.slane %v844_v62, 1  ;;  %v1659_v18 = vld [vmem:[#allocation8 + $0x208] sm:$0xff]  ;;  %v1661_v20 = vld [vmem:[#allocation8 + $0x218] sm:$0xff]  ;;  %v841_v21 = vld [vmem:[#allocation2 + $0x20] sm:$0xfe]  ;;  %v6182_v26 = vpack.c.bf16 %v1912_v17, %v1910_v16 }
  0xd6   : > { %v843_v22 = vld [vmem:[#allocation2 + $0x30] sm:$0x1]  ;;  %v1915_v23 = vld [vmem:[#allocation8 + $0xa08] sm:$0xff]  ;;  %v1917_v24 = vld [vmem:[#allocation8 + $0xa18] sm:$0xff]  ;;  %v5928_v27 = vpack.c.bf16 %v1661_v20, %v1659_v18  ;;  %v905_v30 = vrot.slane %v841_v21, 1 }
  0xd7   : > { %5915 = vmatpush1.bf16.msra.mxu1 %v5914_v43  ;;  %v910_v13 = vsel %vm583_vm0, %v908_v6, %v909_v7  ;;  %v1658_v28 = vld [vmem:[#allocation8 + $0x200] sm:$0xff]  ;;  %v1660_v29 = vld [vmem:[#allocation8 + $0x210] sm:$0xff]  ;;  %v906_v31 = vrot.slane %v843_v22, 1  ;;  %v6184_v33 = vpack.c.bf16 %v1917_v24, %v1915_v23  ;;  %v1663_v35 = vld [vmem:[#allocation8 + $0x228] sm:$0xff] }
  0xd8   : > { %6171 = vmatpush1.bf16.msra.mxu0 %v6170_v44  ;;  %5917 = vmatprep.subr.bf16.mxu1 %v5916_v45  ;;  %v1914_v32 = vld [vmem:[#allocation8 + $0xa00] sm:$0xff]  ;;  %v1916_v34 = vld [vmem:[#allocation8 + $0xa10] sm:$0xff]  ;;  %v1665_v36 = vld [vmem:[#allocation8 + $0x238] sm:$0xff]  ;;  %v5930_v39 = vpack.c.bf16 %v1660_v29, %v1658_v28 }
  0xd9   : > { %6173 = vmatprep.subr.bf16.mxu0 %v6172_v49  ;;  %2698 = vmatprep.mubr.f32.mxu0 %v910_v13  ;;  %v1919_v37 = vld [vmem:[#allocation8 + $0xa28] sm:$0xff]  ;;  %v1921_v38 = vld [vmem:[#allocation8 + $0xa38] sm:$0xff]  ;;  %v907_v40 = vsel %vm583_vm0, %v905_v30, %v906_v31  ;;  %v6186_v41 = vpack.c.bf16 %v1916_v34, %v1914_v32  ;;  %v5932_v42 = vpack.c.bf16 %v1665_v36, %v1663_v35  ;;  %v1662_v43 = vld [vmem:[#allocation8 + $0x220] sm:$0xff] }
  0xda   : > { %v1664_v44 = vld [vmem:[#allocation8 + $0x230] sm:$0xff]  ;;  %v1918_v45 = vld [vmem:[#allocation8 + $0xa20] sm:$0xff]  ;;  %v6188_v46 = vpack.c.bf16 %v1921_v38, %v1919_v37  ;;  %v1667_v48 = vld [vmem:[#allocation8 + $0x248] sm:$0xff] }
  0xdb   : > { %5919 = vmatpush1.bf16.msra.mxu1 %v5918_v55  ;;  %v1920_v47 = vld [vmem:[#allocation8 + $0xa30] sm:$0xff]  ;;  %v1669_v49 = vld [vmem:[#allocation8 + $0x258] sm:$0xff]  ;;  %v1923_v50 = vld [vmem:[#allocation8 + $0xa48] sm:$0xff]  ;;  %v5934_v52 = vpack.c.bf16 %v1664_v44, %v1662_v43 }
  0xdc   : > { %6175 = vmatpush1.bf16.msra.mxu0 %v6174_v58  ;;  %5921 = vmatprep.subr.bf16.mxu1 %v5920_v59  ;;  %v1925_v51 = vld [vmem:[#allocation8 + $0xa58] sm:$0xff]  ;;  %v1666_v53 = vld [vmem:[#allocation8 + $0x240] sm:$0xff]  ;;  %v1668_v54 = vld [vmem:[#allocation8 + $0x250] sm:$0xff]  ;;  %v6190_v56 = vpack.c.bf16 %v1920_v47, %v1918_v45  ;;  %v5936_v57 = vpack.c.bf16 %v1669_v49, %v1667_v48 }
  0xdd   : > { %6177 = vmatprep.subr.bf16.mxu0 %v6176_v63  ;;  %v490_v55 = vld [vmem:[#allocation2 + $0x28] sm:$0xff]  ;;  %v1922_v58 = vld [vmem:[#allocation8 + $0xa40] sm:$0xff]  ;;  %v1924_v59 = vld [vmem:[#allocation8 + $0xa50] sm:$0xff]  ;;  %v6192_v61 = vpack.c.bf16 %v1925_v51, %v1923_v50  ;;  %v5938_v7 = vpack.c.bf16 %v1668_v54, %v1666_v53 }
  0xde   : > { %v393_v60 = vld [vmem:[%s7259_s15 + $0x18] sm:$0xff]  ;;  %v1671_v62 = vld [vmem:[#allocation8 + $0x268] sm:$0xff]  ;;  %v489_v3 = vld [vmem:[#allocation2 + $0x20] sm:$0xff]  ;;  %v6194_v11 = vpack.c.bf16 %v1924_v59, %v1922_v58 }
  0xdf   : > { %5923 = vmatpush1.bf16.msra.mxu1 %v5922_v10  ;;  %v425_v63 = vrot.slane %v393_v60, 7  ;;  %v1927_v4 = vld [vmem:[#allocation8 + $0xa68] sm:$0xff]  ;;  %v1929_v5 = vld [vmem:[#allocation8 + $0xa78] sm:$0xff]  ;;  %v392_v6 = vld [vmem:[%s7259_s15 + $0x10] sm:$0xff] }
  0xe0   : > { %6179 = vmatpush1.bf16.msra.mxu0 %v6178_v14  ;;  %5925 = vmatprep.subr.bf16.mxu1 %v5924_v15  ;;  %v1670_v8 = vld [vmem:[#allocation8 + $0x260] sm:$0xff]  ;;  %v1672_v9 = vld [vmem:[#allocation8 + $0x270] sm:$0xff]  ;;  %v424_v10 = vrot.slane %v392_v6, 7  ;;  %v395_v15 = vld [vmem:[%s7259_s15 + $0x28] sm:$0xff]  ;;  %v6196_v16 = vpack.c.bf16 %v1929_v5, %v1927_v4 }
  0xe1   : > { %6181 = vmatprep.subr.bf16.mxu0 %v6180_v19  ;;  %460 = vst [vmem:[#allocation2 + $0x48] sm:$0xfe] %v425_v63  ;;  %462 = vst [vmem:[#allocation2 + $0x58] sm:$0x1] %v425_v63  ;;  %v1926_v13 = vld [vmem:[#allocation8 + $0xa60] sm:$0xff]  ;;  %v1928_v14 = vld [vmem:[#allocation8 + $0xa70] sm:$0xff]  ;;  %v5942_v24 = vpack.c.bf16 %v1672_v9, %v1670_v8 }
  0xe2   : > { %v1675_v17 = vld [vmem:[#allocation8 + $0x288] sm:$0xff]  ;;  %v1677_v18 = vld [vmem:[#allocation8 + $0x298] sm:$0xff]  ;;  %459 = vst [vmem:[#allocation2 + $0x40] sm:$0xfe] %v424_v10  ;;  %461 = vst [vmem:[#allocation2 + $0x50] sm:$0x1] %v424_v10  ;;  %v6198_v29 = vpack.c.bf16 %v1928_v14, %v1926_v13 }
  0xe3   : > { %5927 = vmatpush1.bf16.msra.mxu1 %v5926_v25  ;;  %v1931_v19 = vld [vmem:[#allocation8 + $0xa88] sm:$0xff]  ;;  %v427_v20 = vrot.slane %v395_v15, 7  ;;  %v1933_v21 = vld [vmem:[#allocation8 + $0xa98] sm:$0xff]  ;;  %v7332_v22 = vld [vmem:[#allocation8 + $0x280] sm:$0xff]  ;;  %v5944_v30 = vpack.c.bf16 %v1677_v18, %v1675_v17 }
  0xe4   : > { %6183 = vmatpush1.bf16.msra.mxu0 %v6182_v26  ;;  %5929 = vmatprep.subr.bf16.mxu1 %v5928_v27  ;;  %v394_v23 = vld [vmem:[%s7259_s15 + $0x20] sm:$0xff]  ;;  %v7335_v25 = vld [vmem:[#allocation8 + $0x290] sm:$0xff]  ;;  %v397_v28 = vld [vmem:[%s7259_s15 + $0x38] sm:$0xff]  ;;  %v6200_v35 = vpack.c.bf16 %v1933_v21, %v1931_v19 }
  0xe5   : > { %6185 = vmatprep.subr.bf16.mxu0 %v6184_v33  ;;  %v7337_v26 = vld [vmem:[#allocation8 + $0xa80] sm:$0xff]  ;;  %464 = vst [vmem:[#allocation2 + $0x68] sm:$0xfe] %v427_v20  ;;  %466 = vst [vmem:[#allocation2 + $0x78] sm:$0x1] %v427_v20  ;;  %v426_v27 = vrot.slane %v394_v23, 7  ;;  %v5946_v45 = vpack.c.bf16 %v7335_v25, %v7332_v22 }
  0xe6   : > { %2247 = vmatmul.mubr.f32.vlgmr.msra.gmra.mrb[0].mxu1 %v6989_v0  ;;  %v1673_v0 = vld [vmem:[#allocation8 + $0x278] sm:$0xff]  ;;  %v7340_v31 = vld [vmem:[#allocation8 + $0xa90] sm:$0xff]  ;;  %v7342_v32 = vld [vmem:[#allocation8 + $0x2a8] sm:$0xff]  ;;  %v429_v34 = vrot.slane %v397_v28, 7 }
  0xe7   : > { %5931 = vmatpush1.bf16.msra.mxu1 %v5930_v39  ;;  %2699 = vmatmul.mubr.f32.vlgmr.msra.gmra.mrb[0].mxu0 %v907_v40  ;;  %v5940_v12 = vpack.c.bf16 %v1673_v0, %v1671_v62  ;;  %v7344_v33 = vld [vmem:[#allocation8 + $0x2b8] sm:$0xff]  ;;  %v7346_v36 = vld [vmem:[#allocation8 + $0xaa8] sm:$0xff]  ;;  %463 = vst [vmem:[#allocation2 + $0x60] sm:$0xfe] %v426_v27  ;;  %465 = vst [vmem:[#allocation2 + $0x70] sm:$0x1] %v426_v27 }
  0xe8   : > { %6187 = vmatpush1.bf16.msra.mxu0 %v6186_v41  ;;  %5933 = vmatprep.subr.bf16.mxu1 %v5932_v42  ;;  %v7348_v37 = vld [vmem:[#allocation8 + $0xab8] sm:$0xff]  ;;  %v396_v38 = vld [vmem:[%s7259_s15 + $0x30] sm:$0xff]  ;;  %v7351_v39 = vld [vmem:[#allocation8 + $0x2a0] sm:$0xff]  ;;  %468 = vst [vmem:[#allocation2 + $0x88] sm:$0xfe] %v429_v34  ;;  %v5948_v53 = vpack.c.bf16 %v7344_v33, %v7342_v32 }
  0xe9   : > { %6189 = vmatprep.subr.bf16.mxu0 %v6188_v46  ;;  %2252 = vmatprep.mubr.f32.mxu1 %v490_v55  ;;  %v7353_v40 = vld [vmem:[#allocation8 + $0x2b0] sm:$0xff]  ;;  %v846_v41 = vld [vmem:[#allocation2 + $0x48] sm:$0xfe]  ;;  %v848_v42 = vld [vmem:[#allocation2 + $0x58] sm:$0x1]  ;;  %v428_v44 = vrot.slane %v396_v38, 7 }
  0xea   : > { %2253 = vmatmul.mubr.f32.gmra.mrb[2].mxu1 %v489_v3  ;;  %v492_v43 = vld [vmem:[#allocation2 + $0x48] sm:$0xff]  ;;  %470 = vst [vmem:[#allocation2 + $0x98] sm:$0x1] %v429_v34  ;;  %v7357_v46 = vld [vmem:[#allocation8 + $0xaa0] sm:$0xff]  ;;  %v7359_v47 = vld [vmem:[#allocation8 + $0xab0] sm:$0xff]  ;;  %v914_v50 = vrot.slane %v846_v41, 1  ;;  %v5950_v10 = vpack.c.bf16 %v7353_v40, %v7351_v39 }
  0xeb   : > { %5935 = vmatpush1.bf16.msra.mxu1 %v5934_v52  ;;  %v7361_v48 = vld [vmem:[#allocation8 + $0x2c8] sm:$0xff]  ;;  %v7363_v49 = vld [vmem:[#allocation8 + $0x2d8] sm:$0xff]  ;;  %v915_v51 = vrot.slane %v848_v42, 1  ;;  %2258 = vmatprep.mubr.f32.mxu1 %v492_v43  ;;  %v6202_v52 = vpack.c.bf16 %v7340_v31, %v7337_v26  ;;  %v845_v54 = vld [vmem:[#allocation2 + $0x40] sm:$0xfe]  ;;  %v6206_v17 = vpack.c.bf16 %v7359_v47, %v7357_v46 }
  0xec   : > { %6191 = vmatpush1.bf16.msra.mxu0 %v6190_v56  ;;  %5937 = vmatprep.subr.bf16.mxu1 %v5936_v57  ;;  %v847_v55 = vld [vmem:[#allocation2 + $0x50] sm:$0x1]  ;;  %v491_v56 = vld [vmem:[#allocation2 + $0x40] sm:$0xff]  ;;  %467 = vst [vmem:[#allocation2 + $0x80] sm:$0xfe] %v428_v44  ;;  %v6204_v57 = vpack.c.bf16 %v7348_v37, %v7346_v36  ;;  %v7371_v58 = vld [vmem:[#allocation8 + $0xac8] sm:$0xff]  ;;  %v5952_v18 = vpack.c.bf16 %v7363_v49, %v7361_v48 }
  0xed   : > { %6193 = vmatprep.subr.bf16.mxu0 %v6192_v61  ;;  %469 = vst [vmem:[#allocation2 + $0x90] sm:$0x1] %v428_v44  ;;  %v7373_v59 = vld [vmem:[#allocation8 + $0xad8] sm:$0xff]  ;;  %v916_v60 = vsel %vm583_vm0, %v914_v50, %v915_v51  ;;  %v911_v61 = vrot.slane %v845_v54, 1  ;;  %v912_v62 = vrot.slane %v847_v55, 1  ;;  %v399_v0 = vld [vmem:[%s7259_s15 + $0x48] sm:$0xff] }
  0xee   : > { %2259 = vmatmul.mubr.f32.gmra.mrb[4].mxu1 %v491_v56  ;;  %v7377_v63 = vld [vmem:[#allocation8 + $0x2c0] sm:$0xff]  ;;  %v7379_v3 = vld [vmem:[#allocation8 + $0x2d0] sm:$0xff]  ;;  %2704 = vmatprep.mubr.f32.mxu0 %v916_v60  ;;  %v850_v6 = vld [vmem:[#allocation2 + $0x68] sm:$0xfe]  ;;  %v431_v9 = vrot.slane %v399_v0, 7  ;;  %v6208_v25 = vpack.c.bf16 %v7373_v59, %v7371_v58 }
  0xef   : > { %5939 = vmatpush1.bf16.msra.mxu1 %v5938_v7  ;;  %v7381_v4 = vld [vmem:[#allocation8 + $0xac0] sm:$0xff]  ;;  %v7383_v5 = vld [vmem:[#allocation8 + $0xad0] sm:$0xff]  ;;  %v852_v7 = vld [vmem:[#allocation2 + $0x78] sm:$0x1]  ;;  %v913_v13 = vsel %vm583_vm0, %v911_v61, %v912_v62  ;;  %v920_v14 = vrot.slane %v850_v6, 1  ;;  %v5954_v36 = vpack.c.bf16 %v7379_v3, %v7377_v63 }
  0xf0   : > { %6195 = vmatpush1.bf16.msra.mxu0 %v6194_v11  ;;  %5941 = vmatprep.subr.bf16.mxu1 %v5940_v12  ;;  %v494_v8 = vld [vmem:[#allocation2 + $0x68] sm:$0xff]  ;;  %v7389_v12 = vld [vmem:[#allocation8 + $0x2f8] sm:$0xff]  ;;  %v921_v15 = vrot.slane %v852_v7, 1  ;;  %v849_v21 = vld [vmem:[#allocation2 + $0x60] sm:$0xfe]  ;;  %v6210_v37 = vpack.c.bf16 %v7383_v5, %v7381_v4 }
  0xf1   : > { %6197 = vmatprep.subr.bf16.mxu0 %v6196_v16  ;;  %v7387_v11 = vld [vmem:[#allocation8 + $0x2e8] sm:$0xff]  ;;  %2264 = vmatprep.mubr.f32.mxu1 %v494_v8  ;;  %v398_v16 = vld [vmem:[%s7259_s15 + $0x40] sm:$0xff]  ;;  %v7399_v20 = vld [vmem:[#allocation8 + $0xaf8] sm:$0xff]  ;;  %472 = vst [vmem:[#allocation2 + $0xa8] sm:$0xfe] %v431_v9  ;;  %v917_v27 = vrot.slane %v849_v21, 1 }
  0xf2   : > { %v7397_v19 = vld [vmem:[#allocation8 + $0xae8] sm:$0xff]  ;;  %v851_v22 = vld [vmem:[#allocation2 + $0x70] sm:$0x1]  ;;  %v493_v23 = vld [vmem:[#allocation2 + $0x60] sm:$0xff]  ;;  %474 = vst [vmem:[#allocation2 + $0xb8] sm:$0x1] %v431_v9  ;;  %2705 = vmatmul.mubr.f32.gmra.mrb[2].mxu0 %v913_v13  ;;  %v922_v26 = vsel %vm583_vm0, %v920_v14, %v921_v15  ;;  %v5956_v43 = vpack.c.bf16 %v7389_v12, %v7387_v11 }
  0xf3   : > { %5943 = vmatpush1.bf16.msra.mxu1 %v5942_v24  ;;  %v430_v24 = vrot.slane %v398_v16, 7  ;;  %v918_v28 = vrot.slane %v851_v22, 1  ;;  %v7404_v31 = vld [vmem:[#allocation8 + $0x2e0] sm:$0xff]  ;;  %v7406_v32 = vld [vmem:[#allocation8 + $0x2f0] sm:$0xff]  ;;  %2710 = vmatprep.mubr.f32.mxu0 %v922_v26  ;;  %v401_v49 = vld [vmem:[%s7259_s15 + $0x58] sm:$0xff]  ;;  %v6212_v50 = vpack.c.bf16 %v7399_v20, %v7397_v19 }
  0xf4   : > { %6199 = vmatpush1.bf16.msra.mxu0 %v6198_v29  ;;  %5945 = vmatprep.subr.bf16.mxu1 %v5944_v30  ;;  %v854_v29 = vld [vmem:[#allocation2 + $0x88] sm:$0xfe]  ;;  %v856_v30 = vld [vmem:[#allocation2 + $0x98] sm:$0x1]  ;;  %v7412_v38 = vld [vmem:[#allocation8 + $0xae0] sm:$0xff]  ;;  %v433_v54 = vrot.slane %v401_v49, 7  ;;  %v5958_v59 = vpack.c.bf16 %v7406_v32, %v7404_v31 }
  0xf5   : > { %6201 = vmatprep.subr.bf16.mxu0 %v6200_v35  ;;  %v926_v33 = vrot.slane %v854_v29, 1  ;;  %v927_v34 = vrot.slane %v856_v30, 1  ;;  %2265 = vmatmul.mubr.f32.gmra.mrb[6].mxu1 %v493_v23  ;;  %v496_v35 = vld [vmem:[#allocation2 + $0x88] sm:$0xff]  ;;  %471 = vst [vmem:[#allocation2 + $0xa0] sm:$0xfe] %v430_v24  ;;  %v919_v39 = vsel %vm583_vm0, %v917_v27, %v918_v28  ;;  %v495_v42 = vld [vmem:[#allocation2 + $0x80] sm:$0xff] }
  0xf6   : > { %473 = vst [vmem:[#allocation2 + $0xb0] sm:$0x1] %v430_v24  ;;  %v853_v40 = vld [vmem:[#allocation2 + $0x80] sm:$0xfe]  ;;  %v855_v41 = vld [vmem:[#allocation2 + $0x90] sm:$0x1]  ;;  %2270 = vmatprep.mubr.f32.mxu1 %v496_v35  ;;  %2711 = vmatmul.mubr.f32.gmra.mrb[4].mxu0 %v919_v39 }
  0xf7   : > { %5947 = vmatpush1.bf16.msra.mxu1 %v5946_v45  ;;  %v1944_v44 = vld [vmem:[#allocation8 + $0xaf0] sm:$0xff]  ;;  %v1691_v45 = vld [vmem:[#allocation8 + $0x308] sm:$0xff]  ;;  %v928_v46 = vsel %vm583_vm0, %v926_v33, %v927_v34  ;;  %v923_v47 = vrot.slane %v853_v40, 1  ;;  %v924_v48 = vrot.slane %v855_v41, 1  ;;  %v1693_v51 = vld [vmem:[#allocation8 + $0x318] sm:$0xff] }
  0xf8   : > { %6203 = vmatpush1.bf16.msra.mxu0 %v6202_v52  ;;  %5949 = vmatprep.subr.bf16.mxu1 %v5948_v53  ;;  %v1947_v52 = vld [vmem:[#allocation8 + $0xb08] sm:$0xff]  ;;  %v1949_v53 = vld [vmem:[#allocation8 + $0xb18] sm:$0xff]  ;;  %v7421_v55 = vld [vmem:[#allocation8 + $0x300] sm:$0xff]  ;;  %476 = vst [vmem:[#allocation2 + $0xc8] sm:$0xfe] %v433_v54  ;;  %v6214_v4 = vpack.c.bf16 %v1944_v44, %v7412_v38  ;;  %v5960_v5 = vpack.c.bf16 %v1693_v51, %v1691_v45 }
  0xf9   : > { %6205 = vmatprep.subr.bf16.mxu0 %v6204_v57  ;;  %v7423_v56 = vld [vmem:[#allocation8 + $0x310] sm:$0xff]  ;;  %2716 = vmatprep.mubr.f32.mxu0 %v928_v46  ;;  %v925_v57 = vsel %vm583_vm0, %v923_v47, %v924_v48  ;;  %v7429_v60 = vld [vmem:[#allocation8 + $0xb00] sm:$0xff]  ;;  %v858_v62 = vld [vmem:[#allocation2 + $0xa8] sm:$0xfe]  ;;  %478 = vst [vmem:[#allocation2 + $0xd8] sm:$0x1] %v433_v54  ;;  %v6216_v11 = vpack.c.bf16 %v1949_v53, %v1947_v52 }
  0xfa   : > { %2271 = vmatmul.mubr.f32.gmra.mrb[8].mxu1 %v495_v42  ;;  %v400_v58 = vld [vmem:[%s7259_s15 + $0x50] sm:$0xff]  ;;  %v860_v0 = vld [vmem:[#allocation2 + $0xb8] sm:$0x1]  ;;  %v498_v63 = vld [vmem:[#allocation2 + $0xa8] sm:$0xff]  ;;  %v932_v9 = vrot.slane %v858_v62, 1  ;;  %2717 = vmatmul.mubr.f32.gmra.mrb[6].mxu0 %v925_v57  ;;  %v5962_v21 = vpack.c.bf16 %v7423_v56, %v7421_v55 }
  0xfb   : > { %5951 = vmatpush1.bf16.msra.mxu1 %v5950_v10  ;;  %v7431_v61 = vld [vmem:[#allocation8 + $0xb10] sm:$0xff]  ;;  %v432_v3 = vrot.slane %v400_v58, 7  ;;  %v7434_v6 = vld [vmem:[#allocation8 + $0x328] sm:$0xff]  ;;  %v1697_v7 = vld [vmem:[#allocation8 + $0x338] sm:$0xff]  ;;  %v933_v10 = vrot.slane %v860_v0, 1  ;;  %2276 = vmatprep.mubr.f32.mxu1 %v498_v63 }
  0xfc   : > { %6207 = vmatpush1.bf16.msra.mxu0 %v6206_v17  ;;  %5953 = vmatprep.subr.bf16.mxu1 %v5952_v18  ;;  %v7436_v8 = vld [vmem:[#allocation8 + $0xb28] sm:$0xff]  ;;  %v7438_v12 = vld [vmem:[#allocation8 + $0xb38] sm:$0xff]  ;;  %v857_v13 = vld [vmem:[#allocation2 + $0xa0] sm:$0xfe]  ;;  %v6218_v26 = vpack.c.bf16 %v7431_v61, %v7429_v60  ;;  %v5964_v27 = vpack.c.bf16 %v1697_v7, %v7434_v6 }
  0xfd   : > { %6209 = vmatprep.subr.bf16.mxu0 %v6208_v25  ;;  %v859_v14 = vld [vmem:[#allocation2 + $0xb0] sm:$0x1]  ;;  %475 = vst [vmem:[#allocation2 + $0xc0] sm:$0xfe] %v432_v3  ;;  %477 = vst [vmem:[#allocation2 + $0xd0] sm:$0x1] %v432_v3  ;;  %v934_v17 = vsel %vm583_vm0, %v932_v9, %v933_v10  ;;  %v6220_v33 = vpack.c.bf16 %v7438_v12, %v7436_v8 }
  0xfe   : > { %v7440_v15 = vld [vmem:[#allocation8 + $0x320] sm:$0xff]  ;;  %v7442_v16 = vld [vmem:[#allocation8 + $0x330] sm:$0xff]  ;;  %v929_v18 = vrot.slane %v857_v13, 1  ;;  %v930_v19 = vrot.slane %v859_v14, 1  ;;  %v403_v20 = vld [vmem:[%s7259_s15 + $0x68] sm:$0xff]  ;;  %2722 = vmatprep.mubr.f32.mxu0 %v934_v17 }
  0xff   : > { %5955 = vmatpush1.bf16.msra.mxu1 %v5954_v36  ;;  %v7448_v22 = vld [vmem:[#allocation8 + $0xb20] sm:$0xff]  ;;  %v435_v24 = vrot.slane %v403_v20, 7  ;;  %v1952_v28 = vld [vmem:[#allocation8 + $0xb30] sm:$0xff]  ;;  %v1699_v29 = vld [vmem:[#allocation8 + $0x348] sm:$0xff] }
 0x100   : > { %6211 = vmatpush1.bf16.msra.mxu0 %v6210_v37  ;;  %5957 = vmatprep.subr.bf16.mxu1 %v5956_v43  ;;  %v497_v23 = vld [vmem:[#allocation2 + $0xa0] sm:$0xff]  ;;  %v1701_v30 = vld [vmem:[#allocation8 + $0x358] sm:$0xff]  ;;  %v931_v31 = vsel %vm583_vm0, %v929_v18, %v930_v19  ;;  %v7457_v34 = vld [vmem:[#allocation8 + $0xb48] sm:$0xff]  ;;  %v5966_v43 = vpack.c.bf16 %v7442_v16, %v7440_v15 }
 0x101   : > { %6213 = vmatprep.subr.bf16.mxu0 %v6212_v50  ;;  %v402_v25 = vld [vmem:[%s7259_s15 + $0x60] sm:$0xff]  ;;  %v7459_v35 = vld [vmem:[#allocation8 + $0xb58] sm:$0xff]  ;;  %2723 = vmatmul.mubr.f32.gmra.mrb[8].mxu0 %v931_v31  ;;  %480 = vst [vmem:[#allocation2 + $0xe8] sm:$0xfe] %v435_v24  ;;  %482 = vst [vmem:[#allocation2 + $0xf8] sm:$0x1] %v435_v24  ;;  %v6222_v50 = vpack.c.bf16 %v1952_v28, %v7448_v22  ;;  %v5968_v51 = vpack.c.bf16 %v1701_v30, %v1699_v29 }
 0x102   : > { %v434_v32 = vrot.slane %v402_v25, 7  ;;  %v405_v36 = vld [vmem:[%s7259_s15 + $0x78] sm:$0xff]  ;;  %v7462_v37 = vld [vmem:[#allocation8 + $0x340] sm:$0xff]  ;;  %v7464_v38 = vld [vmem:[#allocation8 + $0x350] sm:$0xff]  ;;  %2277 = vmatmul.mubr.f32.gmra.mrb[10].mxu1 %v497_v23  ;;  %v6224_v55 = vpack.c.bf16 %v7459_v35, %v7457_v34 }
 0x103   : > { %5959 = vmatpush1.bf16.msra.mxu1 %v5958_v59  ;;  %v862_v39 = vld [vmem:[#allocation2 + $0xc8] sm:$0xfe]  ;;  %v864_v40 = vld [vmem:[#allocation2 + $0xd8] sm:$0x1]  ;;  %v437_v42 = vrot.slane %v405_v36, 7  ;;  %v7468_v44 = vld [vmem:[#allocation8 + $0xb40] sm:$0xff]  ;;  %v5970_v6 = vpack.c.bf16 %v7464_v38, %v7462_v37 }
 0x104   : > { %6215 = vmatpush1.bf16.msra.mxu0 %v6214_v4  ;;  %5961 = vmatprep.subr.bf16.mxu1 %v5960_v5  ;;  %v500_v41 = vld [vmem:[#allocation2 + $0xc8] sm:$0xff]  ;;  %479 = vst [vmem:[#allocation2 + $0xe0] sm:$0xfe] %v434_v32  ;;  %481 = vst [vmem:[#allocation2 + $0xf0] sm:$0x1] %v434_v32  ;;  %v7470_v45 = vld [vmem:[#allocation8 + $0xb50] sm:$0xff] }
 0x105   : > { %6217 = vmatprep.subr.bf16.mxu0 %v6216_v11  ;;  %v7472_v46 = vld [vmem:[#allocation8 + $0x368] sm:$0xff]  ;;  %v7474_v47 = vld [vmem:[#allocation8 + $0x378] sm:$0xff]  ;;  %v938_v48 = vrot.slane %v862_v39, 1  ;;  %v939_v49 = vrot.slane %v864_v40, 1  ;;  %2282 = vmatprep.mubr.f32.mxu1 %v500_v41  ;;  %v861_v52 = vld [vmem:[#allocation2 + $0xc0] sm:$0xfe]  ;;  %v6226_v11 = vpack.c.bf16 %v7470_v45, %v7468_v44 }
 0x106   : > { %v863_v53 = vld [vmem:[#allocation2 + $0xd0] sm:$0x1]  ;;  %v499_v54 = vld [vmem:[#allocation2 + $0xc0] sm:$0xff]  ;;  %484 = vst [vmem:[#allocation2 + $0x108] sm:$0xfe] %v437_v42  ;;  %v1959_v56 = vld [vmem:[#allocation8 + $0xb68] sm:$0xff]  ;;  %v5972_v12 = vpack.c.bf16 %v7474_v47, %v7472_v46 }
 0x107   : > { %5963 = vmatpush1.bf16.msra.mxu1 %v5962_v21  ;;  %486 = vst [vmem:[#allocation2 + $0x118] sm:$0x1] %v437_v42  ;;  %v1961_v57 = vld [vmem:[#allocation8 + $0xb78] sm:$0xff]  ;;  %v940_v58 = vsel %vm583_vm0, %v938_v48, %v939_v49  ;;  %v935_v59 = vrot.slane %v861_v52, 1  ;;  %v936_v60 = vrot.slane %v863_v53, 1  ;;  %v404_v61 = vld [vmem:[%s7259_s15 + $0x70] sm:$0xff] }
 0x108   : > { %6219 = vmatpush1.bf16.msra.mxu0 %v6218_v26  ;;  %5965 = vmatprep.subr.bf16.mxu1 %v5964_v27  ;;  %v7481_v62 = vld [vmem:[#allocation8 + $0x360] sm:$0xff]  ;;  %v7483_v0 = vld [vmem:[#allocation8 + $0x370] sm:$0xff]  ;;  %v436_v4 = vrot.slane %v404_v61, 7  ;;  %v520_v5 = vld [vmem:[#allocation2 + $0x8] sm:$0xfe]  ;;  %v6228_v19 = vpack.c.bf16 %v1961_v57, %v1959_v56 }
 0x109   : > { %6221 = vmatprep.subr.bf16.mxu0 %v6220_v33  ;;  %v7485_v63 = vld [vmem:[#allocation8 + $0xb60] sm:$0xff]  ;;  %v7487_v3 = vld [vmem:[#allocation8 + $0xb70] sm:$0xff]  ;;  %2728 = vmatprep.mubr.f32.mxu0 %v940_v58  ;;  %v7491_v7 = vld [vmem:[#allocation8 + $0x388] sm:$0xff]  ;;  %v937_v9 = vsel %vm583_vm0, %v935_v59, %v936_v60  ;;  %v587_v18 = vrot.slane %v520_v5, 1  ;;  %v5974_v29 = vpack.c.bf16 %v7483_v0, %v7481_v62 }
 0x10a   : > { %2283 = vmatmul.mubr.f32.gmra.mrb[12].mxu1 %v499_v54  ;;  %v7493_v8 = vld [vmem:[#allocation8 + $0x398] sm:$0xff]  ;;  %v7500_v13 = vld [vmem:[#allocation8 + $0xb88] sm:$0xff]  ;;  %483 = vst [vmem:[#allocation2 + $0x100] sm:$0xfe] %v436_v4  ;;  %485 = vst [vmem:[#allocation2 + $0x110] sm:$0x1] %v436_v4  ;;  %2729 = vmatmul.mubr.f32.gmra.mrb[10].mxu0 %v937_v9  ;;  %v6230_v30 = vpack.c.bf16 %v7487_v3, %v7485_v63 }
 0x10b   : > { %5967 = vmatpush1.bf16.msra.mxu1 %v5966_v43  ;;  %v522_v10 = vld [vmem:[#allocation2 + $0x18] sm:$0x1]  ;;  %v866_v15 = vld [vmem:[#allocation2 + $0xe8] sm:$0xfe]  ;;  %v865_v22 = vld [vmem:[#allocation2 + $0xe0] sm:$0xfe]  ;;  %v5976_v35 = vpack.c.bf16 %v7493_v8, %v7491_v7 }
 0x10c   : > { %6223 = vmatpush1.bf16.msra.mxu0 %v6222_v50  ;;  %5969 = vmatprep.subr.bf16.mxu1 %v5968_v51  ;;  %v7502_v14 = vld [vmem:[#allocation8 + $0xb98] sm:$0xff]  ;;  %v502_v17 = vld [vmem:[#allocation2 + $0xe8] sm:$0xff]  ;;  %v944_v20 = vrot.slane %v866_v15, 1  ;;  %v867_v23 = vld [vmem:[#allocation2 + $0xf0] sm:$0x1]  ;;  %v941_v24 = vrot.slane %v865_v22, 1 }
 0x10d   : > { %v868_v16 = vld [vmem:[#allocation2 + $0xf8] sm:$0x1]  ;;  %6225 = vmatprep.subr.bf16.mxu0 %v6224_v55  ;;  %v942_v25 = vrot.slane %v867_v23, 1  ;;  %2288 = vmatprep.mubr.f32.mxu1 %v502_v17  ;;  %v501_v26 = vld [vmem:[#allocation2 + $0xe0] sm:$0xff]  ;;  %v588_v27 = vrot.slane %v522_v10, 1  ;;  %v1708_v37 = vld [vmem:[#allocation8 + $0x390] sm:$0xff]  ;;  %v6232_v42 = vpack.c.bf16 %v7502_v14, %v7500_v13 }
 0x10e   : > { %v945_v21 = vrot.slane %v868_v16, 1  ;;  %v986_v28 = vld [vmem:[#allocation2 + $0x28] sm:$0xfc]  ;;  %v872_v33 = vld [vmem:[#allocation2 + $0x118] sm:$0x1]  ;;  %v1706_v36 = vld [vmem:[#allocation8 + $0x380] sm:$0xff]  ;;  %2289 = vmatmul.mubr.f32.gmra.mrb[14].mxu1 %v501_v26 }
 0x10f   : > { %5971 = vmatpush1.bf16.msra.mxu1 %v5970_v6  ;;  %v870_v32 = vld [vmem:[#allocation2 + $0x108] sm:$0xfe]  ;;  %v988_v34 = vld [vmem:[#allocation2 + $0x38] sm:$0x3]  ;;  %v1962_v38 = vld [vmem:[#allocation8 + $0xb80] sm:$0xff]  ;;  %v943_v39 = vsel %vm583_vm0, %v941_v24, %v942_v25  ;;  %v951_v41 = vrot.slane %v872_v33, 1  ;;  %v589_v49 = vsel %vm583_vm0, %v587_v18, %v588_v27  ;;  %v5978_v52 = vpack.c.bf16 %v1708_v37, %v1706_v36 }
 0x110   : > { %v946_v31 = vsel %vm583_vm0, %v944_v20, %v945_v21  ;;  %6227 = vmatpush1.bf16.msra.mxu0 %v6226_v11  ;;  %5973 = vmatprep.subr.bf16.mxu1 %v5972_v12  ;;  %v950_v40 = vrot.slane %v870_v32, 1  ;;  %v1964_v43 = vld [vmem:[#allocation8 + $0xb90] sm:$0xff]  ;;  %v1711_v44 = vld [vmem:[#allocation8 + $0x3a8] sm:$0xff]  ;;  %v1713_v45 = vld [vmem:[#allocation8 + $0x3b8] sm:$0xff]  ;;  %v1052_v50 = vrot.slane %v986_v28, 2  ;;  %v1053_v51 = vrot.slane %v988_v34, 2 }
 0x111   : > { %6229 = vmatprep.subr.bf16.mxu0 %v6228_v19  ;;  %2734 = vmatprep.mubr.f32.mxu0 %v946_v31  ;;  %v1967_v46 = vld [vmem:[#allocation8 + $0xba8] sm:$0xff]  ;;  %v1969_v47 = vld [vmem:[#allocation8 + $0xbb8] sm:$0xff]  ;;  %v869_v53 = vld [vmem:[#allocation2 + $0x100] sm:$0xfe]  ;;  %v6234_v55 = vpack.c.bf16 %v1964_v43, %v1962_v38  ;;  %v5980_v56 = vpack.c.bf16 %v1713_v45, %v1711_v44 }
 0x112   : > { %2735 = vmatmul.mubr.f32.gmra.mrb[12].mxu0 %v943_v39  ;;  %v952_v48 = vsel %vm583_vm0, %v950_v40, %v951_v41  ;;  %v871_v54 = vld [vmem:[#allocation2 + $0x110] sm:$0x1]  ;;  %v1710_v57 = vld [vmem:[#allocation8 + $0x3a0] sm:$0xff]  ;;  %v947_v60 = vrot.slane %v869_v53, 1  ;;  %v6236_v62 = vpack.c.bf16 %v1969_v47, %v1967_v46  ;;  %v1715_v63 = vld [vmem:[#allocation8 + $0x3c8] sm:$0xff]  ;;  %2359 = vmatprep.mubr.f32.mxu1 %v589_v49  ;;  %v1054_v7 = vsel %vm728_vm1, %v1052_v50, %v1053_v51 }
 0x113   : > { %5975 = vmatpush1.bf16.msra.mxu1 %v5974_v29  ;;  %2740 = vmatprep.mubr.f32.mxu0 %v952_v48  ;;  %v1712_v58 = vld [vmem:[#allocation8 + $0x3b0] sm:$0xff]  ;;  %v1966_v59 = vld [vmem:[#allocation8 + $0xba0] sm:$0xff]  ;;  %v948_v61 = vrot.slane %v871_v54, 1  ;;  %v1717_v3 = vld [vmem:[#allocation8 + $0x3d8] sm:$0xff] }
 0x114   : > { %6231 = vmatpush1.bf16.msra.mxu0 %v6230_v30  ;;  %5977 = vmatprep.subr.bf16.mxu1 %v5976_v35  ;;  %v1968_v0 = vld [vmem:[#allocation8 + $0xbb0] sm:$0xff]  ;;  %v1971_v4 = vld [vmem:[#allocation8 + $0xbc8] sm:$0xff]  ;;  %v1973_v5 = vld [vmem:[#allocation8 + $0xbd8] sm:$0xff]  ;;  %v5982_v8 = vpack.c.bf16 %v1712_v58, %v1710_v57  ;;  %v5984_v10 = vpack.c.bf16 %v1717_v3, %v1715_v63 }
 0x115   : > { %6233 = vmatprep.subr.bf16.mxu0 %v6232_v42  ;;  %v949_v6 = vsel %vm583_vm0, %v947_v60, %v948_v61  ;;  %v6238_v9 = vpack.c.bf16 %v1968_v0, %v1966_v59  ;;  %v1714_v11 = vld [vmem:[#allocation8 + $0x3c0] sm:$0xff]  ;;  %v1716_v12 = vld [vmem:[#allocation8 + $0x3d0] sm:$0xff]  ;;  %v6240_v14 = vpack.c.bf16 %v1973_v5, %v1971_v4  ;;  %v1719_v16 = vld [vmem:[#allocation8 + $0x3e8] sm:$0xff] }
 0x116   : > { %2741 = vmatmul.mubr.f32.gmra.mrb[14].mxu0 %v949_v6  ;;  %v1970_v13 = vld [vmem:[#allocation8 + $0xbc0] sm:$0xff]  ;;  %v1972_v15 = vld [vmem:[#allocation8 + $0xbd0] sm:$0xff]  ;;  %v1721_v17 = vld [vmem:[#allocation8 + $0x3f8] sm:$0xff]  ;;  %v5986_v21 = vpack.c.bf16 %v1716_v12, %v1714_v11 }
 0x117   : > { %5979 = vmatpush1.bf16.msra.mxu1 %v5978_v52  ;;  %2811 = vmatprep.mubr.f32.mxu0 %v1054_v7  ;;  %v1975_v18 = vld [vmem:[#allocation8 + $0xbe8] sm:$0xff]  ;;  %v1977_v19 = vld [vmem:[#allocation8 + $0xbf8] sm:$0xff]  ;;  %v1718_v20 = vld [vmem:[#allocation8 + $0x3e0] sm:$0xff]  ;;  %v6242_v25 = vpack.c.bf16 %v1972_v15, %v1970_v13  ;;  %v5988_v26 = vpack.c.bf16 %v1721_v17, %v1719_v16 }
 0x118   : > { %6235 = vmatpush1.bf16.msra.mxu0 %v6234_v55  ;;  %5981 = vmatprep.subr.bf16.mxu1 %v5980_v56  ;;  %v1720_v22 = vld [vmem:[#allocation8 + $0x3f0] sm:$0xff]  ;;  %v1974_v23 = vld [vmem:[#allocation8 + $0xbe0] sm:$0xff]  ;;  %v1723_v27 = vld [vmem:[#allocation8 + $0x408] sm:$0xff]  ;;  %v6244_v30 = vpack.c.bf16 %v1977_v19, %v1975_v18 }
 0x119   : > { %6237 = vmatprep.subr.bf16.mxu0 %v6236_v62  ;;  %v1976_v24 = vld [vmem:[#allocation8 + $0xbf0] sm:$0xff]  ;;  %v519_v28 = vld [vmem:[#allocation2] sm:$0xfe]  ;;  %v1725_v31 = vld [vmem:[#allocation8 + $0x418] sm:$0xff]  ;;  %v5990_v36 = vpack.c.bf16 %v1720_v22, %v1718_v20 }
 0x11a   : > { %v521_v29 = vld [vmem:[#allocation2 + $0x10] sm:$0x1]  ;;  %v985_v32 = vld [vmem:[#allocation2 + $0x20] sm:$0xfc]  ;;  %v1979_v34 = vld [vmem:[#allocation8 + $0xc08] sm:$0xff]  ;;  %v584_v37 = vrot.slane %v519_v28, 1  ;;  %v6246_v39 = vpack.c.bf16 %v1976_v24, %v1974_v23  ;;  %v5992_v40 = vpack.c.bf16 %v1725_v31, %v1723_v27 }
 0x11b   : > { %5983 = vmatpush1.bf16.msra.mxu1 %v5982_v8  ;;  %v987_v33 = vld [vmem:[#allocation2 + $0x30] sm:$0x3]  ;;  %v1981_v35 = vld [vmem:[#allocation8 + $0xc18] sm:$0xff]  ;;  %v585_v38 = vrot.slane %v521_v29, 1  ;;  %v1722_v41 = vld [vmem:[#allocation8 + $0x400] sm:$0xff]  ;;  %v1049_v43 = vrot.slane %v985_v32, 2 }
 0x11c   : > { %6239 = vmatpush1.bf16.msra.mxu0 %v6238_v9  ;;  %5985 = vmatprep.subr.bf16.mxu1 %v5984_v10  ;;  %v1724_v42 = vld [vmem:[#allocation8 + $0x410] sm:$0xff]  ;;  %v1050_v44 = vrot.slane %v987_v33, 2  ;;  %v1978_v45 = vld [vmem:[#allocation8 + $0xc00] sm:$0xff]  ;;  %v6248_v46 = vpack.c.bf16 %v1981_v35, %v1979_v34  ;;  %v1727_v48 = vld [vmem:[#allocation8 + $0x428] sm:$0xff] }
 0x11d   : > { %6241 = vmatprep.subr.bf16.mxu0 %v6240_v14  ;;  %v1980_v47 = vld [vmem:[#allocation8 + $0xc10] sm:$0xff]  ;;  %v1729_v49 = vld [vmem:[#allocation8 + $0x438] sm:$0xff]  ;;  %v1983_v50 = vld [vmem:[#allocation8 + $0xc28] sm:$0xff]  ;;  %v586_v52 = vsel %vm583_vm0, %v584_v37, %v585_v38  ;;  %v5994_v53 = vpack.c.bf16 %v1724_v42, %v1722_v41 }
 0x11e   : > { %v1985_v51 = vld [vmem:[#allocation8 + $0xc38] sm:$0xff]  ;;  %v1051_v54 = vsel %vm728_vm1, %v1049_v43, %v1050_v44  ;;  %v6250_v55 = vpack.c.bf16 %v1980_v47, %v1978_v45  ;;  %v5996_v56 = vpack.c.bf16 %v1729_v49, %v1727_v48  ;;  %v1726_v57 = vld [vmem:[#allocation8 + $0x420] sm:$0xff]  ;;  %v1728_v58 = vld [vmem:[#allocation8 + $0x430] sm:$0xff] }
 0x11f   : > { %5987 = vmatpush1.bf16.msra.mxu1 %v5986_v21  ;;  %v1982_v59 = vld [vmem:[#allocation8 + $0xc20] sm:$0xff]  ;;  %v6252_v60 = vpack.c.bf16 %v1985_v51, %v1983_v50  ;;  %v1984_v61 = vld [vmem:[#allocation8 + $0xc30] sm:$0xff]  ;;  %v1731_v62 = vld [vmem:[#allocation8 + $0x448] sm:$0xff]  ;;  %v5998_v5 = vpack.c.bf16 %v1728_v58, %v1726_v57 }
 0x120   : > { %6243 = vmatpush1.bf16.msra.mxu0 %v6242_v25  ;;  %5989 = vmatprep.subr.bf16.mxu1 %v5988_v26  ;;  %v1733_v0 = vld [vmem:[#allocation8 + $0x458] sm:$0xff]  ;;  %v1987_v63 = vld [vmem:[#allocation8 + $0xc48] sm:$0xff]  ;;  %v1730_v4 = vld [vmem:[#allocation8 + $0x440] sm:$0xff]  ;;  %v6254_v9 = vpack.c.bf16 %v1984_v61, %v1982_v59 }
 0x121   : > { %6245 = vmatprep.subr.bf16.mxu0 %v6244_v30  ;;  %v1989_v3 = vld [vmem:[#allocation8 + $0xc58] sm:$0xff]  ;;  %v1732_v6 = vld [vmem:[#allocation8 + $0x450] sm:$0xff]  ;;  %v1986_v7 = vld [vmem:[#allocation8 + $0xc40] sm:$0xff]  ;;  %v6000_v10 = vpack.c.bf16 %v1733_v0, %v1731_v62 }
 0x122   : > { %v1988_v8 = vld [vmem:[#allocation8 + $0xc50] sm:$0xff]  ;;  %v1735_v11 = vld [vmem:[#allocation8 + $0x468] sm:$0xff]  ;;  %v1737_v12 = vld [vmem:[#allocation8 + $0x478] sm:$0xff]  ;;  %v6256_v14 = vpack.c.bf16 %v1989_v3, %v1987_v63  ;;  %v6002_v24 = vpack.c.bf16 %v1732_v6, %v1730_v4 }
 0x123   : > { %5991 = vmatpush1.bf16.msra.mxu1 %v5990_v36  ;;  %v524_v13 = vld [vmem:[#allocation2 + $0x28] sm:$0xfe]  ;;  %v1993_v16 = vld [vmem:[#allocation8 + $0xc78] sm:$0xff]  ;;  %v7520_v19 = vld [vmem:[#allocation8 + $0x460] sm:$0xff]  ;;  %v6258_v31 = vpack.c.bf16 %v1988_v8, %v1986_v7  ;;  %v6004_v32 = vpack.c.bf16 %v1737_v12, %v1735_v11 }
 0x124   : > { %6247 = vmatpush1.bf16.msra.mxu0 %v6246_v39  ;;  %5993 = vmatprep.subr.bf16.mxu1 %v5992_v40  ;;  %v1991_v15 = vld [vmem:[#allocation8 + $0xc68] sm:$0xff]  ;;  %v526_v17 = vld [vmem:[#allocation2 + $0x38] sm:$0x1]  ;;  %v593_v18 = vrot.slane %v524_v13, 1  ;;  %v7522_v20 = vld [vmem:[#allocation8 + $0x470] sm:$0xff] }
 0x125   : > { %6249 = vmatprep.subr.bf16.mxu0 %v6248_v46  ;;  %v594_v21 = vrot.slane %v526_v17, 1  ;;  %v990_v22 = vld [vmem:[#allocation2 + $0x48] sm:$0xfc]  ;;  %v992_v23 = vld [vmem:[#allocation2 + $0x58] sm:$0x3]  ;;  %v7524_v25 = vld [vmem:[#allocation8 + $0xc60] sm:$0xff]  ;;  %v6260_v38 = vpack.c.bf16 %v1993_v16, %v1991_v15  ;;  %v6006_v50 = vpack.c.bf16 %v7522_v20, %v7520_v19 }
 0x126   : > { %2360 = vmatmul.mubr.f32.vlgmr.msra.gmra.mrb[0].mxu1 %v586_v52  ;;  %v7526_v26 = vld [vmem:[#allocation8 + $0xc70] sm:$0xff]  ;;  %v7528_v27 = vld [vmem:[#allocation8 + $0x488] sm:$0xff]  ;;  %v1058_v28 = vrot.slane %v990_v22, 2  ;;  %v1059_v29 = vrot.slane %v992_v23, 2  ;;  %v523_v30 = vld [vmem:[#allocation2 + $0x20] sm:$0xfe] }
 0x127   : > { %5995 = vmatpush1.bf16.msra.mxu1 %v5994_v53  ;;  %2812 = vmatmul.mubr.f32.vlgmr.msra.gmra.mrb[0].mxu0 %v1051_v54  ;;  %v7530_v33 = vld [vmem:[#allocation8 + $0x498] sm:$0xff]  ;;  %v595_v34 = vsel %vm583_vm0, %v593_v18, %v594_v21  ;;  %v525_v35 = vld [vmem:[#allocation2 + $0x30] sm:$0x1]  ;;  %v590_v36 = vrot.slane %v523_v30, 1  ;;  %v989_v37 = vld [vmem:[#allocation2 + $0x40] sm:$0xfc]  ;;  %v6262_v58 = vpack.c.bf16 %v7526_v26, %v7524_v25 }
 0x128   : > { %6251 = vmatpush1.bf16.msra.mxu0 %v6250_v55  ;;  %5997 = vmatprep.subr.bf16.mxu1 %v5996_v56  ;;  %v7533_v39 = vld [vmem:[#allocation8 + $0xc88] sm:$0xff]  ;;  %v7535_v40 = vld [vmem:[#allocation8 + $0xc98] sm:$0xff]  ;;  %v1060_v41 = vsel %vm728_vm1, %v1058_v28, %v1059_v29  ;;  %v591_v42 = vrot.slane %v525_v35, 1  ;;  %v991_v43 = vld [vmem:[#allocation2 + $0x50] sm:$0x3]  ;;  %v1055_v44 = vrot.slane %v989_v37, 2  ;;  %v6008_v59 = vpack.c.bf16 %v7530_v33, %v7528_v27 }
 0x129   : > { %6253 = vmatprep.subr.bf16.mxu0 %v6252_v60  ;;  %2365 = vmatprep.mubr.f32.mxu1 %v595_v34  ;;  %v7538_v45 = vld [vmem:[#allocation8 + $0x480] sm:$0xff]  ;;  %v7540_v46 = vld [vmem:[#allocation8 + $0x490] sm:$0xff]  ;;  %v1056_v47 = vrot.slane %v991_v43, 2  ;;  %v528_v48 = vld [vmem:[#allocation2 + $0x48] sm:$0xfe]  ;;  %v6264_v3 = vpack.c.bf16 %v7535_v40, %v7533_v39 }
 0x12a   : > { %2817 = vmatprep.mubr.f32.mxu0 %v1060_v41  ;;  %v530_v49 = vld [vmem:[#allocation2 + $0x58] sm:$0x1]  ;;  %v7544_v51 = vld [vmem:[#allocation8 + $0xc80] sm:$0xff]  ;;  %v7546_v52 = vld [vmem:[#allocation8 + $0xc90] sm:$0xff]  ;;  %v592_v54 = vsel %vm583_vm0, %v590_v36, %v591_v42  ;;  %v599_v55 = vrot.slane %v528_v48, 1  ;;  %v6010_v15 = vpack.c.bf16 %v7540_v46, %v7538_v45 }
 0x12b   : > { %5999 = vmatpush1.bf16.msra.mxu1 %v5998_v5  ;;  %v7548_v53 = vld [vmem:[#allocation8 + $0x4a8] sm:$0xff]  ;;  %v600_v56 = vrot.slane %v530_v49, 1  ;;  %v7555_v60 = vld [vmem:[#allocation8 + $0x4b8] sm:$0xff]  ;;  %v1057_v61 = vsel %vm728_vm1, %v1055_v44, %v1056_v47  ;;  %v527_v63 = vld [vmem:[#allocation2 + $0x40] sm:$0xfe]  ;;  %v6266_v23 = vpack.c.bf16 %v7546_v52, %v7544_v51 }
 0x12c   : > { %6255 = vmatpush1.bf16.msra.mxu0 %v6254_v9  ;;  %6001 = vmatprep.subr.bf16.mxu1 %v6000_v10  ;;  %v994_v57 = vld [vmem:[#allocation2 + $0x68] sm:$0xfc]  ;;  %v996_v62 = vld [vmem:[#allocation2 + $0x78] sm:$0x3]  ;;  %v529_v8 = vld [vmem:[#allocation2 + $0x50] sm:$0x1] }
 0x12d   : > { %6257 = vmatprep.subr.bf16.mxu0 %v6256_v14  ;;  %v1064_v0 = vrot.slane %v994_v57, 2  ;;  %v7560_v4 = vld [vmem:[#allocation8 + $0xca8] sm:$0xff]  ;;  %v7562_v5 = vld [vmem:[#allocation8 + $0xcb8] sm:$0xff]  ;;  %2366 = vmatmul.mubr.f32.gmra.mrb[2].mxu1 %v592_v54  ;;  %v601_v6 = vsel %vm583_vm0, %v599_v55, %v600_v56  ;;  %v1065_v7 = vrot.slane %v996_v62, 2  ;;  %v596_v9 = vrot.slane %v527_v63, 1  ;;  %v7565_v10 = vld [vmem:[#allocation8 + $0x4a0] sm:$0xff] }
 0x12e   : > { %v7567_v11 = vld [vmem:[#allocation8 + $0x4b0] sm:$0xff]  ;;  %2818 = vmatmul.mubr.f32.gmra.mrb[2].mxu0 %v1057_v61  ;;  %2371 = vmatprep.mubr.f32.mxu1 %v601_v6  ;;  %v597_v12 = vrot.slane %v529_v8, 1  ;;  %v993_v13 = vld [vmem:[#allocation2 + $0x60] sm:$0xfc]  ;;  %v7575_v18 = vld [vmem:[#allocation8 + $0x4c8] sm:$0xff]  ;;  %v6268_v30 = vpack.c.bf16 %v7562_v5, %v7560_v4 }
 0x12f   : > { %6003 = vmatpush1.bf16.msra.mxu1 %v6002_v24  ;;  %v995_v14 = vld [vmem:[#allocation2 + $0x70] sm:$0x3]  ;;  %v7571_v16 = vld [vmem:[#allocation8 + $0xca0] sm:$0xff]  ;;  %v1066_v19 = vsel %vm728_vm1, %v1064_v0, %v1065_v7  ;;  %v1061_v20 = vrot.slane %v993_v13, 2  ;;  %v532_v22 = vld [vmem:[#allocation2 + $0x68] sm:$0xfe]  ;;  %v6012_v24 = vpack.c.bf16 %v7555_v60, %v7548_v53  ;;  %v6014_v42 = vpack.c.bf16 %v7567_v11, %v7565_v10 }
 0x130   : > { %6259 = vmatpush1.bf16.msra.mxu0 %v6258_v31  ;;  %6005 = vmatprep.subr.bf16.mxu1 %v6004_v32  ;;  %v7573_v17 = vld [vmem:[#allocation8 + $0xcb0] sm:$0xff]  ;;  %v1062_v21 = vrot.slane %v995_v14, 2  ;;  %v7582_v25 = vld [vmem:[#allocation8 + $0x4d8] sm:$0xff]  ;;  %v598_v26 = vsel %vm583_vm0, %v596_v9, %v597_v12  ;;  %v605_v28 = vrot.slane %v532_v22, 1  ;;  %v998_v29 = vld [vmem:[#allocation2 + $0x88] sm:$0xfc] }
 0x131   : > { %6261 = vmatprep.subr.bf16.mxu0 %v6260_v38  ;;  %v534_v27 = vld [vmem:[#allocation2 + $0x78] sm:$0x1]  ;;  %v7587_v31 = vld [vmem:[#allocation8 + $0xcc8] sm:$0xff]  ;;  %2823 = vmatprep.mubr.f32.mxu0 %v1066_v19  ;;  %v1070_v36 = vrot.slane %v998_v29, 2  ;;  %v7592_v37 = vld [vmem:[#allocation8 + $0x4c0] sm:$0xff]  ;;  %v6016_v51 = vpack.c.bf16 %v7582_v25, %v7575_v18 }
 0x132   : > { %v7589_v32 = vld [vmem:[#allocation8 + $0xcd8] sm:$0xff]  ;;  %v1063_v33 = vsel %vm728_vm1, %v1061_v20, %v1062_v21  ;;  %v606_v34 = vrot.slane %v534_v27, 1  ;;  %v7594_v38 = vld [vmem:[#allocation8 + $0x4d0] sm:$0xff]  ;;  %2372 = vmatmul.mubr.f32.gmra.mrb[4].mxu1 %v598_v26  ;;  %v531_v40 = vld [vmem:[#allocation2 + $0x60] sm:$0xfe] }
 0x133   : > { %6007 = vmatpush1.bf16.msra.mxu1 %v6006_v50  ;;  %v1000_v35 = vld [vmem:[#allocation2 + $0x98] sm:$0x3]  ;;  %2824 = vmatmul.mubr.f32.gmra.mrb[4].mxu0 %v1063_v33  ;;  %v533_v41 = vld [vmem:[#allocation2 + $0x70] sm:$0x1]  ;;  %v7598_v43 = vld [vmem:[#allocation8 + $0xcc0] sm:$0xff]  ;;  %v602_v47 = vrot.slane %v531_v40, 1  ;;  %v6270_v50 = vpack.c.bf16 %v7573_v17, %v7571_v16  ;;  %v6272_v57 = vpack.c.bf16 %v7589_v32, %v7587_v31  ;;  %v6018_v7 = vpack.c.bf16 %v7594_v38, %v7592_v37 }
 0x134   : > { %6263 = vmatpush1.bf16.msra.mxu0 %v6262_v58  ;;  %6009 = vmatprep.subr.bf16.mxu1 %v6008_v59  ;;  %v1071_v39 = vrot.slane %v1000_v35, 2  ;;  %v7600_v44 = vld [vmem:[#allocation8 + $0xcd0] sm:$0xff]  ;;  %v7602_v45 = vld [vmem:[#allocation8 + $0x4e8] sm:$0xff]  ;;  %v607_v46 = vsel %vm583_vm0, %v605_v28, %v606_v34  ;;  %v603_v48 = vrot.slane %v533_v41, 1  ;;  %v997_v49 = vld [vmem:[#allocation2 + $0x80] sm:$0xfc] }
 0x135   : > { %6265 = vmatprep.subr.bf16.mxu0 %v6264_v3  ;;  %v7609_v52 = vld [vmem:[#allocation8 + $0x4f8] sm:$0xff]  ;;  %v999_v54 = vld [vmem:[#allocation2 + $0x90] sm:$0x3]  ;;  %v1067_v55 = vrot.slane %v997_v49, 2  ;;  %v536_v56 = vld [vmem:[#allocation2 + $0x88] sm:$0xfe]  ;;  %2377 = vmatprep.mubr.f32.mxu1 %v607_v46 }
 0x136   : > { %v1072_v53 = vsel %vm728_vm1, %v1070_v36, %v1071_v39  ;;  %v7614_v58 = vld [vmem:[#allocation8 + $0xce8] sm:$0xff]  ;;  %v7616_v59 = vld [vmem:[#allocation8 + $0xcf8] sm:$0xff]  ;;  %v604_v60 = vsel %vm583_vm0, %v602_v47, %v603_v48  ;;  %v1068_v61 = vrot.slane %v999_v54, 2  ;;  %v611_v0 = vrot.slane %v536_v56, 1  ;;  %v7619_v63 = vld [vmem:[#allocation8 + $0x4e0] sm:$0xff] }
 0x137   : > { %6011 = vmatpush1.bf16.msra.mxu1 %v6010_v15  ;;  %v538_v62 = vld [vmem:[#allocation2 + $0x98] sm:$0x1]  ;;  %v7621_v3 = vld [vmem:[#allocation8 + $0x4f0] sm:$0xff]  ;;  %2829 = vmatprep.mubr.f32.mxu0 %v1072_v53  ;;  %v1002_v5 = vld [vmem:[#allocation2 + $0xa8] sm:$0xfc]  ;;  %v6274_v15 = vpack.c.bf16 %v7600_v44, %v7598_v43  ;;  %v6020_v16 = vpack.c.bf16 %v7609_v52, %v7602_v45  ;;  %v6276_v22 = vpack.c.bf16 %v7616_v59, %v7614_v58 }
 0x138   : > { %6267 = vmatpush1.bf16.msra.mxu0 %v6266_v23  ;;  %6013 = vmatprep.subr.bf16.mxu1 %v6012_v24  ;;  %v612_v4 = vrot.slane %v538_v62, 1  ;;  %v1004_v6 = vld [vmem:[#allocation2 + $0xb8] sm:$0x3]  ;;  %v7625_v8 = vld [vmem:[#allocation8 + $0xce0] sm:$0xff]  ;;  %v7627_v9 = vld [vmem:[#allocation8 + $0xcf0] sm:$0xff]  ;;  %v1069_v11 = vsel %vm728_vm1, %v1067_v55, %v1068_v61  ;;  %v1076_v12 = vrot.slane %v1002_v5, 2  ;;  %v6022_v34 = vpack.c.bf16 %v7621_v3, %v7619_v63 }
 0x139   : > { %6269 = vmatprep.subr.bf16.mxu0 %v6268_v30  ;;  %2378 = vmatmul.mubr.f32.gmra.mrb[6].mxu1 %v604_v60  ;;  %v7629_v10 = vld [vmem:[#allocation8 + $0x508] sm:$0xff]  ;;  %v1077_v13 = vrot.slane %v1004_v6, 2  ;;  %v535_v14 = vld [vmem:[#allocation2 + $0x80] sm:$0xfe]  ;;  %v7636_v17 = vld [vmem:[#allocation8 + $0x518] sm:$0xff] }
 0x13a   : > { %v613_v18 = vsel %vm583_vm0, %v611_v0, %v612_v4  ;;  %v537_v19 = vld [vmem:[#allocation2 + $0x90] sm:$0x1]  ;;  %v608_v20 = vrot.slane %v535_v14, 1  ;;  %v1001_v21 = vld [vmem:[#allocation2 + $0xa0] sm:$0xfc]  ;;  %v7641_v23 = vld [vmem:[#allocation8 + $0xd08] sm:$0xff]  ;;  %2830 = vmatmul.mubr.f32.gmra.mrb[6].mxu0 %v1069_v11  ;;  %v6024_v43 = vpack.c.bf16 %v7636_v17, %v7629_v10 }
 0x13b   : > { %6015 = vmatpush1.bf16.msra.mxu1 %v6014_v42  ;;  %v7643_v24 = vld [vmem:[#allocation8 + $0xd18] sm:$0xff]  ;;  %v1078_v25 = vsel %vm728_vm1, %v1076_v12, %v1077_v13  ;;  %v609_v26 = vrot.slane %v537_v19, 1  ;;  %v1003_v27 = vld [vmem:[#allocation2 + $0xb0] sm:$0x3]  ;;  %v1073_v28 = vrot.slane %v1001_v21, 2  ;;  %v7646_v29 = vld [vmem:[#allocation8 + $0x500] sm:$0xff]  ;;  %2383 = vmatprep.mubr.f32.mxu1 %v613_v18  ;;  %v6278_v42 = vpack.c.bf16 %v7627_v9, %v7625_v8 }
 0x13c   : > { %6271 = vmatpush1.bf16.msra.mxu0 %v6270_v50  ;;  %6017 = vmatprep.subr.bf16.mxu1 %v6016_v51  ;;  %v7648_v30 = vld [vmem:[#allocation8 + $0x510] sm:$0xff]  ;;  %v1074_v31 = vrot.slane %v1003_v27, 2  ;;  %v540_v32 = vld [vmem:[#allocation2 + $0xa8] sm:$0xfe]  ;;  %v542_v33 = vld [vmem:[#allocation2 + $0xb8] sm:$0x1]  ;;  %v6280_v49 = vpack.c.bf16 %v7643_v24, %v7641_v23 }
 0x13d   : > { %6273 = vmatprep.subr.bf16.mxu0 %v6272_v57  ;;  %2835 = vmatprep.mubr.f32.mxu0 %v1078_v25  ;;  %v7652_v35 = vld [vmem:[#allocation8 + $0xd00] sm:$0xff]  ;;  %v7654_v36 = vld [vmem:[#allocation8 + $0xd10] sm:$0xff]  ;;  %v7656_v37 = vld [vmem:[#allocation8 + $0x528] sm:$0xff]  ;;  %v610_v38 = vsel %vm583_vm0, %v608_v20, %v609_v26  ;;  %v617_v39 = vrot.slane %v540_v32, 1  ;;  %v618_v40 = vrot.slane %v542_v33, 1  ;;  %v6026_v61 = vpack.c.bf16 %v7648_v30, %v7646_v29 }
 0x13e   : > { %v1006_v41 = vld [vmem:[#allocation2 + $0xc8] sm:$0xfc]  ;;  %v7663_v44 = vld [vmem:[#allocation8 + $0x538] sm:$0xff]  ;;  %v1075_v45 = vsel %vm728_vm1, %v1073_v28, %v1074_v31  ;;  %v539_v48 = vld [vmem:[#allocation2 + $0xa0] sm:$0xfe]  ;;  %2384 = vmatmul.mubr.f32.gmra.mrb[8].mxu1 %v610_v38 }
 0x13f   : > { %6019 = vmatpush1.bf16.msra.mxu1 %v6018_v7  ;;  %v1008_v46 = vld [vmem:[#allocation2 + $0xd8] sm:$0x3]  ;;  %v1082_v47 = vrot.slane %v1006_v41, 2  ;;  %v7668_v50 = vld [vmem:[#allocation8 + $0xd28] sm:$0xff]  ;;  %v619_v52 = vsel %vm583_vm0, %v617_v39, %v618_v40  ;;  %v541_v54 = vld [vmem:[#allocation2 + $0xb0] sm:$0x1]  ;;  %2836 = vmatmul.mubr.f32.gmra.mrb[8].mxu0 %v1075_v45  ;;  %v6282_v7 = vpack.c.bf16 %v7654_v36, %v7652_v35  ;;  %v6028_v8 = vpack.c.bf16 %v7663_v44, %v7656_v37 }
 0x140   : > { %6275 = vmatpush1.bf16.msra.mxu0 %v6274_v15  ;;  %6021 = vmatprep.subr.bf16.mxu1 %v6020_v16  ;;  %v7670_v51 = vld [vmem:[#allocation8 + $0xd38] sm:$0xff]  ;;  %v1083_v53 = vrot.slane %v1008_v46, 2  ;;  %v614_v55 = vrot.slane %v539_v48, 1  ;;  %v7673_v56 = vld [vmem:[#allocation8 + $0x520] sm:$0xff]  ;;  %v7675_v57 = vld [vmem:[#allocation8 + $0x530] sm:$0xff]  ;;  %v615_v58 = vrot.slane %v541_v54, 1 }
 0x141   : > { %6277 = vmatprep.subr.bf16.mxu0 %v6276_v22  ;;  %2389 = vmatprep.mubr.f32.mxu1 %v619_v52  ;;  %v1005_v59 = vld [vmem:[#allocation2 + $0xc0] sm:$0xfc]  ;;  %v1007_v60 = vld [vmem:[#allocation2 + $0xd0] sm:$0x3]  ;;  %v7683_v63 = vld [vmem:[#allocation8 + $0x548] sm:$0xff]  ;;  %v6284_v14 = vpack.c.bf16 %v7670_v51, %v7668_v50  ;;  %v6030_v26 = vpack.c.bf16 %v7675_v57, %v7673_v56 }
 0x142   : > { %v7679_v62 = vld [vmem:[#allocation8 + $0xd20] sm:$0xff]  ;;  %v7681_v0 = vld [vmem:[#allocation8 + $0xd30] sm:$0xff]  ;;  %v1084_v3 = vsel %vm728_vm1, %v1082_v47, %v1083_v53  ;;  %v1079_v4 = vrot.slane %v1005_v59, 2  ;;  %v1080_v5 = vrot.slane %v1007_v60, 2  ;;  %v544_v6 = vld [vmem:[#allocation2 + $0xc8] sm:$0xfe]  ;;  %v616_v10 = vsel %vm583_vm0, %v614_v55, %v615_v58 }
 0x143   : > { %6023 = vmatpush1.bf16.msra.mxu1 %v6022_v34  ;;  %v7690_v9 = vld [vmem:[#allocation8 + $0x558] sm:$0xff]  ;;  %v623_v12 = vrot.slane %v544_v6, 1  ;;  %v1010_v13 = vld [vmem:[#allocation2 + $0xe8] sm:$0xfc]  ;;  %2841 = vmatprep.mubr.f32.mxu0 %v1084_v3  ;;  %v7700_v21 = vld [vmem:[#allocation8 + $0x540] sm:$0xff]  ;;  %v6286_v34 = vpack.c.bf16 %v7681_v0, %v7679_v62 }
 0x144   : > { %6279 = vmatpush1.bf16.msra.mxu0 %v6278_v42  ;;  %6025 = vmatprep.subr.bf16.mxu1 %v6024_v43  ;;  %v546_v11 = vld [vmem:[#allocation2 + $0xd8] sm:$0x1]  ;;  %v7695_v15 = vld [vmem:[#allocation8 + $0xd48] sm:$0xff]  ;;  %v1081_v17 = vsel %vm728_vm1, %v1079_v4, %v1080_v5  ;;  %v1088_v20 = vrot.slane %v1010_v13, 2  ;;  %v7702_v22 = vld [vmem:[#allocation8 + $0x550] sm:$0xff]  ;;  %v6032_v35 = vpack.c.bf16 %v7690_v9, %v7683_v63 }
 0x145   : > { %6281 = vmatprep.subr.bf16.mxu0 %v6280_v49  ;;  %v7697_v16 = vld [vmem:[#allocation8 + $0xd58] sm:$0xff]  ;;  %v624_v18 = vrot.slane %v546_v11, 1  ;;  %2390 = vmatmul.mubr.f32.gmra.mrb[10].mxu1 %v616_v10  ;;  %v543_v24 = vld [vmem:[#allocation2 + $0xc0] sm:$0xfe]  ;;  %v545_v25 = vld [vmem:[#allocation2 + $0xd0] sm:$0x1]  ;;  %v6034_v53 = vpack.c.bf16 %v7702_v22, %v7700_v21 }
 0x146   : > { %v1012_v19 = vld [vmem:[#allocation2 + $0xf8] sm:$0x3]  ;;  %2842 = vmatmul.mubr.f32.gmra.mrb[10].mxu0 %v1081_v17  ;;  %v7706_v27 = vld [vmem:[#allocation8 + $0xd40] sm:$0xff]  ;;  %v7708_v28 = vld [vmem:[#allocation8 + $0xd50] sm:$0xff]  ;;  %v620_v31 = vrot.slane %v543_v24, 1  ;;  %v621_v32 = vrot.slane %v545_v25, 1  ;;  %v6288_v41 = vpack.c.bf16 %v7697_v16, %v7695_v15 }
 0x147   : > { %v1089_v23 = vrot.slane %v1012_v19, 2  ;;  %6027 = vmatpush1.bf16.msra.mxu1 %v6026_v61  ;;  %v7710_v29 = vld [vmem:[#allocation8 + $0x568] sm:$0xff]  ;;  %v625_v30 = vsel %vm583_vm0, %v623_v12, %v624_v18  ;;  %v1009_v33 = vld [vmem:[#allocation2 + $0xe0] sm:$0xfc]  ;;  %v1769_v36 = vld [vmem:[#allocation8 + $0x578] sm:$0xff]  ;;  %v6290_v60 = vpack.c.bf16 %v7708_v28, %v7706_v27 }
 0x148   : > { %6283 = vmatpush1.bf16.msra.mxu0 %v6282_v7  ;;  %6029 = vmatprep.subr.bf16.mxu1 %v6028_v8  ;;  %v1011_v38 = vld [vmem:[#allocation2 + $0xf0] sm:$0x3]  ;;  %v1085_v39 = vrot.slane %v1009_v33, 2  ;;  %v548_v40 = vld [vmem:[#allocation2 + $0xe8] sm:$0xfe]  ;;  %v2025_v43 = vld [vmem:[#allocation8 + $0xd78] sm:$0xff]  ;;  %v622_v44 = vsel %vm583_vm0, %v620_v31, %v621_v32  ;;  %v6036_v61 = vpack.c.bf16 %v1769_v36, %v7710_v29 }
 0x149   : > { %v1090_v37 = vsel %vm728_vm1, %v1088_v20, %v1089_v23  ;;  %6285 = vmatprep.subr.bf16.mxu0 %v6284_v14  ;;  %v2023_v42 = vld [vmem:[#allocation8 + $0xd68] sm:$0xff]  ;;  %2395 = vmatprep.mubr.f32.mxu1 %v625_v30  ;;  %v1086_v45 = vrot.slane %v1011_v38, 2  ;;  %v550_v46 = vld [vmem:[#allocation2 + $0xf8] sm:$0x1]  ;;  %v629_v47 = vrot.slane %v548_v40, 1  ;;  %v7721_v48 = vld [vmem:[#allocation8 + $0x560] sm:$0xff] }
 0x14a   : > { %v7723_v49 = vld [vmem:[#allocation8 + $0x570] sm:$0xff]  ;;  %2847 = vmatprep.mubr.f32.mxu0 %v1090_v37  ;;  %2396 = vmatmul.mubr.f32.gmra.mrb[12].mxu1 %v622_v44  ;;  %v630_v50 = vrot.slane %v550_v46, 1  ;;  %v1014_v51 = vld [vmem:[#allocation2 + $0x108] sm:$0xfc]  ;;  %v1016_v52 = vld [vmem:[#allocation2 + $0x118] sm:$0x3]  ;;  %v6292_v5 = vpack.c.bf16 %v2025_v43, %v2023_v42 }
 0x14b   : > { %6031 = vmatpush1.bf16.msra.mxu1 %v6030_v26  ;;  %v2022_v54 = vld [vmem:[#allocation8 + $0xd60] sm:$0xff]  ;;  %v2024_v55 = vld [vmem:[#allocation8 + $0xd70] sm:$0xff]  ;;  %v1087_v56 = vsel %vm728_vm1, %v1085_v39, %v1086_v45  ;;  %v1094_v57 = vrot.slane %v1014_v51, 2  ;;  %v1095_v58 = vrot.slane %v1016_v52, 2  ;;  %v1771_v62 = vld [vmem:[#allocation8 + $0x588] sm:$0xff]  ;;  %v6038_v16 = vpack.c.bf16 %v7723_v49, %v7721_v48 }
 0x14c   : > { %v547_v59 = vld [vmem:[#allocation2 + $0xe0] sm:$0xfe]  ;;  %6287 = vmatpush1.bf16.msra.mxu0 %v6286_v34  ;;  %6033 = vmatprep.subr.bf16.mxu1 %v6032_v35  ;;  %v631_v0 = vsel %vm583_vm0, %v629_v47, %v630_v50  ;;  %v549_v63 = vld [vmem:[#allocation2 + $0xf0] sm:$0x1]  ;;  %v1773_v6 = vld [vmem:[#allocation8 + $0x598] sm:$0xff]  ;;  %v6294_v21 = vpack.c.bf16 %v2024_v55, %v2022_v54 }
 0x14d   : > { %v626_v3 = vrot.slane %v547_v59, 1  ;;  %v1013_v4 = vld [vmem:[#allocation2 + $0x100] sm:$0xfc]  ;;  %6289 = vmatprep.subr.bf16.mxu0 %v6288_v41  ;;  %v2027_v7 = vld [vmem:[#allocation8 + $0xd88] sm:$0xff]  ;;  %2848 = vmatmul.mubr.f32.gmra.mrb[12].mxu0 %v1087_v56  ;;  %v1096_v8 = vsel %vm728_vm1, %v1094_v57, %v1095_v58  ;;  %v627_v9 = vrot.slane %v549_v63, 1  ;;  %v2029_v12 = vld [vmem:[#allocation8 + $0xd98] sm:$0xff]  ;;  %v6040_v22 = vpack.c.bf16 %v1773_v6, %v1771_v62 }
 0x14e   : > { %v1015_v10 = vld [vmem:[#allocation2 + $0x110] sm:$0x3]  ;;  %v1091_v11 = vrot.slane %v1013_v4, 2  ;;  %2401 = vmatprep.mubr.f32.mxu1 %v631_v0  ;;  %2853 = vmatprep.mubr.f32.mxu0 %v1096_v8  ;;  %v665_v14 = vld [vmem:[#allocation2 + $0x8] sm:$0xfc]  ;;  %v1770_v17 = vld [vmem:[#allocation8 + $0x580] sm:$0xff]  ;;  %v6296_v27 = vpack.c.bf16 %v2029_v12, %v2027_v7 }
 0x14f   : > { %v1092_v13 = vrot.slane %v1015_v10, 2  ;;  %v667_v15 = vld [vmem:[#allocation2 + $0x18] sm:$0x3]  ;;  %6035 = vmatpush1.bf16.msra.mxu1 %v6034_v53  ;;  %v628_v18 = vsel %vm583_vm0, %v626_v3, %v627_v9  ;;  %v732_v19 = vrot.slane %v665_v14, 2  ;;  %v1772_v23 = vld [vmem:[#allocation8 + $0x590] sm:$0xff]  ;;  %v2026_v24 = vld [vmem:[#allocation8 + $0xd80] sm:$0xff] }
 0x150   : > { %v733_v20 = vrot.slane %v667_v15, 2  ;;  %6291 = vmatpush1.bf16.msra.mxu0 %v6290_v60  ;;  %6037 = vmatprep.subr.bf16.mxu1 %v6036_v61  ;;  %v7737_v26 = vld [vmem:[#allocation2 + $0x48] sm:$0xff]  ;;  %v2028_v28 = vld [vmem:[#allocation8 + $0xd90] sm:$0xff]  ;;  %v1777_v30 = vld [vmem:[#allocation8 + $0x5b8] sm:$0xff]  ;;  %v6042_v34 = vpack.c.bf16 %v1772_v23, %v1770_v17 }
 0x151   : > { %v1093_v25 = vsel %vm728_vm1, %v1091_v11, %v1092_v13  ;;  %6293 = vmatprep.subr.bf16.mxu0 %v6292_v5  ;;  %v1775_v29 = vld [vmem:[#allocation8 + $0x5a8] sm:$0xff]  ;;  %2402 = vmatmul.mubr.f32.gmra.mrb[14].mxu1 %v628_v18  ;;  %v2033_v33 = vld [vmem:[#allocation8 + $0xdb8] sm:$0xff]  ;;  %v6298_v35 = vpack.c.bf16 %v2028_v28, %v2026_v24  ;;  %v1774_v37 = vld [vmem:[#allocation8 + $0x5a0] sm:$0xff] }
 0x152   : > { %v734_v31 = vsel %vm728_vm1, %v732_v19, %v733_v20  ;;  %v2031_v32 = vld [vmem:[#allocation8 + $0xda8] sm:$0xff]  ;;  %2854 = vmatmul.mubr.f32.gmra.mrb[14].mxu0 %v1093_v25  ;;  %v6044_v36 = vpack.c.bf16 %v1777_v30, %v1775_v29  ;;  %v1776_v38 = vld [vmem:[#allocation8 + $0x5b0] sm:$0xff]  ;;  %v2030_v39 = vld [vmem:[#allocation8 + $0xda0] sm:$0xff] }
 0x153   : > { %2472 = vmatprep.mubr.f32.mxu1 %v734_v31  ;;  %6039 = vmatpush1.bf16.msra.mxu1 %v6038_v16  ;;  %v6300_v40 = vpack.c.bf16 %v2033_v33, %v2031_v32  ;;  %v2032_v41 = vld [vmem:[#allocation8 + $0xdb0] sm:$0xff]  ;;  %v1779_v42 = vld [vmem:[#allocation8 + $0x5c8] sm:$0xff]  ;;  %v1781_v43 = vld [vmem:[#allocation8 + $0x5d8] sm:$0xff]  ;;  %v6046_v46 = vpack.c.bf16 %v1776_v38, %v1774_v37 }
 0x154   : > { %2924 = vmatprep.mubr.f32.mxu0 %v7737_v26  ;;  %6295 = vmatpush1.bf16.msra.mxu0 %v6294_v21  ;;  %v2035_v44 = vld [vmem:[#allocation8 + $0xdc8] sm:$0xff]  ;;  %v2037_v45 = vld [vmem:[#allocation8 + $0xdd8] sm:$0xff]  ;;  %v6302_v47 = vpack.c.bf16 %v2032_v41, %v2030_v39  ;;  %v6048_v48 = vpack.c.bf16 %v1781_v43, %v1779_v42  ;;  %v1778_v49 = vld [vmem:[#allocation8 + $0x5c0] sm:$0xff] }
 0x155   : > { %6041 = vmatprep.subr.bf16.mxu1 %v6040_v22  ;;  %6297 = vmatprep.subr.bf16.mxu0 %v6296_v27  ;;  %v1780_v50 = vld [vmem:[#allocation8 + $0x5d0] sm:$0xff]  ;;  %v2034_v51 = vld [vmem:[#allocation8 + $0xdc0] sm:$0xff]  ;;  %v6304_v52 = vpack.c.bf16 %v2037_v45, %v2035_v44  ;;  %v1783_v54 = vld [vmem:[#allocation8 + $0x5e8] sm:$0xff] }
 0x156   : > { %v2036_v53 = vld [vmem:[#allocation8 + $0xdd0] sm:$0xff]  ;;  %v1785_v55 = vld [vmem:[#allocation8 + $0x5f8] sm:$0xff]  ;;  %v2039_v56 = vld [vmem:[#allocation8 + $0xde8] sm:$0xff]  ;;  %v6050_v58 = vpack.c.bf16 %v1780_v50, %v1778_v49 }
 0x157   : > { %6043 = vmatpush1.bf16.msra.mxu1 %v6042_v34  ;;  %v2041_v57 = vld [vmem:[#allocation8 + $0xdf8] sm:$0xff]  ;;  %v1782_v59 = vld [vmem:[#allocation8 + $0x5e0] sm:$0xff]  ;;  %v1784_v60 = vld [vmem:[#allocation8 + $0x5f0] sm:$0xff]  ;;  %v6306_v61 = vpack.c.bf16 %v2036_v53, %v2034_v51  ;;  %v6052_v62 = vpack.c.bf16 %v1785_v55, %v1783_v54 }
 0x158   : > { %6299 = vmatpush1.bf16.msra.mxu0 %v6298_v35  ;;  %6045 = vmatprep.subr.bf16.mxu1 %v6044_v36  ;;  %v2038_v0 = vld [vmem:[#allocation8 + $0xde0] sm:$0xff]  ;;  %v666_v3 = vld [vmem:[#allocation2 + $0x10] sm:$0x3]  ;;  %v6308_v4 = vpack.c.bf16 %v2041_v57, %v2039_v56  ;;  %v1787_v6 = vld [vmem:[#allocation8 + $0x608] sm:$0xff]  ;;  %v6054_v10 = vpack.c.bf16 %v1784_v60, %v1782_v59 }
 0x159   : > { %6301 = vmatprep.subr.bf16.mxu0 %v6300_v40  ;;  %v664_v63 = vld [vmem:[#allocation2] sm:$0xfc]  ;;  %v2040_v5 = vld [vmem:[#allocation8 + $0xdf0] sm:$0xff]  ;;  %v1789_v7 = vld [vmem:[#allocation8 + $0x618] sm:$0xff]  ;;  %v730_v12 = vrot.slane %v666_v3, 2 }
 0x15a   : > { %v2043_v8 = vld [vmem:[#allocation8 + $0xe08] sm:$0xff]  ;;  %v2045_v9 = vld [vmem:[#allocation8 + $0xe18] sm:$0xff]  ;;  %v729_v11 = vrot.slane %v664_v63, 2  ;;  %v6310_v13 = vpack.c.bf16 %v2040_v5, %v2038_v0  ;;  %v6056_v14 = vpack.c.bf16 %v1789_v7, %v1787_v6  ;;  %v1786_v15 = vld [vmem:[#allocation8 + $0x600] sm:$0xff] }
 0x15b   : > { %6047 = vmatpush1.bf16.msra.mxu1 %v6046_v46  ;;  %v1788_v16 = vld [vmem:[#allocation8 + $0x610] sm:$0xff]  ;;  %v2042_v17 = vld [vmem:[#allocation8 + $0xe00] sm:$0xff]  ;;  %v6312_v18 = vpack.c.bf16 %v2045_v9, %v2043_v8  ;;  %v1791_v20 = vld [vmem:[#allocation8 + $0x628] sm:$0xff] }
 0x15c   : > { %6303 = vmatpush1.bf16.msra.mxu0 %v6302_v47  ;;  %6049 = vmatprep.subr.bf16.mxu1 %v6048_v48  ;;  %v2044_v19 = vld [vmem:[#allocation8 + $0xe10] sm:$0xff]  ;;  %v1793_v21 = vld [vmem:[#allocation8 + $0x638] sm:$0xff]  ;;  %v2047_v22 = vld [vmem:[#allocation8 + $0xe28] sm:$0xff]  ;;  %v731_v24 = vsel %vm728_vm1, %v729_v11, %v730_v12  ;;  %v6058_v25 = vpack.c.bf16 %v1788_v16, %v1786_v15 }
 0x15d   : > { %6305 = vmatprep.subr.bf16.mxu0 %v6304_v52  ;;  %v2049_v23 = vld [vmem:[#allocation8 + $0xe38] sm:$0xff]  ;;  %v7742_v27 = vld [vmem:[#allocation2 + $0x40] sm:$0xff]  ;;  %v6314_v29 = vpack.c.bf16 %v2044_v19, %v2042_v17  ;;  %v6060_v30 = vpack.c.bf16 %v1793_v21, %v1791_v20  ;;  %v1792_v31 = vld [vmem:[#allocation8 + $0x630] sm:$0xff] }
 0x15e   : > { %v1790_v28 = vld [vmem:[#allocation8 + $0x620] sm:$0xff]  ;;  %v2048_v33 = vld [vmem:[#allocation8 + $0xe30] sm:$0xff]  ;;  %v6316_v34 = vpack.c.bf16 %v2049_v23, %v2047_v22  ;;  %v1795_v35 = vld [vmem:[#allocation8 + $0x648] sm:$0xff] }
 0x15f   : > { %6051 = vmatpush1.bf16.msra.mxu1 %v6050_v58  ;;  %v2046_v32 = vld [vmem:[#allocation8 + $0xe20] sm:$0xff]  ;;  %v1797_v36 = vld [vmem:[#allocation8 + $0x658] sm:$0xff]  ;;  %v2051_v37 = vld [vmem:[#allocation8 + $0xe48] sm:$0xff]  ;;  %v6062_v41 = vpack.c.bf16 %v1792_v31, %v1790_v28 }
 0x160   : > { %6307 = vmatpush1.bf16.msra.mxu0 %v6306_v61  ;;  %6053 = vmatprep.subr.bf16.mxu1 %v6052_v62  ;;  %v2053_v38 = vld [vmem:[#allocation8 + $0xe58] sm:$0xff]  ;;  %v1794_v39 = vld [vmem:[#allocation8 + $0x640] sm:$0xff]  ;;  %v1796_v40 = vld [vmem:[#allocation8 + $0x650] sm:$0xff]  ;;  %v6318_v46 = vpack.c.bf16 %v2048_v33, %v2046_v32  ;;  %v6064_v47 = vpack.c.bf16 %v1797_v36, %v1795_v35 }
 0x161   : > { %6309 = vmatprep.subr.bf16.mxu0 %v6308_v4  ;;  %v2050_v42 = vld [vmem:[#allocation8 + $0xe40] sm:$0xff]  ;;  %v2052_v43 = vld [vmem:[#allocation8 + $0xe50] sm:$0xff]  ;;  %v1799_v44 = vld [vmem:[#allocation8 + $0x668] sm:$0xff]  ;;  %v6320_v52 = vpack.c.bf16 %v2053_v38, %v2051_v37  ;;  %v6066_v62 = vpack.c.bf16 %v1796_v40, %v1794_v39 }
 0x162   : > { %v1801_v45 = vld [vmem:[#allocation8 + $0x678] sm:$0xff]  ;;  %v2055_v48 = vld [vmem:[#allocation8 + $0xe68] sm:$0xff]  ;;  %v668_v51 = vld [vmem:[#allocation2 + $0x20] sm:$0xfc]  ;;  %v6322_v6 = vpack.c.bf16 %v2052_v43, %v2050_v42 }
 0x163   : > { %6055 = vmatpush1.bf16.msra.mxu1 %v6054_v10  ;;  %v669_v49 = vld [vmem:[#allocation2 + $0x28] sm:$0xfc]  ;;  %v671_v50 = vld [vmem:[#allocation2 + $0x38] sm:$0x3]  ;;  %v670_v56 = vld [vmem:[#allocation2 + $0x30] sm:$0x3]  ;;  %v6068_v7 = vpack.c.bf16 %v1801_v45, %v1799_v44 }
 0x164   : > { %6311 = vmatpush1.bf16.msra.mxu0 %v6310_v13  ;;  %6057 = vmatprep.subr.bf16.mxu1 %v6056_v14  ;;  %v2057_v53 = vld [vmem:[#allocation8 + $0xe78] sm:$0xff]  ;;  %v738_v54 = vrot.slane %v669_v49, 2  ;;  %v739_v55 = vrot.slane %v671_v50, 2  ;;  %v735_v57 = vrot.slane %v668_v51, 2  ;;  %v1798_v58 = vld [vmem:[#allocation8 + $0x660] sm:$0xff]  ;;  %v1800_v59 = vld [vmem:[#allocation8 + $0x670] sm:$0xff] }
 0x165   : > { %6313 = vmatprep.subr.bf16.mxu0 %v6312_v18  ;;  %v736_v60 = vrot.slane %v670_v56, 2  ;;  %v7745_v61 = vld [vmem:[#allocation2 + $0x68] sm:$0xff]  ;;  %v7747_v0 = vld [vmem:[#allocation8 + $0xe60] sm:$0xff]  ;;  %v2056_v63 = vld [vmem:[#allocation8 + $0xe70] sm:$0xff]  ;;  %v6324_v12 = vpack.c.bf16 %v2057_v53, %v2055_v48  ;;  %v6070_v21 = vpack.c.bf16 %v1800_v59, %v1798_v58 }
 0x166   : > { %2473 = vmatmul.mubr.f32.vlgmr.msra.gmra.mrb[0].mxu1 %v731_v24  ;;  %v1803_v3 = vld [vmem:[#allocation8 + $0x688] sm:$0xff]  ;;  %v1805_v4 = vld [vmem:[#allocation8 + $0x698] sm:$0xff]  ;;  %v740_v5 = vsel %vm728_vm1, %v738_v54, %v739_v55  ;;  %v7752_v11 = vld [vmem:[#allocation2 + $0x60] sm:$0xff]  ;;  %v6326_v28 = vpack.c.bf16 %v2056_v63, %v7747_v0 }
 0x167   : > { %6059 = vmatpush1.bf16.msra.mxu1 %v6058_v25  ;;  %2925 = vmatmul.mubr.f32.vlgmr.msra.gmra.mrb[0].mxu0 %v7742_v27  ;;  %v2059_v8 = vld [vmem:[#allocation8 + $0xe88] sm:$0xff]  ;;  %v2061_v9 = vld [vmem:[#allocation8 + $0xe98] sm:$0xff]  ;;  %v737_v10 = vsel %vm728_vm1, %v735_v57, %v736_v60  ;;  %v672_v15 = vld [vmem:[#allocation2 + $0x40] sm:$0xfc] }
 0x168   : > { %6315 = vmatpush1.bf16.msra.mxu0 %v6314_v29  ;;  %6061 = vmatprep.subr.bf16.mxu1 %v6060_v30  ;;  %v673_v13 = vld [vmem:[#allocation2 + $0x48] sm:$0xfc]  ;;  %v675_v14 = vld [vmem:[#allocation2 + $0x58] sm:$0x3]  ;;  %v7754_v16 = vld [vmem:[#allocation8 + $0x680] sm:$0xff]  ;;  %v741_v20 = vrot.slane %v672_v15, 2  ;;  %v6072_v29 = vpack.c.bf16 %v1805_v4, %v1803_v3 }
 0x169   : > { %6317 = vmatprep.subr.bf16.mxu0 %v6316_v34  ;;  %2930 = vmatprep.mubr.f32.mxu0 %v7745_v61  ;;  %v744_v17 = vrot.slane %v673_v13, 2  ;;  %v745_v18 = vrot.slane %v675_v14, 2  ;;  %v674_v19 = vld [vmem:[#allocation2 + $0x50] sm:$0x3]  ;;  %v2058_v23 = vld [vmem:[#allocation8 + $0xe80] sm:$0xff]  ;;  %v7757_v25 = vld [vmem:[#allocation2 + $0x88] sm:$0xff]  ;;  %v6328_v34 = vpack.c.bf16 %v2061_v9, %v2059_v8 }
 0x16a   : > { %2478 = vmatprep.mubr.f32.mxu1 %v740_v5  ;;  %v1804_v22 = vld [vmem:[#allocation8 + $0x690] sm:$0xff]  ;;  %v742_v24 = vrot.slane %v674_v19, 2  ;;  %v1807_v31 = vld [vmem:[#allocation8 + $0x6a8] sm:$0xff]  ;;  %v1809_v32 = vld [vmem:[#allocation8 + $0x6b8] sm:$0xff] }
 0x16b   : > { %6063 = vmatpush1.bf16.msra.mxu1 %v6062_v41  ;;  %2931 = vmatmul.mubr.f32.gmra.mrb[2].mxu0 %v7752_v11  ;;  %v2060_v30 = vld [vmem:[#allocation8 + $0xe90] sm:$0xff]  ;;  %v746_v33 = vsel %vm728_vm1, %v744_v17, %v745_v18  ;;  %v2063_v35 = vld [vmem:[#allocation8 + $0xea8] sm:$0xff]  ;;  %v2065_v36 = vld [vmem:[#allocation8 + $0xeb8] sm:$0xff]  ;;  %v6074_v44 = vpack.c.bf16 %v1804_v22, %v7754_v16  ;;  %v6076_v51 = vpack.c.bf16 %v1809_v32, %v1807_v31 }
 0x16c   : > { %6319 = vmatpush1.bf16.msra.mxu0 %v6318_v46  ;;  %6065 = vmatprep.subr.bf16.mxu1 %v6064_v47  ;;  %v743_v37 = vsel %vm728_vm1, %v741_v20, %v742_v24  ;;  %v7762_v38 = vld [vmem:[#allocation2 + $0x80] sm:$0xff]  ;;  %v7766_v40 = vld [vmem:[#allocation8 + $0x6b0] sm:$0xff]  ;;  %v677_v41 = vld [vmem:[#allocation2 + $0x68] sm:$0xfc]  ;;  %v6330_v50 = vpack.c.bf16 %v2060_v30, %v2058_v23  ;;  %v6332_v56 = vpack.c.bf16 %v2065_v36, %v2063_v35 }
 0x16d   : > { %6321 = vmatprep.subr.bf16.mxu0 %v6320_v52  ;;  %2479 = vmatmul.mubr.f32.gmra.mrb[2].mxu1 %v737_v10  ;;  %v7764_v39 = vld [vmem:[#allocation8 + $0x6a0] sm:$0xff]  ;;  %v679_v42 = vld [vmem:[#allocation2 + $0x78] sm:$0x3]  ;;  %v750_v46 = vrot.slane %v677_v41, 2  ;;  %v678_v48 = vld [vmem:[#allocation2 + $0x70] sm:$0x3] }
 0x16e   : > { %2484 = vmatprep.mubr.f32.mxu1 %v746_v33  ;;  %2936 = vmatprep.mubr.f32.mxu0 %v7757_v25  ;;  %v676_v43 = vld [vmem:[#allocation2 + $0x60] sm:$0xfc]  ;;  %v751_v47 = vrot.slane %v679_v42, 2  ;;  %v2064_v52 = vld [vmem:[#allocation8 + $0xeb0] sm:$0xff]  ;;  %v1811_v53 = vld [vmem:[#allocation8 + $0x6c8] sm:$0xff]  ;;  %v748_v54 = vrot.slane %v678_v48, 2  ;;  %v6078_v4 = vpack.c.bf16 %v7766_v40, %v7764_v39 }
 0x16f   : > { %6067 = vmatpush1.bf16.msra.mxu1 %v6066_v62  ;;  %v7770_v45 = vld [vmem:[#allocation8 + $0xea0] sm:$0xff]  ;;  %2937 = vmatmul.mubr.f32.gmra.mrb[4].mxu0 %v7762_v38  ;;  %v747_v49 = vrot.slane %v676_v43, 2  ;;  %v7773_v55 = vld [vmem:[#allocation2 + $0xa8] sm:$0xff]  ;;  %v1813_v57 = vld [vmem:[#allocation8 + $0x6d8] sm:$0xff] }
 0x170   : > { %6323 = vmatpush1.bf16.msra.mxu0 %v6322_v6  ;;  %6069 = vmatprep.subr.bf16.mxu1 %v6068_v7  ;;  %v2067_v58 = vld [vmem:[#allocation8 + $0xec8] sm:$0xff]  ;;  %v2069_v59 = vld [vmem:[#allocation8 + $0xed8] sm:$0xff]  ;;  %v752_v60 = vsel %vm728_vm1, %v750_v46, %v751_v47  ;;  %v7777_v62 = vld [vmem:[#allocation8 + $0x6c0] sm:$0xff]  ;;  %v6334_v5 = vpack.c.bf16 %v2064_v52, %v7770_v45 }
 0x171   : > { %6325 = vmatprep.subr.bf16.mxu0 %v6324_v12  ;;  %2485 = vmatmul.mubr.f32.gmra.mrb[4].mxu1 %v743_v37  ;;  %v7779_v0 = vld [vmem:[#allocation8 + $0x6d0] sm:$0xff]  ;;  %v749_v63 = vsel %vm728_vm1, %v747_v49, %v748_v54  ;;  %v7782_v3 = vld [vmem:[#allocation2 + $0xa0] sm:$0xff]  ;;  %v681_v8 = vld [vmem:[#allocation2 + $0x88] sm:$0xfc]  ;;  %v6080_v12 = vpack.c.bf16 %v1813_v57, %v1811_v53  ;;  %v6336_v18 = vpack.c.bf16 %v2069_v59, %v2067_v58 }
 0x172   : > { %2942 = vmatprep.mubr.f32.mxu0 %v7773_v55  ;;  %2490 = vmatprep.mubr.f32.mxu1 %v752_v60  ;;  %v7787_v6 = vld [vmem:[#allocation8 + $0xec0] sm:$0xff]  ;;  %v7789_v7 = vld [vmem:[#allocation8 + $0xed0] sm:$0xff]  ;;  %v683_v9 = vld [vmem:[#allocation2 + $0x98] sm:$0x3]  ;;  %v756_v14 = vrot.slane %v681_v8, 2  ;;  %v6082_v30 = vpack.c.bf16 %v7779_v0, %v7777_v62 }
 0x173   : > { %6071 = vmatpush1.bf16.msra.mxu1 %v6070_v21  ;;  %2943 = vmatmul.mubr.f32.gmra.mrb[6].mxu0 %v7782_v3  ;;  %v680_v10 = vld [vmem:[#allocation2 + $0x80] sm:$0xfc]  ;;  %v1815_v13 = vld [vmem:[#allocation8 + $0x6e8] sm:$0xff]  ;;  %v757_v15 = vrot.slane %v683_v9, 2  ;;  %v682_v16 = vld [vmem:[#allocation2 + $0x90] sm:$0x3]  ;;  %v6338_v37 = vpack.c.bf16 %v7789_v7, %v7787_v6 }
 0x174   : > { %6327 = vmatpush1.bf16.msra.mxu0 %v6326_v28  ;;  %6073 = vmatprep.subr.bf16.mxu1 %v6072_v29  ;;  %v753_v17 = vrot.slane %v680_v10, 2  ;;  %v1817_v19 = vld [vmem:[#allocation8 + $0x6f8] sm:$0xff]  ;;  %v2071_v20 = vld [vmem:[#allocation8 + $0xee8] sm:$0xff]  ;;  %v754_v21 = vrot.slane %v682_v16, 2  ;;  %v7794_v24 = vld [vmem:[#allocation8 + $0x6e0] sm:$0xff] }
 0x175   : > { %6329 = vmatprep.subr.bf16.mxu0 %v6328_v34  ;;  %2491 = vmatmul.mubr.f32.gmra.mrb[6].mxu1 %v749_v63  ;;  %v7792_v22 = vld [vmem:[#allocation2 + $0xc8] sm:$0xff]  ;;  %v2073_v23 = vld [vmem:[#allocation8 + $0xef8] sm:$0xff]  ;;  %v1816_v28 = vld [vmem:[#allocation8 + $0x6f0] sm:$0xff]  ;;  %v758_v29 = vsel %vm728_vm1, %v756_v14, %v757_v15  ;;  %v6084_v39 = vpack.c.bf16 %v1817_v19, %v1815_v13 }
 0x176   : > { %2948 = vmatprep.mubr.f32.mxu0 %v7792_v22  ;;  %v7800_v31 = vld [vmem:[#allocation8 + $0xee0] sm:$0xff]  ;;  %v2072_v32 = vld [vmem:[#allocation8 + $0xef0] sm:$0xff]  ;;  %v1819_v33 = vld [vmem:[#allocation8 + $0x708] sm:$0xff]  ;;  %2496 = vmatprep.mubr.f32.mxu1 %v758_v29  ;;  %v755_v35 = vsel %vm728_vm1, %v753_v17, %v754_v21  ;;  %v6086_v54 = vpack.c.bf16 %v1816_v28, %v7794_v24 }
 0x177   : > { %6075 = vmatpush1.bf16.msra.mxu1 %v6074_v44  ;;  %v1821_v34 = vld [vmem:[#allocation8 + $0x718] sm:$0xff]  ;;  %v7803_v36 = vld [vmem:[#allocation2 + $0xc0] sm:$0xff]  ;;  %v2075_v40 = vld [vmem:[#allocation8 + $0xf08] sm:$0xff]  ;;  %v6340_v44 = vpack.c.bf16 %v2073_v23, %v2071_v20  ;;  %v6342_v62 = vpack.c.bf16 %v2072_v32, %v7800_v31 }
 0x178   : > { %6331 = vmatpush1.bf16.msra.mxu0 %v6330_v50  ;;  %6077 = vmatprep.subr.bf16.mxu1 %v6076_v51  ;;  %v685_v41 = vld [vmem:[#allocation2 + $0xa8] sm:$0xfc]  ;;  %v687_v42 = vld [vmem:[#allocation2 + $0xb8] sm:$0x3]  ;;  %v684_v43 = vld [vmem:[#allocation2 + $0xa0] sm:$0xfc]  ;;  %v6088_v0 = vpack.c.bf16 %v1821_v34, %v1819_v33 }
 0x179   : > { %6333 = vmatprep.subr.bf16.mxu0 %v6332_v56  ;;  %v2077_v45 = vld [vmem:[#allocation8 + $0xf18] sm:$0xff]  ;;  %2497 = vmatmul.mubr.f32.gmra.mrb[8].mxu1 %v755_v35  ;;  %v762_v46 = vrot.slane %v685_v41, 2  ;;  %v763_v47 = vrot.slane %v687_v42, 2  ;;  %v686_v48 = vld [vmem:[#allocation2 + $0xb0] sm:$0x3]  ;;  %v759_v49 = vrot.slane %v684_v43, 2 }
 0x17a   : > { %v1818_v50 = vld [vmem:[#allocation8 + $0x700] sm:$0xff]  ;;  %v1820_v51 = vld [vmem:[#allocation8 + $0x710] sm:$0xff]  ;;  %2949 = vmatmul.mubr.f32.gmra.mrb[8].mxu0 %v7803_v36  ;;  %v760_v52 = vrot.slane %v686_v48, 2  ;;  %v7808_v53 = vld [vmem:[#allocation2 + $0xe8] sm:$0xff]  ;;  %v6344_v7 = vpack.c.bf16 %v2077_v45, %v2075_v40 }
 0x17b   : > { %6079 = vmatpush1.bf16.msra.mxu1 %v6078_v4  ;;  %v2074_v56 = vld [vmem:[#allocation8 + $0xf00] sm:$0xff]  ;;  %v2076_v57 = vld [vmem:[#allocation8 + $0xf10] sm:$0xff]  ;;  %v1823_v58 = vld [vmem:[#allocation8 + $0x728] sm:$0xff]  ;;  %v764_v60 = vsel %vm728_vm1, %v762_v46, %v763_v47  ;;  %2954 = vmatprep.mubr.f32.mxu0 %v7808_v53  ;;  %v6090_v17 = vpack.c.bf16 %v1820_v51, %v1818_v50 }
 0x17c   : > { %6335 = vmatpush1.bf16.msra.mxu0 %v6334_v5  ;;  %6081 = vmatprep.subr.bf16.mxu1 %v6080_v12  ;;  %v1825_v59 = vld [vmem:[#allocation8 + $0x738] sm:$0xff]  ;;  %v2079_v63 = vld [vmem:[#allocation8 + $0xf28] sm:$0xff]  ;;  %v761_v5 = vsel %vm728_vm1, %v759_v49, %v760_v52  ;;  %v7815_v6 = vld [vmem:[#allocation2 + $0xe0] sm:$0xff]  ;;  %v6346_v23 = vpack.c.bf16 %v2076_v57, %v2074_v56 }
 0x17d   : > { %6337 = vmatprep.subr.bf16.mxu0 %v6336_v18  ;;  %v2081_v4 = vld [vmem:[#allocation8 + $0xf38] sm:$0xff]  ;;  %2502 = vmatprep.mubr.f32.mxu1 %v764_v60  ;;  %v689_v8 = vld [vmem:[#allocation2 + $0xc8] sm:$0xfc]  ;;  %v688_v10 = vld [vmem:[#allocation2 + $0xc0] sm:$0xfc]  ;;  %v6092_v24 = vpack.c.bf16 %v1825_v59, %v1823_v58 }
 0x17e   : > { %v691_v9 = vld [vmem:[#allocation2 + $0xd8] sm:$0x3]  ;;  %v1822_v12 = vld [vmem:[#allocation8 + $0x720] sm:$0xff]  ;;  %2503 = vmatmul.mubr.f32.gmra.mrb[10].mxu1 %v761_v5  ;;  %2955 = vmatmul.mubr.f32.gmra.mrb[10].mxu0 %v7815_v6  ;;  %v768_v13 = vrot.slane %v689_v8, 2  ;;  %v690_v15 = vld [vmem:[#allocation2 + $0xd0] sm:$0x3]  ;;  %v6348_v32 = vpack.c.bf16 %v2081_v4, %v2079_v63 }
 0x17f   : > { %6083 = vmatpush1.bf16.msra.mxu1 %v6082_v30  ;;  %v769_v14 = vrot.slane %v691_v9, 2  ;;  %v765_v16 = vrot.slane %v688_v10, 2  ;;  %v1824_v18 = vld [vmem:[#allocation8 + $0x730] sm:$0xff]  ;;  %v2078_v19 = vld [vmem:[#allocation8 + $0xf20] sm:$0xff]  ;;  %v766_v20 = vrot.slane %v690_v15, 2  ;;  %v7818_v21 = vld [vmem:[#allocation2 + $0x108] sm:$0xff] }
 0x180   : > { %6339 = vmatpush1.bf16.msra.mxu0 %v6338_v37  ;;  %6085 = vmatprep.subr.bf16.mxu1 %v6084_v39  ;;  %v2080_v28 = vld [vmem:[#allocation8 + $0xf30] sm:$0xff]  ;;  %v1827_v29 = vld [vmem:[#allocation8 + $0x748] sm:$0xff]  ;;  %v1829_v30 = vld [vmem:[#allocation8 + $0x758] sm:$0xff]  ;;  %v6094_v42 = vpack.c.bf16 %v1824_v18, %v1822_v12 }
 0x181   : > { %6341 = vmatprep.subr.bf16.mxu0 %v6340_v44  ;;  %v770_v31 = vsel %vm728_vm1, %v768_v13, %v769_v14  ;;  %v2083_v33 = vld [vmem:[#allocation8 + $0xf48] sm:$0xff]  ;;  %v2085_v34 = vld [vmem:[#allocation8 + $0xf58] sm:$0xff]  ;;  %v767_v35 = vsel %vm728_vm1, %v765_v16, %v766_v20  ;;  %v7822_v37 = vld [vmem:[#allocation2 + $0x100] sm:$0xff]  ;;  %2960 = vmatprep.mubr.f32.mxu0 %v7818_v21  ;;  %v6350_v47 = vpack.c.bf16 %v2080_v28, %v2078_v19 }
 0x182   : > { %2508 = vmatprep.mubr.f32.mxu1 %v770_v31  ;;  %v693_v39 = vld [vmem:[#allocation2 + $0xe8] sm:$0xfc]  ;;  %v695_v40 = vld [vmem:[#allocation2 + $0xf8] sm:$0x3]  ;;  %v692_v41 = vld [vmem:[#allocation2 + $0xe0] sm:$0xfc]  ;;  %2961 = vmatmul.mubr.f32.gmra.mrb[12].mxu0 %v7822_v37  ;;  %v6096_v48 = vpack.c.bf16 %v1829_v30, %v1827_v29 }
 0x183   : > { %6087 = vmatpush1.bf16.msra.mxu1 %v6086_v54  ;;  %v774_v43 = vrot.slane %v693_v39, 2  ;;  %v775_v44 = vrot.slane %v695_v40, 2  ;;  %v694_v45 = vld [vmem:[#allocation2 + $0xf0] sm:$0x3]  ;;  %v771_v46 = vrot.slane %v692_v41, 2  ;;  %v1826_v49 = vld [vmem:[#allocation8 + $0x740] sm:$0xff]  ;;  %v6352_v54 = vpack.c.bf16 %v2085_v34, %v2083_v33 }
 0x184   : > { %6343 = vmatpush1.bf16.msra.mxu0 %v6342_v62  ;;  %6089 = vmatprep.subr.bf16.mxu1 %v6088_v0  ;;  %v1828_v50 = vld [vmem:[#allocation8 + $0x750] sm:$0xff]  ;;  %v2082_v51 = vld [vmem:[#allocation8 + $0xf40] sm:$0xff]  ;;  %v772_v52 = vrot.slane %v694_v45, 2  ;;  %v1831_v57 = vld [vmem:[#allocation8 + $0x768] sm:$0xff] }
 0x185   : > { %6345 = vmatprep.subr.bf16.mxu0 %v6344_v7  ;;  %2509 = vmatmul.mubr.f32.gmra.mrb[12].mxu1 %v767_v35  ;;  %v2084_v56 = vld [vmem:[#allocation8 + $0xf50] sm:$0xff]  ;;  %v1833_v58 = vld [vmem:[#allocation8 + $0x778] sm:$0xff]  ;;  %v776_v59 = vsel %vm728_vm1, %v774_v43, %v775_v44  ;;  %v7827_v60 = vld [vmem:[#allocation2 + $0x8] sm:$0xff]  ;;  %v6098_v4 = vpack.c.bf16 %v1828_v50, %v1826_v49 }
 0x186   : > { %2966 = vmatprep.mubr.f32.mxu0 %v7827_v60  ;;  %v2087_v62 = vld [vmem:[#allocation8 + $0xf68] sm:$0xff]  ;;  %v2089_v0 = vld [vmem:[#allocation8 + $0xf78] sm:$0xff]  ;;  %2514 = vmatprep.mubr.f32.mxu1 %v776_v59  ;;  %v773_v63 = vsel %vm728_vm1, %v771_v46, %v772_v52  ;;  %v6354_v9 = vpack.c.bf16 %v2084_v56, %v2082_v51  ;;  %v6100_v10 = vpack.c.bf16 %v1833_v58, %v1831_v57  ;;  %v1830_v12 = vld [vmem:[#allocation8 + $0x760] sm:$0xff] }
 0x187   : > { %6091 = vmatpush1.bf16.msra.mxu1 %v6090_v17  ;;  %2967 = vmatmul.mubr.f32.gmra.mrb[14].mxu0 %v7827_v60  ;;  %v810_v5 = vld [vmem:[#allocation2 + $0x28] sm:$0xff]  ;;  %v1165_v8 = vld [vmem:[#allocation2 + $0x58] sm:$0x1]  ;;  %v1832_v13 = vld [vmem:[#allocation8 + $0x770] sm:$0xff]  ;;  %v6356_v17 = vpack.c.bf16 %v2089_v0, %v2087_v62 }
 0x188   : > { %6347 = vmatpush1.bf16.msra.mxu0 %v6346_v23  ;;  %6093 = vmatprep.subr.bf16.mxu1 %v6092_v24  ;;  %v1163_v7 = vld [vmem:[#allocation2 + $0x48] sm:$0xfe]  ;;  %v2086_v14 = vld [vmem:[#allocation8 + $0xf60] sm:$0xff]  ;;  %v1230_v16 = vrot.slane %v1165_v8, 1  ;;  %v2088_v18 = vld [vmem:[#allocation8 + $0xf70] sm:$0xff]  ;;  %v6102_v29 = vpack.c.bf16 %v1832_v13, %v1830_v12 }
 0x189   : > { %6349 = vmatprep.subr.bf16.mxu0 %v6348_v32  ;;  %v1229_v15 = vrot.slane %v1163_v7, 1  ;;  %v1835_v19 = vld [vmem:[#allocation8 + $0x788] sm:$0xff]  ;;  %v1837_v20 = vld [vmem:[#allocation8 + $0x798] sm:$0xff]  ;;  %2515 = vmatmul.mubr.f32.gmra.mrb[14].mxu1 %v773_v63  ;;  %v6358_v30 = vpack.c.bf16 %v2088_v18, %v2086_v14  ;;  %v1834_v32 = vld [vmem:[#allocation8 + $0x780] sm:$0xff] }
 0x18a   : > { %v2091_v23 = vld [vmem:[#allocation8 + $0xf88] sm:$0xff]  ;;  %v2093_v24 = vld [vmem:[#allocation8 + $0xf98] sm:$0xff]  ;;  %2585 = vmatprep.mubr.f32.mxu1 %v810_v5  ;;  %v6104_v31 = vpack.c.bf16 %v1837_v20, %v1835_v19  ;;  %v1836_v33 = vld [vmem:[#allocation8 + $0x790] sm:$0xff] }
 0x18b   : > { %6095 = vmatpush1.bf16.msra.mxu1 %v6094_v42  ;;  %v1231_v28 = vsel %vm583_vm0, %v1229_v15, %v1230_v16  ;;  %v2090_v34 = vld [vmem:[#allocation8 + $0xf80] sm:$0xff]  ;;  %v6360_v35 = vpack.c.bf16 %v2093_v24, %v2091_v23  ;;  %v2092_v39 = vld [vmem:[#allocation8 + $0xf90] sm:$0xff]  ;;  %v1839_v40 = vld [vmem:[#allocation8 + $0x7a8] sm:$0xff]  ;;  %v6106_v44 = vpack.c.bf16 %v1836_v33, %v1834_v32 }
 0x18c   : > { %6351 = vmatpush1.bf16.msra.mxu0 %v6350_v47  ;;  %6097 = vmatprep.subr.bf16.mxu1 %v6096_v48  ;;  %v1841_v41 = vld [vmem:[#allocation8 + $0x7b8] sm:$0xff]  ;;  %v2095_v42 = vld [vmem:[#allocation8 + $0xfa8] sm:$0xff]  ;;  %v6362_v45 = vpack.c.bf16 %v2092_v39, %v2090_v34  ;;  %v1838_v47 = vld [vmem:[#allocation8 + $0x7a0] sm:$0xff] }
 0x18d   : > { %6353 = vmatprep.subr.bf16.mxu0 %v6352_v54  ;;  %3037 = vmatprep.mubr.f32.mxu0 %v1231_v28  ;;  %v2097_v43 = vld [vmem:[#allocation8 + $0xfb8] sm:$0xff]  ;;  %v6108_v46 = vpack.c.bf16 %v1841_v41, %v1839_v40  ;;  %v1840_v48 = vld [vmem:[#allocation8 + $0x7b0] sm:$0xff]  ;;  %v2094_v49 = vld [vmem:[#allocation8 + $0xfa0] sm:$0xff] }
 0x18e   : > { %v6364_v50 = vpack.c.bf16 %v2097_v43, %v2095_v42  ;;  %v2096_v51 = vld [vmem:[#allocation8 + $0xfb0] sm:$0xff]  ;;  %v1843_v52 = vld [vmem:[#allocation8 + $0x7c8] sm:$0xff]  ;;  %v1845_v54 = vld [vmem:[#allocation8 + $0x7d8] sm:$0xff]  ;;  %v6110_v58 = vpack.c.bf16 %v1840_v48, %v1838_v47 }
 0x18f   : > { %6099 = vmatpush1.bf16.msra.mxu1 %v6098_v4  ;;  %v2099_v56 = vld [vmem:[#allocation8 + $0xfc8] sm:$0xff]  ;;  %v2101_v57 = vld [vmem:[#allocation8 + $0xfd8] sm:$0xff]  ;;  %v6366_v59 = vpack.c.bf16 %v2096_v51, %v2094_v49  ;;  %v6112_v62 = vpack.c.bf16 %v1845_v54, %v1843_v52  ;;  %v1842_v0 = vld [vmem:[#allocation8 + $0x7c0] sm:$0xff] }
 0x190   : > { %6355 = vmatpush1.bf16.msra.mxu0 %v6354_v9  ;;  %6101 = vmatprep.subr.bf16.mxu1 %v6100_v10  ;;  %v1844_v63 = vld [vmem:[#allocation8 + $0x7d0] sm:$0xff]  ;;  %v2098_v4 = vld [vmem:[#allocation8 + $0xfc0] sm:$0xff]  ;;  %v6368_v5 = vpack.c.bf16 %v2101_v57, %v2099_v56  ;;  %v1847_v8 = vld [vmem:[#allocation8 + $0x7e8] sm:$0xff] }
 0x191   : > { %6357 = vmatprep.subr.bf16.mxu0 %v6356_v17  ;;  %v2100_v7 = vld [vmem:[#allocation8 + $0xfd0] sm:$0xff]  ;;  %v1849_v9 = vld [vmem:[#allocation8 + $0x7f8] sm:$0xff]  ;;  %v2103_v10 = vld [vmem:[#allocation8 + $0xfe8] sm:$0xff]  ;;  %v6114_v13 = vpack.c.bf16 %v1844_v63, %v1842_v0 }
 0x192   : > { %v2105_v12 = vld [vmem:[#allocation8 + $0xff8] sm:$0xff]  ;;  %v1846_v14 = vld [vmem:[#allocation8 + $0x7e0] sm:$0xff]  ;;  %v6370_v15 = vpack.c.bf16 %v2100_v7, %v2098_v4  ;;  %v6116_v16 = vpack.c.bf16 %v1849_v9, %v1847_v8  ;;  %v1848_v17 = vld [vmem:[#allocation8 + $0x7f0] sm:$0xff] }
 0x193   : > { %6103 = vmatpush1.bf16.msra.mxu1 %v6102_v29  ;;  %v2102_v18 = vld [vmem:[#allocation8 + $0xfe0] sm:$0xff]  ;;  %v2104_v19 = vld [vmem:[#allocation8 + $0xff0] sm:$0xff]  ;;  %v6372_v20 = vpack.c.bf16 %v2105_v12, %v2103_v10  ;;  %v2107_v23 = vld [vmem:[#allocation8 + $0x1008] sm:$0xff]  ;;  %v6118_v32 = vpack.c.bf16 %v1848_v17, %v1846_v14 }
 0x194   : > { %6359 = vmatpush1.bf16.msra.mxu0 %v6358_v30  ;;  %6105 = vmatprep.subr.bf16.mxu1 %v6104_v31  ;;  %v1162_v24 = vld [vmem:[#allocation2 + $0x40] sm:$0xfe]  ;;  %v1164_v28 = vld [vmem:[#allocation2 + $0x50] sm:$0x1]  ;;  %v2109_v29 = vld [vmem:[#allocation8 + $0x1018] sm:$0xff]  ;;  %v6374_v33 = vpack.c.bf16 %v2104_v19, %v2102_v18 }
 0x195   : > { %6361 = vmatprep.subr.bf16.mxu0 %v6360_v35  ;;  %v1167_v30 = vld [vmem:[#allocation2 + $0x68] sm:$0xfe]  ;;  %v1169_v31 = vld [vmem:[#allocation2 + $0x78] sm:$0x1]  ;;  %v1226_v34 = vrot.slane %v1162_v24, 1  ;;  %v1227_v35 = vrot.slane %v1164_v28, 1  ;;  %v6376_v42 = vpack.c.bf16 %v2109_v29, %v2107_v23 }
 0x196   : > { %v2106_v39 = vld [vmem:[#allocation8 + $0x1000] sm:$0xff]  ;;  %v2108_v40 = vld [vmem:[#allocation8 + $0x1010] sm:$0xff]  ;;  %v2111_v41 = vld [vmem:[#allocation8 + $0x1028] sm:$0xff]  ;;  %v1235_v43 = vrot.slane %v1167_v30, 1 }
 0x197   : > { %6107 = vmatpush1.bf16.msra.mxu1 %v6106_v44  ;;  %v1236_v44 = vrot.slane %v1169_v31, 1  ;;  %v2113_v47 = vld [vmem:[#allocation8 + $0x1038] sm:$0xff]  ;;  %v1171_v48 = vld [vmem:[#allocation2 + $0x88] sm:$0xfe]  ;;  %v1228_v51 = vsel %vm583_vm0, %v1226_v34, %v1227_v35  ;;  %v6378_v52 = vpack.c.bf16 %v2108_v40, %v2106_v39  ;;  %v2110_v54 = vld [vmem:[#allocation8 + $0x1020] sm:$0xff] }
 0x198   : > { %6363 = vmatpush1.bf16.msra.mxu0 %v6362_v45  ;;  %6109 = vmatprep.subr.bf16.mxu1 %v6108_v46  ;;  %v1166_v45 = vld [vmem:[#allocation2 + $0x60] sm:$0xfe]  ;;  %v1168_v46 = vld [vmem:[#allocation2 + $0x70] sm:$0x1]  ;;  %v1173_v49 = vld [vmem:[#allocation2 + $0x98] sm:$0x1] }
 0x199   : > { %6365 = vmatprep.subr.bf16.mxu0 %v6364_v50  ;;  %v809_v50 = vld [vmem:[#allocation2 + $0x20] sm:$0xff]  ;;  %v2112_v56 = vld [vmem:[#allocation8 + $0x1030] sm:$0xff]  ;;  %v2115_v57 = vld [vmem:[#allocation8 + $0x1048] sm:$0xff]  ;;  %v1237_v0 = vsel %vm583_vm0, %v1235_v43, %v1236_v44  ;;  %v1241_v63 = vrot.slane %v1171_v48, 1  ;;  %v1242_v4 = vrot.slane %v1173_v49, 1 }
 0x19a   : > { %v1172_v7 = vld [vmem:[#allocation2 + $0x90] sm:$0x1]  ;;  %v2117_v8 = vld [vmem:[#allocation8 + $0x1058] sm:$0xff]  ;;  %v1175_v9 = vld [vmem:[#allocation2 + $0xa8] sm:$0xfe]  ;;  %v6382_v12 = vpack.c.bf16 %v2112_v56, %v2110_v54 }
 0x19b   : > { %6111 = vmatpush1.bf16.msra.mxu1 %v6110_v58  ;;  %v1232_v58 = vrot.slane %v1166_v45, 1  ;;  %v1177_v10 = vld [vmem:[#allocation2 + $0xb8] sm:$0x1]  ;;  %v2116_v14 = vld [vmem:[#allocation8 + $0x1050] sm:$0xff]  ;;  %v1239_v18 = vrot.slane %v1172_v7, 1  ;;  %v6384_v19 = vpack.c.bf16 %v2117_v8, %v2115_v57  ;;  %v1247_v23 = vrot.slane %v1175_v9, 1 }
 0x19c   : > { %6367 = vmatpush1.bf16.msra.mxu0 %v6366_v59  ;;  %6113 = vmatprep.subr.bf16.mxu1 %v6112_v62  ;;  %v1233_v59 = vrot.slane %v1168_v46, 1  ;;  %v6380_v62 = vpack.c.bf16 %v2113_v47, %v2111_v41  ;;  %v1248_v24 = vrot.slane %v1177_v10, 1  ;;  %v1174_v28 = vld [vmem:[#allocation2 + $0xa0] sm:$0xfe]  ;;  %v1176_v29 = vld [vmem:[#allocation2 + $0xb0] sm:$0x1] }
 0x19d   : > { %6369 = vmatprep.subr.bf16.mxu0 %v6368_v5  ;;  %v1170_v5 = vld [vmem:[#allocation2 + $0x80] sm:$0xfe]  ;;  %v1179_v30 = vld [vmem:[#allocation2 + $0xc8] sm:$0xfe]  ;;  %v1181_v31 = vld [vmem:[#allocation2 + $0xd8] sm:$0x1] }
 0x19e   : > { %v1238_v17 = vrot.slane %v1170_v5, 1  ;;  %v2120_v34 = vld [vmem:[#allocation8 + $0x1070] sm:$0xff]  ;;  %v2123_v35 = vld [vmem:[#allocation8 + $0x1088] sm:$0xff]  ;;  %v1244_v40 = vrot.slane %v1174_v28, 1  ;;  %v1245_v41 = vrot.slane %v1176_v29, 1  ;;  %v1253_v43 = vrot.slane %v1179_v30, 1 }
 0x19f   : > { %6115 = vmatpush1.bf16.msra.mxu1 %v6114_v13  ;;  %v2114_v13 = vld [vmem:[#allocation8 + $0x1040] sm:$0xff]  ;;  %v1254_v44 = vrot.slane %v1181_v31, 1  ;;  %v1180_v46 = vld [vmem:[#allocation2 + $0xd0] sm:$0x1]  ;;  %v1183_v47 = vld [vmem:[#allocation2 + $0xe8] sm:$0xfe] }
 0x1a0   : > { %6371 = vmatpush1.bf16.msra.mxu0 %v6370_v15  ;;  %6117 = vmatprep.subr.bf16.mxu1 %v6116_v16  ;;  %v2119_v15 = vld [vmem:[#allocation8 + $0x1068] sm:$0xff]  ;;  %v1234_v16 = vsel %vm583_vm0, %v1232_v58, %v1233_v59  ;;  %v1240_v39 = vsel %vm583_vm0, %v1238_v17, %v1239_v18  ;;  %v1178_v45 = vld [vmem:[#allocation2 + $0xc0] sm:$0xfe]  ;;  %v1185_v48 = vld [vmem:[#allocation2 + $0xf8] sm:$0x1]  ;;  %v1246_v54 = vsel %vm583_vm0, %v1244_v40, %v1245_v41  ;;  %v1251_v57 = vrot.slane %v1180_v46, 1 }
 0x1a1   : > { %6373 = vmatprep.subr.bf16.mxu0 %v6372_v20  ;;  %v1243_v20 = vsel %vm583_vm0, %v1241_v63, %v1242_v4  ;;  %v1250_v56 = vrot.slane %v1178_v45, 1  ;;  %v1259_v59 = vrot.slane %v1183_v47, 1  ;;  %v1184_v63 = vld [vmem:[#allocation2 + $0xf0] sm:$0x1]  ;;  %v1187_v4 = vld [vmem:[#allocation2 + $0x108] sm:$0xfe] }
 0x1a2   : > { %v1189_v5 = vld [vmem:[#allocation2 + $0x118] sm:$0x1]  ;;  %v2126_v8 = vld [vmem:[#allocation8 + $0x10a0] sm:$0xff]  ;;  %v2128_v9 = vld [vmem:[#allocation8 + $0x10b0] sm:$0xff] }
 0x1a3   : > { %6119 = vmatpush1.bf16.msra.mxu1 %v6118_v32  ;;  %v6386_v32 = vpack.c.bf16 %v2116_v14, %v2114_v13  ;;  %v2131_v10 = vld [vmem:[#allocation8 + $0x10c8] sm:$0xff]  ;;  %v1257_v14 = vrot.slane %v1184_v63, 1  ;;  %v1266_v17 = vrot.slane %v1189_v5, 1  ;;  %v1186_v18 = vld [vmem:[#allocation2 + $0x100] sm:$0xfe]  ;;  %v2132_v29 = vld [vmem:[#allocation8 + $0x10d0] sm:$0xff] }
 0x1a4   : > { %6375 = vmatpush1.bf16.msra.mxu0 %v6374_v33  ;;  %v2118_v33 = vld [vmem:[#allocation8 + $0x1060] sm:$0xff]  ;;  %v1262_v31 = vrot.slane %v1186_v18, 1  ;;  %v1192_v40 = vld [vmem:[#allocation2 + $0x130] sm:$0x1]  ;;  %v1307_v41 = vld [vmem:[#allocation2 + $0x48] sm:$0xfc] }
 0x1a5   : > { %6377 = vmatprep.subr.bf16.mxu0 %v6376_v42  ;;  %v6390_v49 = vpack.c.bf16 %v2120_v34, %v2118_v33  ;;  %v2130_v28 = vld [vmem:[#allocation8 + $0x10c0] sm:$0xff]  ;;  %v1269_v45 = vrot.slane %v1192_v40, 1  ;;  %v2136_v47 = vld [vmem:[#allocation8 + $0x10f0] sm:$0xff]  ;;  %v2147_v63 = vld [vmem:[#allocation8 + $0x1148] sm:$0xff] }
 0x1a6   : > { %2586 = vmatmul.mubr.f32.vlgmr.msra.gmra.mrb[0].mxu1 %v809_v50  ;;  %v2122_v50 = vld [vmem:[#allocation8 + $0x1080] sm:$0xff]  ;;  %v2156_v18 = vld [vmem:[#allocation8 + $0x1190] sm:$0xff] }
 0x1a7   : > { %3038 = vmatmul.mubr.f32.vlgmr.msra.gmra.mrb[0].mxu0 %v1228_v51  ;;  %2591 = vmatprep.mubr.f32.mxu1 %v7737_v26  ;;  %v2121_v26 = vld [vmem:[#allocation8 + $0x1078] sm:$0xff]  ;;  %v2124_v51 = vld [vmem:[#allocation8 + $0x1090] sm:$0xff] }
 0x1a8   : > { %6379 = vmatpush1.bf16.msra.mxu0 %v6378_v52  ;;  %3043 = vmatprep.mubr.f32.mxu0 %v1237_v0  ;;  %v6388_v42 = vpack.c.bf16 %v2121_v26, %v2119_v15  ;;  %v2127_v52 = vld [vmem:[#allocation8 + $0x10a8] sm:$0xff]  ;;  %v1182_v0 = vld [vmem:[#allocation2 + $0xe0] sm:$0xfe]  ;;  %v6394_v7 = vpack.c.bf16 %v2124_v51, %v2122_v50 }
 0x1a9   : > { %6381 = vmatprep.subr.bf16.mxu0 %v6380_v62  ;;  %v1260_v62 = vrot.slane %v1185_v48, 1  ;;  %v1256_v13 = vrot.slane %v1182_v0, 1  ;;  %v2135_v26 = vld [vmem:[#allocation8 + $0x10e8] sm:$0xff]  ;;  %v2144_v0 = vld [vmem:[#allocation8 + $0x1130] sm:$0xff] }
 0x1aa   : > { %2592 = vmatmul.mubr.f32.gmra.mrb[2].mxu1 %v7742_v27  ;;  %v1249_v27 = vsel %vm583_vm0, %v1247_v23, %v1248_v24  ;;  %v1193_v23 = vld [vmem:[#allocation2 + $0x138] sm:$0x1]  ;;  %v6398_v24 = vpack.c.bf16 %v2128_v9, %v2126_v8  ;;  %v2139_v50 = vld [vmem:[#allocation8 + $0x1108] sm:$0xff] }
 0x1ab   : > { %2597 = vmatprep.mubr.f32.mxu1 %v7745_v61  ;;  %3044 = vmatmul.mubr.f32.gmra.mrb[2].mxu0 %v1234_v16  ;;  %v2125_v61 = vld [vmem:[#allocation8 + $0x1098] sm:$0xff]  ;;  %v1265_v16 = vrot.slane %v1187_v4, 1  ;;  %v1258_v30 = vsel %vm583_vm0, %v1256_v13, %v1257_v14  ;;  %v2151_v8 = vld [vmem:[#allocation8 + $0x1168] sm:$0xff]  ;;  %v2152_v13 = vld [vmem:[#allocation8 + $0x1170] sm:$0xff] }
 0x1ac   : > { %6383 = vmatpush1.bf16.msra.mxu0 %v6382_v12  ;;  %3049 = vmatprep.mubr.f32.mxu0 %v1243_v20  ;;  %v6392_v58 = vpack.c.bf16 %v2125_v61, %v2123_v35  ;;  %v1252_v12 = vsel %vm583_vm0, %v1250_v56, %v1251_v57  ;;  %v1191_v20 = vld [vmem:[#allocation2 + $0x128] sm:$0xfe]  ;;  %v1272_v35 = vrot.slane %v1193_v23, 1  ;;  %v2134_v61 = vld [vmem:[#allocation8 + $0x10e0] sm:$0xff]  ;;  %v2140_v57 = vld [vmem:[#allocation8 + $0x1110] sm:$0xff] }
 0x1ad   : > { %6385 = vmatprep.subr.bf16.mxu0 %v6384_v19  ;;  %v1188_v19 = vld [vmem:[#allocation2 + $0x110] sm:$0x1]  ;;  %v1271_v34 = vrot.slane %v1191_v20, 1  ;;  %v6406_v51 = vpack.c.bf16 %v2136_v47, %v2134_v61  ;;  %v2138_v56 = vld [vmem:[#allocation8 + $0x1100] sm:$0xff]  ;;  %v2153_v9 = vld [vmem:[#allocation8 + $0x1178] sm:$0xff] }
 0x1ae   : > { %2598 = vmatmul.mubr.f32.gmra.mrb[4].mxu1 %v7752_v11  ;;  %v1255_v11 = vsel %vm583_vm0, %v1253_v43, %v1254_v44  ;;  %v2155_v14 = vld [vmem:[#allocation8 + $0x1188] sm:$0xff] }
 0x1af   : > { %2603 = vmatprep.mubr.f32.mxu1 %v7757_v25  ;;  %3050 = vmatmul.mubr.f32.gmra.mrb[4].mxu0 %v1240_v39  ;;  %v2129_v25 = vld [vmem:[#allocation8 + $0x10b8] sm:$0xff]  ;;  %v1190_v39 = vld [vmem:[#allocation2 + $0x120] sm:$0xfe]  ;;  %v1273_v48 = vsel %vm583_vm0, %v1271_v34, %v1272_v35 }
 0x1b0   : > { %6387 = vmatpush1.bf16.msra.mxu0 %v6386_v32  ;;  %3055 = vmatprep.mubr.f32.mxu0 %v1249_v27  ;;  %v6396_v15 = vpack.c.bf16 %v2129_v25, %v2127_v52  ;;  %v1263_v32 = vrot.slane %v1188_v19, 1  ;;  %v6402_v27 = vpack.c.bf16 %v2132_v29, %v2130_v28  ;;  %v1268_v44 = vrot.slane %v1190_v39, 1  ;;  %v2149_v25 = vld [vmem:[#allocation8 + $0x1158] sm:$0xff]  ;;  %v2159_v19 = vld [vmem:[#allocation8 + $0x11a8] sm:$0xff]  ;;  %v2160_v28 = vld [vmem:[#allocation8 + $0x11b0] sm:$0xff] }
 0x1b1   : > { %6389 = vmatprep.subr.bf16.mxu0 %v6388_v42  ;;  %v1309_v42 = vld [vmem:[#allocation2 + $0x58] sm:$0x3]  ;;  %v6416_v5 = vpack.c.bf16 %v2149_v25, %v2147_v63  ;;  %v2163_v29 = vld [vmem:[#allocation8 + $0x11c8] sm:$0xff]  ;;  %v2166_v39 = vld [vmem:[#allocation8 + $0x11e0] sm:$0xff] }
 0x1b2   : > { %2604 = vmatmul.mubr.f32.gmra.mrb[6].mxu1 %v7762_v38  ;;  %v1261_v38 = vsel %vm583_vm0, %v1259_v59, %v1260_v62  ;;  %v1264_v43 = vsel %vm583_vm0, %v1262_v31, %v1263_v32  ;;  %v1270_v52 = vsel %vm583_vm0, %v1268_v44, %v1269_v45  ;;  %v2142_v62 = vld [vmem:[#allocation8 + $0x1120] sm:$0xff]  ;;  %v2169_v34 = vld [vmem:[#allocation8 + $0x11f8] sm:$0xff] }
 0x1b3   : > { %2609 = vmatprep.mubr.f32.mxu1 %v7773_v55  ;;  %3056 = vmatmul.mubr.f32.gmra.mrb[6].mxu0 %v1246_v54  ;;  %v2133_v55 = vld [vmem:[#allocation8 + $0x10d8] sm:$0xff]  ;;  %v6414_v4 = vpack.c.bf16 %v2144_v0, %v2142_v62  ;;  %v2162_v32 = vld [vmem:[#allocation8 + $0x11c0] sm:$0xff] }
 0x1b4   : > { %6391 = vmatpush1.bf16.msra.mxu0 %v6390_v49  ;;  %3061 = vmatprep.mubr.f32.mxu0 %v1255_v11  ;;  %v6400_v33 = vpack.c.bf16 %v2133_v55, %v2131_v10  ;;  %v1374_v49 = vrot.slane %v1309_v42, 2  ;;  %v2143_v11 = vld [vmem:[#allocation8 + $0x1128] sm:$0xff]  ;;  %v2161_v55 = vld [vmem:[#allocation8 + $0x11b8] sm:$0xff]  ;;  %v1308_v42 = vld [vmem:[#allocation2 + $0x50] sm:$0x3] }
 0x1b5   : > { %6393 = vmatprep.subr.bf16.mxu0 %v6392_v58  ;;  %v6428_v23 = vpack.c.bf16 %v2161_v55, %v2159_v19 }
 0x1b6   : > { %2610 = vmatmul.mubr.f32.gmra.mrb[8].mxu1 %v7782_v3  ;;  %v1267_v3 = vsel %vm583_vm0, %v1265_v16, %v1266_v17  ;;  %v2154_v17 = vld [vmem:[#allocation8 + $0x1180] sm:$0xff] }
 0x1b7   : > { %2615 = vmatprep.mubr.f32.mxu1 %v7792_v22  ;;  %3062 = vmatmul.mubr.f32.gmra.mrb[8].mxu0 %v1252_v12  ;;  %v2137_v22 = vld [vmem:[#allocation8 + $0x10f8] sm:$0xff]  ;;  %v2150_v12 = vld [vmem:[#allocation8 + $0x1160] sm:$0xff]  ;;  %v6426_v20 = vpack.c.bf16 %v2156_v18, %v2154_v17 }
 0x1b8   : > { %6395 = vmatpush1.bf16.msra.mxu0 %v6394_v7  ;;  %3067 = vmatprep.mubr.f32.mxu0 %v1261_v38  ;;  %v6404_v46 = vpack.c.bf16 %v2137_v22, %v2135_v26  ;;  %v2146_v7 = vld [vmem:[#allocation8 + $0x1140] sm:$0xff]  ;;  %v6422_v38 = vpack.c.bf16 %v2152_v13, %v2150_v12  ;;  %v2165_v26 = vld [vmem:[#allocation8 + $0x11d8] sm:$0xff]  ;;  %v2168_v22 = vld [vmem:[#allocation8 + $0x11f0] sm:$0xff] }
 0x1b9   : > { %6397 = vmatprep.subr.bf16.mxu0 %v6396_v15  ;;  %v2157_v15 = vld [vmem:[#allocation8 + $0x1198] sm:$0xff]  ;;  %v6432_v31 = vpack.c.bf16 %v2165_v26, %v2163_v29  ;;  %v6438_v44 = vpack.c.bf16 %v2168_v22, %v2166_v39  ;;  %v1328_v29 = vld [vmem:[#allocation2 + $0xf0] sm:$0x3]  ;;  %v1331_v26 = vld [vmem:[#allocation2 + $0x108] sm:$0xfc] }
 0x1ba   : > { %2616 = vmatmul.mubr.f32.gmra.mrb[10].mxu1 %v7803_v36  ;;  %v1373_v36 = vrot.slane %v1307_v41, 2  ;;  %v6424_v16 = vpack.c.bf16 %v2157_v15, %v2155_v14  ;;  %v1306_v41 = vld [vmem:[#allocation2 + $0x40] sm:$0xfc]  ;;  %v1329_v17 = vld [vmem:[#allocation2 + $0xf8] sm:$0x3] }
 0x1bb   : > { %2621 = vmatprep.mubr.f32.mxu1 %v7808_v53  ;;  %3068 = vmatmul.mubr.f32.gmra.mrb[10].mxu0 %v1258_v30  ;;  %v2141_v53 = vld [vmem:[#allocation8 + $0x1118] sm:$0xff]  ;;  %v1370_v45 = vrot.slane %v1306_v41, 2  ;;  %v1322_v15 = vld [vmem:[#allocation2 + $0xc0] sm:$0xfc]  ;;  %v1335_v22 = vld [vmem:[#allocation2 + $0x128] sm:$0xfc] }
 0x1bc   : > { %6399 = vmatpush1.bf16.msra.mxu0 %v6398_v24  ;;  %3073 = vmatprep.mubr.f32.mxu0 %v1267_v3  ;;  %v6408_v54 = vpack.c.bf16 %v2141_v53, %v2139_v50  ;;  %v1375_v58 = vsel %vm728_vm1, %v1373_v36, %v1374_v49  ;;  %v2158_v24 = vld [vmem:[#allocation8 + $0x11a0] sm:$0xff]  ;;  %v2167_v3 = vld [vmem:[#allocation8 + $0x11e8] sm:$0xff]  ;;  %v1312_v36 = vld [vmem:[#allocation2 + $0x70] sm:$0x3]  ;;  %v1394_v19 = vrot.slane %v1322_v15, 2 }
 0x1bd   : > { %6401 = vmatprep.subr.bf16.mxu0 %v6400_v33  ;;  %v6430_v30 = vpack.c.bf16 %v2160_v28, %v2158_v24  ;;  %v2164_v33 = vld [vmem:[#allocation8 + $0x11d0] sm:$0xff]  ;;  %v6436_v40 = vpack.c.bf16 %v2169_v34, %v2167_v3  ;;  %v1315_v49 = vld [vmem:[#allocation2 + $0x88] sm:$0xfc]  ;;  %v1317_v50 = vld [vmem:[#allocation2 + $0x98] sm:$0x3]  ;;  %v1404_v24 = vrot.slane %v1329_v17, 2 }
 0x1be   : > { %2622 = vmatmul.mubr.f32.gmra.mrb[12].mxu1 %v7815_v6  ;;  %v2145_v6 = vld [vmem:[#allocation8 + $0x1138] sm:$0xff]  ;;  %v6434_v35 = vpack.c.bf16 %v2164_v33, %v2162_v32  ;;  %v1326_v28 = vld [vmem:[#allocation2 + $0xe0] sm:$0xfc]  ;;  %v1401_v33 = vrot.slane %v1328_v29, 2  ;;  %v1409_v34 = vrot.slane %v1331_v26, 2 }
 0x1bf   : > { %2627 = vmatprep.mubr.f32.mxu1 %v7818_v21  ;;  %3074 = vmatmul.mubr.f32.gmra.mrb[12].mxu0 %v1264_v43  ;;  %v6410_v21 = vpack.c.bf16 %v2140_v57, %v2138_v56  ;;  %v6412_v59 = vpack.c.bf16 %v2145_v6, %v2143_v11  ;;  %v1313_v43 = vld [vmem:[#allocation2 + $0x78] sm:$0x3]  ;;  %v1385_v56 = vrot.slane %v1315_v49, 2  ;;  %v1386_v57 = vrot.slane %v1317_v50, 2  ;;  %v1316_v11 = vld [vmem:[#allocation2 + $0x90] sm:$0x3] }
 0x1c0   : > { %6403 = vmatpush1.bf16.msra.mxu0 %v6402_v27  ;;  %3079 = vmatprep.mubr.f32.mxu0 %v1273_v48  ;;  %v1311_v27 = vld [vmem:[#allocation2 + $0x68] sm:$0xfc]  ;;  %v1380_v47 = vrot.slane %v1313_v43, 2  ;;  %v1310_v48 = vld [vmem:[#allocation2 + $0x60] sm:$0xfc]  ;;  %v1383_v0 = vrot.slane %v1316_v11, 2 }
 0x1c1   : > { %6405 = vmatprep.subr.bf16.mxu0 %v6404_v46  ;;  %v1371_v46 = vrot.slane %v1308_v42, 2  ;;  %v1379_v61 = vrot.slane %v1311_v27, 2  ;;  %v1319_v6 = vld [vmem:[#allocation2 + $0xa8] sm:$0xfc]  ;;  %v1387_v63 = vsel %vm728_vm1, %v1385_v56, %v1386_v57  ;;  %v1400_v32 = vrot.slane %v1326_v28, 2 }
 0x1c2   : > { %2628 = vmatmul.mubr.f32.gmra.mrb[14].mxu1 %v7822_v37  ;;  %v2148_v37 = vld [vmem:[#allocation8 + $0x1150] sm:$0xff]  ;;  %v1391_v25 = vrot.slane %v1319_v6, 2  ;;  %v1330_v39 = vld [vmem:[#allocation2 + $0x100] sm:$0xfc]  ;;  %v1337_v41 = vld [vmem:[#allocation2 + $0x138] sm:$0x3] }
 0x1c3   : > { %3080 = vmatmul.mubr.f32.gmra.mrb[14].mxu0 %v1270_v52  ;;  %3327 = vmatprep.mubr.f32.mxu1 %v7827_v60  ;;  %v6418_v10 = vpack.c.bf16 %v2148_v37, %v2146_v7  ;;  %v6420_v60 = vpack.c.bf16 %v2153_v9, %v2151_v8  ;;  %v1372_v53 = vsel %vm728_vm1, %v1370_v45, %v1371_v46  ;;  %v1377_v52 = vrot.slane %v1312_v36, 2  ;;  %v1320_v7 = vld [vmem:[#allocation2 + $0xb0] sm:$0x3]  ;;  %v1323_v37 = vld [vmem:[#allocation2 + $0xc8] sm:$0xfc] }
 0x1c4   : > { %6407 = vmatpush1.bf16.msra.mxu0 %v6406_v51  ;;  %3150 = vmatprep.mubr.f32.mxu0 %v1375_v58  ;;  %v1376_v51 = vrot.slane %v1310_v48, 2  ;;  %v1314_v58 = vld [vmem:[#allocation2 + $0x80] sm:$0xfc]  ;;  %v1325_v8 = vld [vmem:[#allocation2 + $0xd8] sm:$0x3]  ;;  %v1397_v13 = vrot.slane %v1323_v37, 2  ;;  %v1402_v42 = vsel %vm728_vm1, %v1400_v32, %v1401_v33 }
 0x1c5   : > { %6409 = vmatprep.subr.bf16.mxu0 %v6408_v54  ;;  %v1381_v54 = vsel %vm728_vm1, %v1379_v61, %v1380_v47  ;;  %v1382_v62 = vrot.slane %v1314_v58, 2  ;;  %v1398_v14 = vrot.slane %v1325_v8, 2  ;;  %v1406_v27 = vrot.slane %v1330_v39, 2  ;;  %v1334_v61 = vld [vmem:[#allocation2 + $0x120] sm:$0xfc] }
 0x1c6   : > { %v1415_v45 = vrot.slane %v1335_v22, 2  ;;  %v1416_v46 = vrot.slane %v1337_v41, 2  ;;  %v1336_v47 = vld [vmem:[#allocation2 + $0x130] sm:$0x3]  ;;  %v1412_v36 = vrot.slane %v1334_v61, 2 }
 0x1c7   : > { %v1384_v9 = vsel %vm728_vm1, %v1382_v62, %v1383_v0  ;;  %v1413_v49 = vrot.slane %v1336_v47, 2 }
 0x1c8   : > { %6411 = vmatpush1.bf16.msra.mxu0 %v6410_v21  ;;  %v1321_v21 = vld [vmem:[#allocation2 + $0xb8] sm:$0x3]  ;;  %v1417_v50 = vsel %vm728_vm1, %v1415_v45, %v1416_v46 }
 0x1c9   : > { %6413 = vmatprep.subr.bf16.mxu0 %v6412_v59  ;;  %v1378_v59 = vsel %vm728_vm1, %v1376_v51, %v1377_v52 }
 0x1cc   : > { %6415 = vmatpush1.bf16.msra.mxu0 %v6414_v4  ;;  %v1392_v4 = vrot.slane %v1321_v21, 2 }
 0x1cd   : > { %6417 = vmatprep.subr.bf16.mxu0 %v6416_v5  ;;  %v1318_v5 = vld [vmem:[#allocation2 + $0xa0] sm:$0xfc] }
 0x1ce   : > { %v1393_v12 = vsel %vm728_vm1, %v1391_v25, %v1392_v4 }
 0x1d0   : > { %6419 = vmatpush1.bf16.msra.mxu0 %v6418_v10  ;;  %v1388_v10 = vrot.slane %v1318_v5, 2 }
 0x1d1   : > { %6421 = vmatprep.subr.bf16.mxu0 %v6420_v60  ;;  %v1389_v60 = vrot.slane %v1320_v7, 2  ;;  %v2172_v7 = vlaneseq }
 0x1d3   : > { %v1390_v18 = vsel %vm728_vm1, %v1388_v10, %v1389_v60  ;;  %v7880_v37 = vshrl.u32 %v2172_v7, 7  ;;  %v2170_v10 = vld [vmem:[#allocation10] sm:$0x3]  ;;  %vm8275_vm10 = vcmp.lt.s32.totalorder %v2172_v7, 256 }
 0x1d4   : > { %6423 = vmatpush1.bf16.msra.mxu0 %v6422_v38  ;;  %v1324_v38 = vld [vmem:[#allocation2 + $0xd0] sm:$0x3] }
 0x1d5   : > { %6425 = vmatprep.subr.bf16.mxu0 %v6424_v16  ;;  %v1327_v16 = vld [vmem:[#allocation2 + $0xe8] sm:$0xfc]  ;;  %v1395_v55 = vrot.slane %v1324_v38, 2  ;;  %v2174_v8 = vsub.s32 0, %v7880_v37 }
 0x1d7   : > { %v2175_v60 = vrot.slane %v2170_v10, %v2174_v8 }
 0x1d8   : > { %6427 = vmatpush1.bf16.msra.mxu0 %v6426_v20  ;;  %v1399_v20 = vsel %vm728_vm1, %v1397_v13, %v1398_v14 }
 0x1d9   : > { %6429 = vmatprep.subr.bf16.mxu0 %v6428_v23  ;;  %v1403_v23 = vrot.slane %v1327_v16, 2 }
 0x1db   : > { %v1405_v3 = vsel %vm728_vm1, %v1403_v23, %v1404_v24 }
 0x1dc   : > { %6431 = vmatpush1.bf16.msra.mxu0 %v6430_v30  ;;  %v1333_v30 = vld [vmem:[#allocation2 + $0x118] sm:$0x3] }
 0x1dd   : > { %6433 = vmatprep.subr.bf16.mxu0 %v6432_v31  ;;  %v1396_v31 = vsel %vm728_vm1, %v1394_v19, %v1395_v55 }
 0x1e0   : > { %6435 = vmatpush1.bf16.msra.mxu0 %v6434_v35  ;;  %v1410_v35 = vrot.slane %v1333_v30, 2 }
 0x1e1   : > { %6437 = vmatprep.subr.bf16.mxu0 %v6436_v40  ;;  %v1332_v40 = vld [vmem:[#allocation2 + $0x110] sm:$0x3] }
 0x1e2   : > { %v1407_v43 = vrot.slane %v1332_v40, 2 }
 0x1e4   : > { %6439 = vmatpush1.bf16.msra.mxu0 %v6438_v44  ;;  %v1411_v44 = vsel %vm728_vm1, %v1409_v34, %v1410_v35  ;;  %v1408_v48 = vsel %vm728_vm1, %v1406_v27, %v1407_v43 }
 0x1e7   : > { %3151 = vmatmul.mubr.f32.vlgmr.msra.gmra.mrb[0].mxu0 %v1372_v53  ;;  %v1414_v53 = vsel %vm728_vm1, %v1412_v36, %v1413_v49 }
 0x1e8   : > { %3156 = vmatprep.mubr.f32.mxu0 %v1381_v54 }
 0x1eb   : > { %3157 = vmatmul.mubr.f32.gmra.mrb[2].mxu0 %v1378_v59 }
 0x1ec   : > { %3162 = vmatprep.mubr.f32.mxu0 %v1387_v63 }
 0x1ef   : > { %3163 = vmatmul.mubr.f32.gmra.mrb[4].mxu0 %v1384_v9  ;;  %v2178_v9 = vsub.s32 1, %v7880_v37 }
 0x1f0   : > { %3168 = vmatprep.mubr.f32.mxu0 %v1393_v12 }
 0x1f1   : > { %v2179_v12 = vrot.slane %v2170_v10, %v2178_v9 }
 0x1f3   : > { %3169 = vmatmul.mubr.f32.gmra.mrb[6].mxu0 %v1390_v18 }
 0x1f4   : > { %3174 = vmatprep.mubr.f32.mxu0 %v1399_v20 }
 0x1f7   : > { %3175 = vmatmul.mubr.f32.gmra.mrb[8].mxu0 %v1396_v31 }
 0x1f8   : > { %3180 = vmatprep.mubr.f32.mxu0 %v1405_v3 }
 0x1fb   : > { %3181 = vmatmul.mubr.f32.gmra.mrb[10].mxu0 %v1402_v42 }
 0x1fc   : > { %3186 = vmatprep.mubr.f32.mxu0 %v1411_v44 }
 0x1ff   : > { %3187 = vmatmul.mubr.f32.gmra.mrb[12].mxu0 %v1408_v48 }
 0x200   : > { %3192 = vmatprep.mubr.f32.mxu0 %v1417_v50 }
 0x203   : > { %3193 = vmatmul.mubr.f32.gmra.mrb[14].mxu0 %v1414_v53 }
 0x279   : > { %v2587_v51 = vpop.f32.mrb[0].mxu1 }
 0x27a   : > { %v2589_v52 = vpop.f32.mrb[1].mxu1  ;;  %v6472_v13 = vadd.f32 %v2587_v51, %v2175_v60 }
 0x27b   : > { %v6474_v14 = vadd.f32 %v2589_v52, %v2179_v12 }
 0x27d   : > { %v2593_v54 = vpop.f32.mrb[2].mxu1 }
 0x27e   : > { %v2595_v56 = vpop.f32.mrb[3].mxu1  ;;  %v6476_v15 = vadd.f32 %v2593_v54, %v2175_v60 }
 0x27f   : > { %v6478_v38 = vadd.f32 %v2595_v56, %v2179_v12 }
 0x281   : > { %v2599_v57 = vpop.f32.mrb[4].mxu1 }
 0x282   : > { %v2601_v58 = vpop.f32.mrb[5].mxu1  ;;  %v6480_v16 = vadd.f32 %v2599_v57, %v2175_v60 }
 0x283   : > { %v6482_v17 = vadd.f32 %v2601_v58, %v2179_v12 }
 0x285   : > { %v2605_v11 = vpop.f32.mrb[6].mxu1 }
 0x286   : > { %v2607_v6 = vpop.f32.mrb[7].mxu1  ;;  %v6484_v18 = vadd.f32 %v2605_v11, %v2175_v60 }
 0x287   : > { %v7884_v19 = vadd.f32 %v2607_v6, %v2179_v12 }
 0x289   : > { %v2611_v21 = vpop.f32.mrb[8].mxu1 }
 0x28a   : > { %v2613_v59 = vpop.f32.mrb[9].mxu1  ;;  %v7886_v55 = vadd.f32 %v2611_v21, %v2175_v60 }
 0x28b   : > { %v7888_v20 = vadd.f32 %v2613_v59, %v2179_v12 }
 0x28d   : > { %v2617_v62 = vpop.f32.mrb[10].mxu1 }
 0x28e   : > { %v2619_v0 = vpop.f32.mrb[11].mxu1  ;;  %v7890_v24 = vadd.f32 %v2617_v62, %v2175_v60 }
 0x28f   : > { %v7892_v28 = vadd.f32 %v2619_v0, %v2179_v12 }
 0x291   : > { %v2623_v63 = vpop.f32.mrb[12].mxu1 }
 0x292   : > { %v2625_v25 = vpop.f32.mrb[13].mxu1  ;;  %v7894_v29 = vadd.f32 %v2623_v63, %v2175_v60 }
 0x293   : > { %v7898_v31 = vadd.f32 %v2625_v25, %v2179_v12 }
 0x295   : > { %v2629_v4 = vpop.f32.mrb[14].mxu1 }
 0x296   : > { %v2631_v5 = vpop.f32.mrb[15].mxu1  ;;  %v7900_v32 = vadd.f32 %v2629_v4, %v2175_v60 }
 0x297   : > { %v7902_v33 = vadd.f32 %v2631_v5, %v2179_v12 }
 0x2ba   : > { %v3152_v23 = vpop.f32.mrb[0].mxu0 }
 0x2bb   : > { %v7896_v26 = vadd.f32 %v6472_v13, %v3152_v23  ;;  %v3154_v30 = vpop.f32.mrb[1].mxu0 }
 0x2bc   : > { %v7904_v3 = vadd.f32 %v6474_v14, %v3154_v30 }
 0x2bd   : > { %v3511_v34 = vrot.slane %v7896_v26, 1  ;;  %v3786_v35 = vrot.slane %v7896_v26, 2  ;;  %v4061_v39 = vrot.slane %v7896_v26, 3  ;;  %v4336_v40 = vrot.slane %v7896_v26, 4 }
 0x2be   : > { %v3158_v22 = vpop.f32.mrb[2].mxu0  ;;  %v3525_v41 = vrot.slane %v7904_v3, 1  ;;  %v3800_v42 = vrot.slane %v7904_v3, 2  ;;  %v4075_v27 = vrot.slane %v7904_v3, 3  ;;  %v4350_v43 = vrot.slane %v7904_v3, 4 }
 0x2bf   : > { %v7914_v44 = vadd.f32 %v6476_v15, %v3158_v22  ;;  %v3160_v45 = vpop.f32.mrb[3].mxu0  ;;  %v4625_v46 = vrot.slane %v7904_v3, 5  ;;  %v4611_v61 = vrot.slane %v7896_v26, 5  ;;  %v4900_v47 = vrot.slane %v7904_v3, 6 }
 0x2c0   : > { %v7919_v48 = vadd.f32 %v6478_v38, %v3160_v45  ;;  %v4886_v36 = vrot.slane %v7896_v26, 6  ;;  %v5175_v49 = vrot.slane %v7904_v3, 7  ;;  %v5161_v50 = vrot.slane %v7896_v26, 7 }
 0x2c1   : > { %v3219_v53 = vrot.slane %v7914_v44, 7  ;;  %v3512_v51 = vsel %vm3220_vm2, %v7914_v44, %v3511_v34  ;;  %v3787_v52 = vrot.slane %v7914_v44, 1  ;;  %v4062_v54 = vrot.slane %v7914_v44, 2 }
 0x2c2   : > { %v3164_v56 = vpop.f32.mrb[4].mxu0  ;;  %v3240_v57 = vrot.slane %v7919_v48, 7  ;;  %v3526_v58 = vsel %vm3220_vm2, %v7919_v48, %v3525_v41  ;;  %v3801_v11 = vrot.slane %v7919_v48, 1  ;;  %v4076_v6 = vrot.slane %v7919_v48, 2 }
 0x2c3   : > { %v7934_v21 = vadd.f32 %v6480_v16, %v3164_v56  ;;  %v3166_v59 = vpop.f32.mrb[5].mxu0  ;;  %v3221_v62 = vsel %vm3220_vm2, %v3219_v53, %v7896_v26  ;;  %v3788_v0 = vsel %vm3220_vm2, %v3787_v52, %v3786_v35  ;;  %v4063_v63 = vsel %vm3220_vm2, %v4062_v54, %v4061_v39 }
 0x2c4   : > { %v7940_v25 = vadd.f32 %v6482_v17, %v3166_v59  ;;  %v3241_v4 = vsel %vm3220_vm2, %v3240_v57, %v7904_v3  ;;  %v3802_v5 = vsel %vm3220_vm2, %v3801_v11, %v3800_v42  ;;  %v4077_v8 = vsel %vm3220_vm2, %v4076_v6, %v4075_v27 }
 0x2c5   : > { %v3222_v9 = vrot.slane %v7934_v21, 6  ;;  %v3513_v10 = vrot.slane %v7934_v21, 7  ;;  %v3789_v60 = vsel %vm3223_vm3, %v7934_v21, %v3788_v0  ;;  %v4064_v12 = vrot.slane %v7934_v21, 1 }
 0x2c6   : > { %v3170_v13 = vpop.f32.mrb[6].mxu0  ;;  %v3242_v14 = vrot.slane %v7940_v25, 6  ;;  %v3527_v15 = vrot.slane %v7940_v25, 7  ;;  %v3803_v38 = vsel %vm3223_vm3, %v7940_v25, %v3802_v5  ;;  %v4078_v16 = vrot.slane %v7940_v25, 1 }
 0x2c7   : > { %v7956_v17 = vadd.f32 %v6484_v18, %v3170_v13  ;;  %v3172_v23 = vpop.f32.mrb[7].mxu0  ;;  %v3224_v30 = vsel %vm3223_vm3, %v3222_v9, %v3221_v62  ;;  %v3514_v34 = vsel %vm3223_vm3, %v3513_v10, %v3512_v51  ;;  %v4065_v35 = vsel %vm3223_vm3, %v4064_v12, %v4063_v63 }
 0x2c8   : > { %v7962_v39 = vadd.f32 %v7884_v19, %v3172_v23  ;;  %v3243_v22 = vsel %vm3223_vm3, %v3242_v14, %v3241_v4  ;;  %v3528_v41 = vsel %vm3223_vm3, %v3527_v15, %v3526_v58  ;;  %v4079_v42 = vsel %vm3223_vm3, %v4078_v16, %v4077_v8 }
 0x2c9   : > { %v3225_v27 = vrot.slane %v7956_v17, 5  ;;  %v3515_v18 = vrot.slane %v7956_v17, 6  ;;  %v3790_v45 = vrot.slane %v7956_v17, 7  ;;  %v7972_v53 = vsel %vm3226_vm4, %v7956_v17, %v4065_v35 }
 0x2ca   : > { %v3176_v51 = vpop.f32.mrb[8].mxu0  ;;  %v3244_v19 = vrot.slane %v7962_v39, 5  ;;  %v3529_v52 = vrot.slane %v7962_v39, 6  ;;  %v3804_v54 = vrot.slane %v7962_v39, 7  ;;  %v4080_v56 = vsel %vm3226_vm4, %v7962_v39, %v4079_v42 }
 0x2cb   : > { %v7980_v57 = vadd.f32 %v7886_v55, %v3176_v51  ;;  %v3178_v58 = vpop.f32.mrb[9].mxu0  ;;  %v3227_v11 = vsel %vm3226_vm4, %v3225_v27, %v3224_v30  ;;  %v3516_v6 = vsel %vm3226_vm4, %v3515_v18, %v3514_v34  ;;  %v3791_v59 = vsel %vm3226_vm4, %v3790_v45, %v3789_v60 }
 0x2cc   : > { %v7986_v62 = vadd.f32 %v7888_v20, %v3178_v58  ;;  %v3245_v0 = vsel %vm3226_vm4, %v3244_v19, %v3243_v22  ;;  %v3530_v63 = vsel %vm3226_vm4, %v3529_v52, %v3528_v41  ;;  %v3805_v4 = vsel %vm3226_vm4, %v3804_v54, %v3803_v38 }
 0x2cd   : > { %v3228_v5 = vrot.slane %v7980_v57, 4  ;;  %v3517_v55 = vrot.slane %v7980_v57, 5  ;;  %v3792_v8 = vrot.slane %v7980_v57, 6  ;;  %v4067_v9 = vrot.slane %v7980_v57, 7 }
 0x2ce   : > { %v3182_v10 = vpop.f32.mrb[10].mxu0  ;;  %v3246_v60 = vrot.slane %v7986_v62, 4  ;;  %v3531_v20 = vrot.slane %v7986_v62, 5  ;;  %v3806_v12 = vrot.slane %v7986_v62, 6  ;;  %v4081_v13 = vrot.slane %v7986_v62, 7 }
 0x2cf   : > { %v8000_v14 = vadd.f32 %v7890_v24, %v3182_v10  ;;  %v3184_v15 = vpop.f32.mrb[11].mxu0  ;;  %v3230_v38 = vsel %vm3229_vm5, %v3228_v5, %v3227_v11  ;;  %v3518_v16 = vsel %vm3229_vm5, %v3517_v55, %v3516_v6  ;;  %v3793_v23 = vsel %vm3229_vm5, %v3792_v8, %v3791_v59 }
 0x2d0   : > { %v8006_v30 = vadd.f32 %v7892_v28, %v3184_v15  ;;  %v3247_v34 = vsel %vm3229_vm5, %v3246_v60, %v3245_v0  ;;  %v3532_v35 = vsel %vm3229_vm5, %v3531_v20, %v3530_v63  ;;  %v3807_v22 = vsel %vm3229_vm5, %v3806_v12, %v3805_v4 }
 0x2d1   : > { %v3231_v41 = vrot.slane %v8000_v14, 3  ;;  %v3519_v24 = vrot.slane %v8000_v14, 4  ;;  %v3794_v42 = vrot.slane %v8000_v14, 5  ;;  %v4082_v27 = vsel %vm3229_vm5, %v4081_v13, %v4080_v56 }
 0x2d2   : > { %v3188_v18 = vpop.f32.mrb[12].mxu0  ;;  %v3248_v45 = vrot.slane %v8006_v30, 3  ;;  %v3533_v28 = vrot.slane %v8006_v30, 4  ;;  %v3808_v51 = vrot.slane %v8006_v30, 5  ;;  %v4083_v19 = vrot.slane %v8006_v30, 6 }
 0x2d3   : > { %v8020_v52 = vadd.f32 %v7894_v29, %v3188_v18  ;;  %v3190_v54 = vpop.f32.mrb[13].mxu0  ;;  %v3233_v58 = vsel %vm3232_vm6, %v3231_v41, %v3230_v38  ;;  %v3520_v11 = vsel %vm3232_vm6, %v3519_v24, %v3518_v16  ;;  %v3795_v56 = vsel %vm3232_vm6, %v3794_v42, %v3793_v23 }
 0x2d4   : > { %v8026_v6 = vadd.f32 %v7898_v31, %v3190_v54  ;;  %v3249_v59 = vsel %vm3232_vm6, %v3248_v45, %v3247_v34  ;;  %v3534_v0 = vsel %vm3232_vm6, %v3533_v28, %v3532_v35  ;;  %v3809_v63 = vsel %vm3232_vm6, %v3808_v51, %v3807_v22 }
 0x2d5   : > { %v3234_v29 = vrot.slane %v8020_v52, 2  ;;  %v3521_v4 = vrot.slane %v8020_v52, 3  ;;  %v3796_v5 = vrot.slane %v8020_v52, 4  ;;  %v4084_v55 = vsel %vm3232_vm6, %v4083_v19, %v4082_v27 }
 0x2d6   : > { %v3194_v8 = vpop.f32.mrb[14].mxu0  ;;  %v3250_v10 = vrot.slane %v8026_v6, 2  ;;  %v3535_v31 = vrot.slane %v8026_v6, 3  ;;  %v3810_v60 = vrot.slane %v8026_v6, 4  ;;  %v4085_v20 = vrot.slane %v8026_v6, 5 }
 0x2d7   : > { %v8040_v12 = vadd.f32 %v7900_v32, %v3194_v8  ;;  %v3196_v13 = vpop.f32.mrb[15].mxu0  ;;  %v3236_v15 = vsel %vm3235_vm7, %v3234_v29, %v3233_v58  ;;  %v3522_v38 = vsel %vm3235_vm7, %v3521_v4, %v3520_v11  ;;  %v3797_v16 = vsel %vm3235_vm7, %v3796_v5, %v3795_v56  ;;  %v8070_v11 = vld [vmem:[%s8702_s3] sm:$0xff] }
 0x2d8   : > { %v8046_v23 = vadd.f32 %v7902_v33, %v3196_v13  ;;  %v3251_v34 = vsel %vm3235_vm7, %v3250_v10, %v3249_v59  ;;  %v3536_v35 = vsel %vm3235_vm7, %v3535_v31, %v3534_v0  ;;  %v3811_v22 = vsel %vm3235_vm7, %v3810_v60, %v3809_v63  ;;  %v8091_v13 = vld [vmem:[#allocation2 + $0x8] sm:$0xff] }
 0x2d9   : > { %v3237_v41 = vrot.slane %v8040_v12, 1  ;;  %v3523_v32 = vrot.slane %v8040_v12, 2  ;;  %v3798_v24 = vrot.slane %v8040_v12, 3  ;;  %v4086_v42 = vsel %vm3235_vm7, %v4085_v20, %v4084_v55 }
 0x2da   : > { %v3252_v27 = vrot.slane %v8046_v23, 1  ;;  %v3537_v18 = vrot.slane %v8046_v23, 2  ;;  %v3812_v33 = vrot.slane %v8046_v23, 3  ;;  %v4087_v45 = vrot.slane %v8046_v23, 4 }
 0x2db   : > { %v3239_v28 = vsel %vm3238_vm8, %v3237_v41, %v3236_v15  ;;  %v3524_v51 = vsel %vm3238_vm8, %v3523_v32, %v3522_v38  ;;  %v3799_v19 = vsel %vm3238_vm8, %v3798_v24, %v3797_v16  ;;  %v4068_v54 = vsel %vm3229_vm5, %v4067_v9, %v7972_v53  ;;  %v8097_v15 = vld [vmem:[%s8702_s3 + $0x8] sm:$0xff] }
 0x2dc   : > { %v3253_v58 = vsel %vm3238_vm8, %v3252_v27, %v3251_v34  ;;  %v3538_v56 = vsel %vm3238_vm8, %v3537_v18, %v3536_v35  ;;  %v3813_v59 = vsel %vm3238_vm8, %v3812_v33, %v3811_v22  ;;  %v4088_v0 = vsel %vm3238_vm8, %v4087_v45, %v4086_v42 }
 0x2dd   : > { %3263 = vmatprep.subr.mxu1 %v3253_v58  ;;  %v4069_v63 = vrot.slane %v8000_v14, 6  ;;  %v4071_v29 = vrot.slane %v8020_v52, 5  ;;  %v4073_v53 = vrot.slane %v8040_v12, 4  ;;  %v4351_v9 = vrot.slane %v7919_v48, 3 }
 0x2de   : > { %3264 = vmatpush1.msra.mxu1 %v3239_v28  ;;  %v4353_v4 = vrot.slane %v7940_v25, 2  ;;  %v4355_v5 = vrot.slane %v7962_v39, 1  ;;  %v4358_v55 = vrot.slane %v8006_v30, 7  ;;  %v4360_v8 = vrot.slane %v8026_v6, 6 }
 0x2df   : > { %5804 = vmatmul.mubr.msk.f32.vlgmr.msra.gmra.mrb[16].mxu1 %vm3256_vm9, %v8070_v11  ;;  %3541 = vmatprep.subr.mxu1 %v3538_v56  ;;  %v4070_v10 = vsel %vm3232_vm6, %v4069_v63, %v4068_v54  ;;  %v4352_v31 = vsel %vm3220_vm2, %v4351_v9, %v4350_v43  ;;  %v4362_v60 = vrot.slane %v8046_v23, 5  ;;  %v4337_v20 = vrot.slane %v7914_v44, 3 }
 0x2e0   : > { %3542 = vmatpush1.msra.mxu1 %v3524_v51  ;;  %3333 = vmatprep.mubr.f32.mxu1 %v8091_v13  ;;  %v4072_v38 = vsel %vm3235_vm7, %v4071_v29, %v4070_v10  ;;  %v4354_v16 = vsel %vm3223_vm3, %v4353_v4, %v4352_v31  ;;  %v4339_v43 = vrot.slane %v7934_v21, 2  ;;  %v4341_v34 = vrot.slane %v7956_v17, 1 }
 0x2e1   : > { %3816 = vmatprep.subr.mxu1 %v3813_v59  ;;  %v8104_v35 = vsel %vm3238_vm8, %v4073_v53, %v4072_v38  ;;  %v4356_v22 = vsel %vm3226_vm4, %v4355_v5, %v4354_v16  ;;  %v4338_v41 = vsel %vm3220_vm2, %v4337_v20, %v4336_v40  ;;  %v4344_v32 = vrot.slane %v8000_v14, 7 }
 0x2e2   : > { %v4357_v24 = vsel %vm3229_vm5, %v7986_v62, %v4356_v22  ;;  %v4340_v42 = vsel %vm3223_vm3, %v4339_v43, %v4338_v41  ;;  %v4346_v27 = vrot.slane %v8020_v52, 6  ;;  %v4348_v18 = vrot.slane %v8040_v12, 5 }
 0x2e3   : > { %5805 = vmatmul.mubr.msk.f32.gmra.mrb[18].mxu1 %vm3256_vm9, %v8097_v15  ;;  %v4359_v33 = vsel %vm3232_vm6, %v4358_v55, %v4357_v24  ;;  %v4342_v45 = vsel %vm3226_vm4, %v4341_v34, %v4340_v42  ;;  %v4626_v40 = vrot.slane %v7919_v48, 4  ;;  %v4628_v28 = vrot.slane %v7940_v25, 3 }
 0x2e4   : > { %3605 = vmatprep.mubr.f32.mxu1 %v8091_v13  ;;  %v4361_v51 = vsel %vm3235_vm7, %v4360_v8, %v4359_v33  ;;  %v4343_v54 = vsel %vm3229_vm5, %v7980_v57, %v4342_v45  ;;  %v4630_v58 = vrot.slane %v7962_v39, 2  ;;  %v4632_v56 = vrot.slane %v7986_v62, 1 }
 0x2e5   : > { %v4363_v59 = vsel %vm3238_vm8, %v4362_v60, %v4361_v51  ;;  %v4345_v63 = vsel %vm3232_vm6, %v4344_v32, %v4343_v54  ;;  %v4627_v29 = vsel %vm3220_vm2, %v4626_v40, %v4625_v46  ;;  %v4635_v53 = vrot.slane %v8026_v6, 7 }
 0x2e6   : > { %v4347_v9 = vsel %vm3235_vm7, %v4346_v27, %v4345_v63  ;;  %v4629_v4 = vsel %vm3223_vm3, %v4628_v28, %v4627_v29  ;;  %v4637_v5 = vrot.slane %v8046_v23, 6  ;;  %v4612_v55 = vrot.slane %v7914_v44, 4 }
 0x2e7   : > { %5806 = vmatmul.mubr.msk.f32.vlgmr.msra.gmra.mrb[20].mxu1 %vm3256_vm9, %v8070_v11  ;;  %v8141_v8 = vsel %vm3238_vm8, %v4348_v18, %v4347_v9  ;;  %v4631_v10 = vsel %vm3226_vm4, %v4630_v58, %v4629_v4  ;;  %v4614_v46 = vrot.slane %v7934_v21, 3  ;;  %v4616_v31 = vrot.slane %v7956_v17, 2 }
 0x2e8   : > { %3817 = vmatpush1.msra.mxu1 %v3799_v19  ;;  %3611 = vmatprep.mubr.f32.mxu1 %v8091_v13  ;;  %v4633_v60 = vsel %vm3229_vm5, %v4632_v56, %v4631_v10  ;;  %v4613_v20 = vsel %vm3220_vm2, %v4612_v55, %v4611_v61  ;;  %v4618_v38 = vrot.slane %v7980_v57, 1  ;;  %v4621_v16 = vrot.slane %v8020_v52, 7 }
 0x2e9   : > { %4091 = vmatprep.subr.mxu1 %v4088_v0  ;;  %v4634_v43 = vsel %vm3232_vm6, %v8006_v30, %v4633_v60  ;;  %v4615_v34 = vsel %vm3223_vm3, %v4614_v46, %v4613_v20  ;;  %v4623_v19 = vrot.slane %v8040_v12, 6  ;;  %v4901_v22 = vrot.slane %v7919_v48, 5 }
 0x2ea   : > { %v4636_v41 = vsel %vm3235_vm7, %v4635_v53, %v4634_v43  ;;  %v4617_v32 = vsel %vm3226_vm4, %v4616_v31, %v4615_v34  ;;  %v4903_v61 = vrot.slane %v7940_v25, 4  ;;  %v4905_v24 = vrot.slane %v7962_v39, 3 }
 0x2eb   : > { %5807 = vmatmul.mubr.msk.f32.gmra.mrb[22].mxu1 %vm3256_vm9, %v8097_v15  ;;  %v4638_v0 = vsel %vm3238_vm8, %v4637_v5, %v4636_v41  ;;  %v4619_v42 = vsel %vm3229_vm5, %v4618_v38, %v4617_v32  ;;  %v4902_v27 = vsel %vm3220_vm2, %v4901_v22, %v4900_v47  ;;  %v4907_v18 = vrot.slane %v7986_v62, 2 }
 0x2ec   : > { %3880 = vmatprep.mubr.f32.mxu1 %v8091_v13  ;;  %v4620_v33 = vsel %vm3232_vm6, %v8000_v14, %v4619_v42  ;;  %v4904_v45 = vsel %vm3223_vm3, %v4903_v61, %v4902_v27  ;;  %v4909_v40 = vrot.slane %v8006_v30, 1  ;;  %v4912_v28 = vrot.slane %v8046_v23, 7 }
 0x2ed   : > { %v4622_v51 = vsel %vm3235_vm7, %v4621_v16, %v4620_v33  ;;  %v4906_v54 = vsel %vm3226_vm4, %v4905_v24, %v4904_v45  ;;  %v4887_v58 = vrot.slane %v7914_v44, 5  ;;  %v4889_v47 = vrot.slane %v7934_v21, 4 }
 0x2ee   : > { %v4624_v56 = vsel %vm3238_vm8, %v4623_v19, %v4622_v51  ;;  %v4908_v63 = vsel %vm3229_vm5, %v4907_v18, %v4906_v54  ;;  %v4891_v29 = vrot.slane %v7956_v17, 3  ;;  %v4893_v53 = vrot.slane %v7980_v57, 2 }
 0x2ef   : > { %5808 = vmatmul.mubr.msk.f32.vlgmr.msra.gmra.mrb[24].mxu1 %vm3256_vm9, %v8070_v11  ;;  %v4910_v9 = vsel %vm3232_vm6, %v4909_v40, %v4908_v63  ;;  %v4888_v4 = vsel %vm3220_vm2, %v4887_v58, %v4886_v36  ;;  %v4895_v5 = vrot.slane %v8000_v14, 1  ;;  %v4898_v55 = vrot.slane %v8040_v12, 7 }
 0x2f0   : > { %4092 = vmatpush1.msra.mxu1 %v8104_v35  ;;  %3886 = vmatprep.mubr.f32.mxu1 %v8091_v13  ;;  %v4911_v10 = vsel %vm3235_vm7, %v8026_v6, %v4910_v9  ;;  %v4890_v46 = vsel %vm3223_vm3, %v4889_v47, %v4888_v4  ;;  %v5176_v31 = vrot.slane %v7919_v48, 6  ;;  %v5178_v60 = vrot.slane %v7940_v25, 5 }
 0x2f1   : > { %4366 = vmatprep.subr.mxu1 %v4363_v59  ;;  %v4913_v36 = vsel %vm3238_vm8, %v4912_v28, %v4911_v10  ;;  %v4892_v20 = vsel %vm3226_vm4, %v4891_v29, %v4890_v46  ;;  %v5180_v38 = vrot.slane %v7962_v39, 4  ;;  %v5182_v35 = vrot.slane %v7986_v62, 3 }
 0x2f2   : > { %v4894_v16 = vsel %vm3229_vm5, %v4893_v53, %v4892_v20  ;;  %v5177_v43 = vsel %vm3220_vm2, %v5176_v31, %v5175_v49  ;;  %v5184_v34 = vrot.slane %v8006_v30, 2  ;;  %v5186_v48 = vrot.slane %v8026_v6, 1 }
 0x2f3   : > { %5809 = vmatmul.mubr.msk.f32.gmra.mrb[26].mxu1 %vm3256_vm9, %v8097_v15  ;;  %v4896_v25 = vsel %vm3232_vm6, %v4895_v5, %v4894_v16  ;;  %v5179_v59 = vsel %vm3223_vm3, %v5178_v60, %v5177_v43  ;;  %v5162_v39 = vrot.slane %v7914_v44, 6  ;;  %v5164_v62 = vrot.slane %v7934_v21, 5 }
 0x2f4   : > { %4155 = vmatprep.mubr.f32.mxu1 %v8091_v13  ;;  %v4897_v3 = vsel %vm3235_vm7, %v8020_v52, %v4896_v25  ;;  %v5181_v49 = vsel %vm3226_vm4, %v5180_v38, %v5179_v59  ;;  %v5166_v30 = vrot.slane %v7956_v17, 4  ;;  %v5168_v6 = vrot.slane %v7980_v57, 3 }
 0x2f5   : > { %v4899_v19 = vsel %vm3238_vm8, %v4898_v55, %v4897_v3  ;;  %v5183_v22 = vsel %vm3229_vm5, %v5182_v35, %v5181_v49  ;;  %v5163_v44 = vsel %vm3220_vm2, %v5162_v39, %v5161_v50  ;;  %v5170_v21 = vrot.slane %v8000_v14, 2 }
 0x2f6   : > { %v5185_v41 = vsel %vm3232_vm6, %v5184_v34, %v5183_v22  ;;  %v5165_v32 = vsel %vm3223_vm3, %v5164_v62, %v5163_v44  ;;  %v5172_v61 = vrot.slane %v8020_v52, 1 }
 0x2f7   : > { %5810 = vmatmul.mubr.msk.f32.vlgmr.msra.gmra.mrb[28].mxu1 %vm3256_vm9, %v8070_v11  ;;  %v5187_v17 = vsel %vm3235_vm7, %v5186_v48, %v5185_v41  ;;  %v5167_v57 = vsel %vm3226_vm4, %v5166_v30, %v5165_v32 }
 0x2f8   : > { %4367 = vmatpush1.msra.mxu1 %v8141_v8  ;;  %4161 = vmatprep.mubr.f32.mxu1 %v8091_v13  ;;  %v5188_v26 = vsel %vm3238_vm8, %v8046_v23, %v5187_v17  ;;  %v5169_v50 = vsel %vm3229_vm5, %v5168_v6, %v5167_v57 }
 0x2f9   : > { %4641 = vmatprep.subr.mxu1 %v4638_v0  ;;  %v5171_v14 = vsel %vm3232_vm6, %v5170_v21, %v5169_v50 }
 0x2fa   : > { %v5173_v52 = vsel %vm3235_vm7, %v5172_v61, %v5171_v14 }
 0x2fb   : > { %5811 = vmatmul.mubr.msk.f32.gmra.mrb[30].mxu1 %vm3256_vm9, %v8097_v15  ;;  %v5174_v24 = vsel %vm3238_vm8, %v8040_v12, %v5173_v52  ;;  %v6990_v12 = vmov 1966171168  }
 0x2fc   : > { %4430 = vmatprep.mubr.f32.mxu1 %v8091_v13  ;;  %v3347_v23 = vunpack.c.l.s4 %v6990_v12 }
 0x2fe   : > { %v3348_v8 = vunpack.c.0.s8 %v3347_v23 }
 0x2ff   : > { %5812 = vmatmul.mubr.msk.f32.vlgmr.msra.gmra.mrb[32].mxu1 %vm3256_vm9, %v8070_v11 }
 0x300   : > { %4642 = vmatpush1.msra.mxu1 %v4624_v56  ;;  %4436 = vmatprep.mubr.f32.mxu1 %v8091_v13  ;;  %v8270_v42 = vsub.s32 %v3348_v8, %v7880_v37 }
 0x301   : > { %4916 = vmatprep.subr.mxu1 %v4913_v36 }
 0x303   : > { %5813 = vmatmul.mubr.msk.f32.gmra.mrb[34].mxu1 %vm3256_vm9, %v8097_v15 }
 0x304   : > { %4705 = vmatprep.mubr.f32.mxu1 %v8091_v13 }
 0x307   : > { %5814 = vmatmul.mubr.msk.f32.vlgmr.msra.gmra.mrb[36].mxu1 %vm3256_vm9, %v8070_v11 }
 0x308   : > { %4917 = vmatpush1.msra.mxu1 %v4899_v19  ;;  %4711 = vmatprep.mubr.f32.mxu1 %v8091_v13 }
 0x309   : > { %5191 = vmatprep.subr.mxu1 %v5188_v26 }
 0x30b   : > { %5815 = vmatmul.mubr.msk.f32.gmra.mrb[38].mxu1 %vm3256_vm9, %v8097_v15 }
 0x30c   : > { %4980 = vmatprep.mubr.f32.mxu1 %v8091_v13 }
 0x30f   : > { %5816 = vmatmul.mubr.msk.f32.vlgmr.msra.gmra.mrb[40].mxu1 %vm3256_vm9, %v8070_v11 }
 0x310   : > { %5192 = vmatpush1.msra.mxu1 %v5174_v24  ;;  %4986 = vmatprep.mubr.f32.mxu1 %v8091_v13 }
 0x313   : > { %5817 = vmatmul.mubr.msk.f32.gmra.mrb[42].mxu1 %vm3256_vm9, %v8097_v15 }
 0x314   : > { %5255 = vmatprep.mubr.f32.mxu1 %v8091_v13 }
 0x317   : > { %5818 = vmatmul.mubr.msk.f32.vlgmr.msra.gmra.mrb[44].mxu1 %vm3256_vm9, %v8070_v11 }
 0x318   : > { %5261 = vmatprep.mubr.f32.mxu1 %v8091_v13 }
 0x31b   : > { %5819 = vmatmul.mubr.msk.f32.gmra.mrb[46].mxu1 %vm3256_vm9, %v8097_v15 }
 0x3b2   : > { %v3329_v0 = vpop.f32.mrb[16].mxu1 }
 0x3b3   : > { %v3331_v27 = vpop.f32.mrb[17].mxu1 }
 0x3b4   : > { %v3344_v18 = vcombine.low %v3329_v0, %v3331_v27  ;;  %v3345_v33 = vcombine.high %v3329_v0, %v3331_v27 }
 0x3b6   : > { %v3352_v45 = vrot.slane %v3344_v18, %v8270_v42  ;;  %v3359_v40 = vrot.slane %v3345_v33, %v8270_v42  ;;  %v3335_v11 = vpop.f32.mrb[18].mxu1 }
 0x3b7   : > { %v3337_v15 = vpop.f32.mrb[19].mxu1 }
 0x3b8   : > { %v3360_v28 = vcombine.high %v3352_v45, %v3352_v45  ;;  %v3361_v51 = vcombine.high %v3359_v40, %v3359_v40  ;;  %v3368_v54 = vrot.slane %v3352_v45, %v8270_v42  ;;  %v3375_v37 = vrot.slane %v3359_v40, %v8270_v42 }
 0x3b9   : > { %v3394_v58 = vcombine.low %v3335_v11, %v3337_v15  ;;  %v3395_v47 = vcombine.high %v3335_v11, %v3337_v15 }
 0x3ba   : > { %v3382_v56 = vrot.slane %v3360_v28, %v8270_v42  ;;  %v3389_v63 = vrot.slane %v3361_v51, %v8270_v42  ;;  %v3390_v29 = vcombine.high %v3368_v54, %v3368_v54  ;;  %v3391_v53 = vcombine.high %v3375_v37, %v3375_v37  ;;  %3464 = vst.msk [vmem:[#allocation4] ss:$8 sm:$0x3] %vm8275_vm10, %v3368_v54  ;;  %v3607_v7 = vpop.f32.mrb[20].mxu1 }
 0x3bb   : > { %3476 = vst.msk [vmem:[#allocation4 + $0x40] ss:$8 sm:$0x3] %vm8275_vm10, %v3375_v37  ;;  %v3402_v9 = vrot.slane %v3394_v58, %v8270_v42  ;;  %v3409_v4 = vrot.slane %v3395_v47, %v8270_v42  ;;  %v3609_v5 = vpop.f32.mrb[21].mxu1 }
 0x3bc   : > { %v3392_v55 = vcombine.high %v3382_v56, %v3382_v56  ;;  %v3393_v10 = vcombine.high %v3389_v63, %v3389_v63  ;;  %3467 = vst.msk [vmem:[#allocation4 + $0x10] ss:$8 sm:$0x3] %vm8275_vm10, %v3382_v56  ;;  %3470 = vst.msk [vmem:[#allocation4 + $0x20] ss:$8 sm:$0x3] %vm8275_vm10, %v3390_v29  ;;  %v3622_v46 = vcombine.low %v3607_v7, %v3609_v5 }
 0x3bd   : > { %3479 = vst.msk [vmem:[#allocation4 + $0x50] ss:$8 sm:$0x3] %vm8275_vm10, %v3389_v63  ;;  %3482 = vst.msk [vmem:[#allocation4 + $0x60] ss:$8 sm:$0x3] %vm8275_vm10, %v3391_v53  ;;  %v3623_v31 = vcombine.high %v3607_v7, %v3609_v5  ;;  %v3410_v60 = vcombine.high %v3402_v9, %v3402_v9  ;;  %v3411_v36 = vcombine.high %v3409_v4, %v3409_v4 }
 0x3be   : > { %v3418_v20 = vrot.slane %v3402_v9, %v8270_v42  ;;  %v3425_v38 = vrot.slane %v3409_v4, %v8270_v42  ;;  %3473 = vst.msk [vmem:[#allocation4 + $0x30] ss:$8 sm:$0x3] %vm8275_vm10, %v3392_v55  ;;  %3485 = vst.msk [vmem:[#allocation4 + $0x70] ss:$8 sm:$0x3] %vm8275_vm10, %v3393_v10  ;;  %v3630_v35 = vrot.slane %v3622_v46, %v8270_v42 }
 0x3bf   : > { %v3637_v16 = vrot.slane %v3623_v31, %v8270_v42  ;;  %v3613_v43 = vpop.f32.mrb[22].mxu1  ;;  %v3432_v34 = vrot.slane %v3410_v60, %v8270_v42  ;;  %v3439_v48 = vrot.slane %v3411_v36, %v8270_v42 }
 0x3c0   : > { %v3440_v25 = vcombine.high %v3418_v20, %v3418_v20  ;;  %v3441_v59 = vcombine.high %v3425_v38, %v3425_v38  ;;  %3488 = vst.msk [vmem:[#allocation4 + $0x80] ss:$8 sm:$0x3] %vm8275_vm10, %v3418_v20  ;;  %3500 = vst.msk [vmem:[#allocation4 + $0xc0] ss:$8 sm:$0x3] %vm8275_vm10, %v3425_v38  ;;  %v3638_v62 = vcombine.high %v3630_v35, %v3630_v35 }
 0x3c1   : > { %v3615_v39 = vpop.f32.mrb[23].mxu1  ;;  %v3639_v3 = vcombine.high %v3637_v16, %v3637_v16  ;;  %v3646_v49 = vrot.slane %v3630_v35, %v8270_v42  ;;  %v3653_v30 = vrot.slane %v3637_v16, %v8270_v42  ;;  %v3442_v6 = vcombine.high %v3432_v34, %v3432_v34  ;;  %3491 = vst.msk [vmem:[#allocation4 + $0x90] ss:$8 sm:$0x3] %vm8275_vm10, %v3432_v34 }
 0x3c2   : > { %v3443_v19 = vcombine.high %v3439_v48, %v3439_v48  ;;  %3494 = vst.msk [vmem:[#allocation4 + $0xa0] ss:$8 sm:$0x3] %vm8275_vm10, %v3440_v25  ;;  %3503 = vst.msk [vmem:[#allocation4 + $0xd0] ss:$8 sm:$0x3] %vm8275_vm10, %v3439_v48  ;;  %v3672_v22 = vcombine.low %v3613_v43, %v3615_v39  ;;  %v3673_v44 = vcombine.high %v3613_v43, %v3615_v39 }
 0x3c3   : > { %3506 = vst.msk [vmem:[#allocation4 + $0xe0] ss:$8 sm:$0x3] %vm8275_vm10, %v3441_v59  ;;  %v3660_v21 = vrot.slane %v3638_v62, %v8270_v42  ;;  %v3667_v41 = vrot.slane %v3639_v3, %v8270_v42  ;;  %v3668_v32 = vcombine.high %v3646_v49, %v3646_v49  ;;  %v3669_v61 = vcombine.high %v3653_v30, %v3653_v30  ;;  %v3882_v17 = vpop.f32.mrb[24].mxu1 }
 0x3c4   : > { %3739 = vst.msk [vmem:[#allocation4 + $0x1] ss:$8 sm:$0x3] %vm8275_vm10, %v3646_v49  ;;  %3751 = vst.msk [vmem:[#allocation4 + $0x41] ss:$8 sm:$0x3] %vm8275_vm10, %v3653_v30  ;;  %v3680_v57 = vrot.slane %v3672_v22, %v8270_v42  ;;  %v3687_v26 = vrot.slane %v3673_v44, %v8270_v42 }
 0x3c5   : > { %3497 = vst.msk [vmem:[#allocation4 + $0xb0] ss:$8 sm:$0x3] %vm8275_vm10, %v3442_v6  ;;  %3509 = vst.msk [vmem:[#allocation4 + $0xf0] ss:$8 sm:$0x3] %vm8275_vm10, %v3443_v19  ;;  %v3670_v14 = vcombine.high %v3660_v21, %v3660_v21  ;;  %v3671_v52 = vcombine.high %v3667_v41, %v3667_v41 }
 0x3c6   : > { %v3884_v50 = vpop.f32.mrb[25].mxu1  ;;  %3742 = vst.msk [vmem:[#allocation4 + $0x11] ss:$8 sm:$0x3] %vm8275_vm10, %v3660_v21  ;;  %v3688_v23 = vcombine.high %v3680_v57, %v3680_v57  ;;  %v3689_v8 = vcombine.high %v3687_v26, %v3687_v26  ;;  %v3696_v0 = vrot.slane %v3680_v57, %v8270_v42  ;;  %v3703_v27 = vrot.slane %v3687_v26, %v8270_v42 }
 0x3c7   : > { %3745 = vst.msk [vmem:[#allocation4 + $0x21] ss:$8 sm:$0x3] %vm8275_vm10, %v3668_v32  ;;  %3754 = vst.msk [vmem:[#allocation4 + $0x51] ss:$8 sm:$0x3] %vm8275_vm10, %v3667_v41  ;;  %v3897_v24 = vcombine.low %v3882_v17, %v3884_v50  ;;  %v3898_v12 = vcombine.high %v3882_v17, %v3884_v50 }
 0x3c8   : > { %3757 = vst.msk [vmem:[#allocation4 + $0x61] ss:$8 sm:$0x3] %vm8275_vm10, %v3669_v61  ;;  %3748 = vst.msk [vmem:[#allocation4 + $0x31] ss:$8 sm:$0x3] %vm8275_vm10, %v3670_v14  ;;  %v3710_v40 = vrot.slane %v3688_v23, %v8270_v42  ;;  %v3717_v11 = vrot.slane %v3689_v8, %v8270_v42  ;;  %v3718_v15 = vcombine.high %v3696_v0, %v3696_v0 }
 0x3c9   : > { %3760 = vst.msk [vmem:[#allocation4 + $0x71] ss:$8 sm:$0x3] %vm8275_vm10, %v3671_v52  ;;  %v3905_v18 = vrot.slane %v3897_v24, %v8270_v42  ;;  %v3912_v33 = vrot.slane %v3898_v12, %v8270_v42  ;;  %v3888_v45 = vpop.f32.mrb[26].mxu1  ;;  %v3719_v28 = vcombine.high %v3703_v27, %v3703_v27 }
 0x3ca   : > { %3763 = vst.msk [vmem:[#allocation4 + $0x81] ss:$8 sm:$0x3] %vm8275_vm10, %v3696_v0  ;;  %3775 = vst.msk [vmem:[#allocation4 + $0xc1] ss:$8 sm:$0x3] %vm8275_vm10, %v3703_v27  ;;  %v3720_v56 = vcombine.high %v3710_v40, %v3710_v40  ;;  %v3721_v63 = vcombine.high %v3717_v11, %v3717_v11 }
 0x3cb   : > { %v3890_v51 = vpop.f32.mrb[27].mxu1  ;;  %v3913_v54 = vcombine.high %v3905_v18, %v3905_v18  ;;  %v3914_v37 = vcombine.high %v3912_v33, %v3912_v33  ;;  %v3921_v58 = vrot.slane %v3905_v18, %v8270_v42  ;;  %v3928_v47 = vrot.slane %v3912_v33, %v8270_v42  ;;  %3766 = vst.msk [vmem:[#allocation4 + $0x91] ss:$8 sm:$0x3] %vm8275_vm10, %v3710_v40 }
 0x3cc   : > { %3769 = vst.msk [vmem:[#allocation4 + $0xa1] ss:$8 sm:$0x3] %vm8275_vm10, %v3718_v15  ;;  %3778 = vst.msk [vmem:[#allocation4 + $0xd1] ss:$8 sm:$0x3] %vm8275_vm10, %v3717_v11  ;;  %v3947_v29 = vcombine.low %v3888_v45, %v3890_v51  ;;  %v3948_v53 = vcombine.high %v3888_v45, %v3890_v51 }
 0x3cd   : > { %3781 = vst.msk [vmem:[#allocation4 + $0xe1] ss:$8 sm:$0x3] %vm8275_vm10, %v3719_v28  ;;  %v3935_v7 = vrot.slane %v3913_v54, %v8270_v42  ;;  %v3942_v9 = vrot.slane %v3914_v37, %v8270_v42  ;;  %v3943_v4 = vcombine.high %v3921_v58, %v3921_v58  ;;  %v3944_v5 = vcombine.high %v3928_v47, %v3928_v47  ;;  %v4157_v55 = vpop.f32.mrb[28].mxu1 }
 0x3ce   : > { %4014 = vst.msk [vmem:[#allocation4 + $0x2] ss:$8 sm:$0x3] %vm8275_vm10, %v3921_v58  ;;  %4026 = vst.msk [vmem:[#allocation4 + $0x42] ss:$8 sm:$0x3] %vm8275_vm10, %v3928_v47  ;;  %v3955_v10 = vrot.slane %v3947_v29, %v8270_v42  ;;  %v3962_v46 = vrot.slane %v3948_v53, %v8270_v42 }
 0x3cf   : > { %3772 = vst.msk [vmem:[#allocation4 + $0xb1] ss:$8 sm:$0x3] %vm8275_vm10, %v3720_v56  ;;  %3784 = vst.msk [vmem:[#allocation4 + $0xf1] ss:$8 sm:$0x3] %vm8275_vm10, %v3721_v63  ;;  %v3945_v60 = vcombine.high %v3935_v7, %v3935_v7  ;;  %v3946_v36 = vcombine.high %v3942_v9, %v3942_v9 }
 0x3d0   : > { %v4159_v31 = vpop.f32.mrb[29].mxu1  ;;  %4017 = vst.msk [vmem:[#allocation4 + $0x12] ss:$8 sm:$0x3] %vm8275_vm10, %v3935_v7  ;;  %v3963_v35 = vcombine.high %v3955_v10, %v3955_v10  ;;  %v3964_v16 = vcombine.high %v3962_v46, %v3962_v46  ;;  %v3971_v43 = vrot.slane %v3955_v10, %v8270_v42  ;;  %v3978_v34 = vrot.slane %v3962_v46, %v8270_v42 }
 0x3d1   : > { %4020 = vst.msk [vmem:[#allocation4 + $0x22] ss:$8 sm:$0x3] %vm8275_vm10, %v3943_v4  ;;  %4029 = vst.msk [vmem:[#allocation4 + $0x52] ss:$8 sm:$0x3] %vm8275_vm10, %v3942_v9  ;;  %v4172_v20 = vcombine.low %v4157_v55, %v4159_v31  ;;  %v4173_v38 = vcombine.high %v4157_v55, %v4159_v31 }
 0x3d2   : > { %4032 = vst.msk [vmem:[#allocation4 + $0x62] ss:$8 sm:$0x3] %vm8275_vm10, %v3944_v5  ;;  %4023 = vst.msk [vmem:[#allocation4 + $0x32] ss:$8 sm:$0x3] %vm8275_vm10, %v3945_v60  ;;  %v3985_v39 = vrot.slane %v3963_v35, %v8270_v42  ;;  %v3992_v62 = vrot.slane %v3964_v16, %v8270_v42  ;;  %v3993_v3 = vcombine.high %v3971_v43, %v3971_v43 }
 0x3d3   : > { %4035 = vst.msk [vmem:[#allocation4 + $0x72] ss:$8 sm:$0x3] %vm8275_vm10, %v3946_v36  ;;  %v4180_v48 = vrot.slane %v4172_v20, %v8270_v42  ;;  %v4187_v25 = vrot.slane %v4173_v38, %v8270_v42  ;;  %v4163_v59 = vpop.f32.mrb[30].mxu1  ;;  %v3994_v49 = vcombine.high %v3978_v34, %v3978_v34 }
 0x3d4   : > { %4038 = vst.msk [vmem:[#allocation4 + $0x82] ss:$8 sm:$0x3] %vm8275_vm10, %v3971_v43  ;;  %4050 = vst.msk [vmem:[#allocation4 + $0xc2] ss:$8 sm:$0x3] %vm8275_vm10, %v3978_v34  ;;  %v3995_v21 = vcombine.high %v3985_v39, %v3985_v39  ;;  %v3996_v41 = vcombine.high %v3992_v62, %v3992_v62 }
 0x3d5   : > { %v4165_v30 = vpop.f32.mrb[31].mxu1  ;;  %v4188_v6 = vcombine.high %v4180_v48, %v4180_v48  ;;  %v4189_v19 = vcombine.high %v4187_v25, %v4187_v25  ;;  %v4196_v22 = vrot.slane %v4180_v48, %v8270_v42  ;;  %v4203_v44 = vrot.slane %v4187_v25, %v8270_v42  ;;  %4041 = vst.msk [vmem:[#allocation4 + $0x92] ss:$8 sm:$0x3] %vm8275_vm10, %v3985_v39 }
 0x3d6   : > { %4044 = vst.msk [vmem:[#allocation4 + $0xa2] ss:$8 sm:$0x3] %vm8275_vm10, %v3993_v3  ;;  %4053 = vst.msk [vmem:[#allocation4 + $0xd2] ss:$8 sm:$0x3] %vm8275_vm10, %v3992_v62  ;;  %v4222_v32 = vcombine.low %v4163_v59, %v4165_v30  ;;  %v4223_v61 = vcombine.high %v4163_v59, %v4165_v30 }
 0x3d7   : > { %4056 = vst.msk [vmem:[#allocation4 + $0xe2] ss:$8 sm:$0x3] %vm8275_vm10, %v3994_v49  ;;  %v4210_v17 = vrot.slane %v4188_v6, %v8270_v42  ;;  %v4217_v57 = vrot.slane %v4189_v19, %v8270_v42  ;;  %v4218_v26 = vcombine.high %v4196_v22, %v4196_v22  ;;  %v4219_v50 = vcombine.high %v4203_v44, %v4203_v44  ;;  %v4432_v14 = vpop.f32.mrb[32].mxu1 }
 0x3d8   : > { %4289 = vst.msk [vmem:[#allocation4 + $0x3] ss:$8 sm:$0x3] %vm8275_vm10, %v4196_v22  ;;  %4301 = vst.msk [vmem:[#allocation4 + $0x43] ss:$8 sm:$0x3] %vm8275_vm10, %v4203_v44  ;;  %v4230_v52 = vrot.slane %v4222_v32, %v8270_v42  ;;  %v4237_v24 = vrot.slane %v4223_v61, %v8270_v42 }
 0x3d9   : > { %4047 = vst.msk [vmem:[#allocation4 + $0xb2] ss:$8 sm:$0x3] %vm8275_vm10, %v3995_v21  ;;  %4059 = vst.msk [vmem:[#allocation4 + $0xf2] ss:$8 sm:$0x3] %vm8275_vm10, %v3996_v41  ;;  %v4220_v23 = vcombine.high %v4210_v17, %v4210_v17  ;;  %v4221_v8 = vcombine.high %v4217_v57, %v4217_v57 }
 0x3da   : > { %v4434_v12 = vpop.f32.mrb[33].mxu1  ;;  %4292 = vst.msk [vmem:[#allocation4 + $0x13] ss:$8 sm:$0x3] %vm8275_vm10, %v4210_v17  ;;  %v4238_v18 = vcombine.high %v4230_v52, %v4230_v52  ;;  %v4239_v33 = vcombine.high %v4237_v24, %v4237_v24  ;;  %v4246_v45 = vrot.slane %v4230_v52, %v8270_v42  ;;  %v4253_v40 = vrot.slane %v4237_v24, %v8270_v42 }
 0x3db   : > { %4295 = vst.msk [vmem:[#allocation4 + $0x23] ss:$8 sm:$0x3] %vm8275_vm10, %v4218_v26  ;;  %4304 = vst.msk [vmem:[#allocation4 + $0x53] ss:$8 sm:$0x3] %vm8275_vm10, %v4217_v57  ;;  %v4447_v0 = vcombine.low %v4432_v14, %v4434_v12  ;;  %v4448_v27 = vcombine.high %v4432_v14, %v4434_v12 }
 0x3dc   : > { %4307 = vst.msk [vmem:[#allocation4 + $0x63] ss:$8 sm:$0x3] %vm8275_vm10, %v4219_v50  ;;  %4298 = vst.msk [vmem:[#allocation4 + $0x33] ss:$8 sm:$0x3] %vm8275_vm10, %v4220_v23  ;;  %v4260_v51 = vrot.slane %v4238_v18, %v8270_v42  ;;  %v4267_v54 = vrot.slane %v4239_v33, %v8270_v42  ;;  %v4268_v37 = vcombine.high %v4246_v45, %v4246_v45 }
 0x3dd   : > { %4310 = vst.msk [vmem:[#allocation4 + $0x73] ss:$8 sm:$0x3] %vm8275_vm10, %v4221_v8  ;;  %v4455_v11 = vrot.slane %v4447_v0, %v8270_v42  ;;  %v4462_v15 = vrot.slane %v4448_v27, %v8270_v42  ;;  %v4438_v28 = vpop.f32.mrb[34].mxu1  ;;  %v4269_v58 = vcombine.high %v4253_v40, %v4253_v40 }
 0x3de   : > { %4313 = vst.msk [vmem:[#allocation4 + $0x83] ss:$8 sm:$0x3] %vm8275_vm10, %v4246_v45  ;;  %4325 = vst.msk [vmem:[#allocation4 + $0xc3] ss:$8 sm:$0x3] %vm8275_vm10, %v4253_v40  ;;  %v4270_v7 = vcombine.high %v4260_v51, %v4260_v51  ;;  %v4271_v9 = vcombine.high %v4267_v54, %v4267_v54 }
 0x3df   : > { %v4440_v47 = vpop.f32.mrb[35].mxu1  ;;  %v4463_v56 = vcombine.high %v4455_v11, %v4455_v11  ;;  %v4464_v63 = vcombine.high %v4462_v15, %v4462_v15  ;;  %v4471_v29 = vrot.slane %v4455_v11, %v8270_v42  ;;  %v4478_v53 = vrot.slane %v4462_v15, %v8270_v42  ;;  %4316 = vst.msk [vmem:[#allocation4 + $0x93] ss:$8 sm:$0x3] %vm8275_vm10, %v4260_v51 }
 0x3e0   : > { %4319 = vst.msk [vmem:[#allocation4 + $0xa3] ss:$8 sm:$0x3] %vm8275_vm10, %v4268_v37  ;;  %4328 = vst.msk [vmem:[#allocation4 + $0xd3] ss:$8 sm:$0x3] %vm8275_vm10, %v4267_v54  ;;  %v4497_v4 = vcombine.low %v4438_v28, %v4440_v47  ;;  %v4498_v5 = vcombine.high %v4438_v28, %v4440_v47 }
 0x3e1   : > { %4331 = vst.msk [vmem:[#allocation4 + $0xe3] ss:$8 sm:$0x3] %vm8275_vm10, %v4269_v58  ;;  %v4485_v55 = vrot.slane %v4463_v56, %v8270_v42  ;;  %v4492_v10 = vrot.slane %v4464_v63, %v8270_v42  ;;  %v4493_v46 = vcombine.high %v4471_v29, %v4471_v29  ;;  %v4494_v31 = vcombine.high %v4478_v53, %v4478_v53  ;;  %v4707_v60 = vpop.f32.mrb[36].mxu1 }
 0x3e2   : > { %4564 = vst.msk [vmem:[#allocation4 + $0x4] ss:$8 sm:$0x3] %vm8275_vm10, %v4471_v29  ;;  %4576 = vst.msk [vmem:[#allocation4 + $0x44] ss:$8 sm:$0x3] %vm8275_vm10, %v4478_v53  ;;  %v4505_v36 = vrot.slane %v4497_v4, %v8270_v42  ;;  %v4512_v20 = vrot.slane %v4498_v5, %v8270_v42 }
 0x3e3   : > { %4322 = vst.msk [vmem:[#allocation4 + $0xb3] ss:$8 sm:$0x3] %vm8275_vm10, %v4270_v7  ;;  %4334 = vst.msk [vmem:[#allocation4 + $0xf3] ss:$8 sm:$0x3] %vm8275_vm10, %v4271_v9  ;;  %v4495_v35 = vcombine.high %v4485_v55, %v4485_v55  ;;  %v4496_v16 = vcombine.high %v4492_v10, %v4492_v10 }
 0x3e4   : > { %v4709_v38 = vpop.f32.mrb[37].mxu1  ;;  %4567 = vst.msk [vmem:[#allocation4 + $0x14] ss:$8 sm:$0x3] %vm8275_vm10, %v4485_v55  ;;  %v4513_v48 = vcombine.high %v4505_v36, %v4505_v36  ;;  %v4514_v25 = vcombine.high %v4512_v20, %v4512_v20  ;;  %v4521_v59 = vrot.slane %v4505_v36, %v8270_v42  ;;  %v4528_v39 = vrot.slane %v4512_v20, %v8270_v42 }
 0x3e5   : > { %4570 = vst.msk [vmem:[#allocation4 + $0x24] ss:$8 sm:$0x3] %vm8275_vm10, %v4493_v46  ;;  %4579 = vst.msk [vmem:[#allocation4 + $0x54] ss:$8 sm:$0x3] %vm8275_vm10, %v4492_v10  ;;  %v4722_v43 = vcombine.low %v4707_v60, %v4709_v38  ;;  %v4723_v34 = vcombine.high %v4707_v60, %v4709_v38 }
 0x3e6   : > { %4582 = vst.msk [vmem:[#allocation4 + $0x64] ss:$8 sm:$0x3] %vm8275_vm10, %v4494_v31  ;;  %4573 = vst.msk [vmem:[#allocation4 + $0x34] ss:$8 sm:$0x3] %vm8275_vm10, %v4495_v35  ;;  %v4535_v30 = vrot.slane %v4513_v48, %v8270_v42  ;;  %v4542_v6 = vrot.slane %v4514_v25, %v8270_v42  ;;  %v4543_v19 = vcombine.high %v4521_v59, %v4521_v59 }
 0x3e7   : > { %4585 = vst.msk [vmem:[#allocation4 + $0x74] ss:$8 sm:$0x3] %vm8275_vm10, %v4496_v16  ;;  %v4730_v62 = vrot.slane %v4722_v43, %v8270_v42  ;;  %v4737_v3 = vrot.slane %v4723_v34, %v8270_v42  ;;  %v4713_v49 = vpop.f32.mrb[38].mxu1  ;;  %v4544_v22 = vcombine.high %v4528_v39, %v4528_v39 }
 0x3e8   : > { %4588 = vst.msk [vmem:[#allocation4 + $0x84] ss:$8 sm:$0x3] %vm8275_vm10, %v4521_v59  ;;  %4600 = vst.msk [vmem:[#allocation4 + $0xc4] ss:$8 sm:$0x3] %vm8275_vm10, %v4528_v39  ;;  %v4545_v17 = vcombine.high %v4535_v30, %v4535_v30  ;;  %v4546_v57 = vcombine.high %v4542_v6, %v4542_v6 }
 0x3e9   : > { %v4715_v44 = vpop.f32.mrb[39].mxu1  ;;  %v4738_v21 = vcombine.high %v4730_v62, %v4730_v62  ;;  %v4739_v41 = vcombine.high %v4737_v3, %v4737_v3  ;;  %v4746_v32 = vrot.slane %v4730_v62, %v8270_v42  ;;  %v4753_v61 = vrot.slane %v4737_v3, %v8270_v42  ;;  %4591 = vst.msk [vmem:[#allocation4 + $0x94] ss:$8 sm:$0x3] %vm8275_vm10, %v4535_v30 }
 0x3ea   : > { %4594 = vst.msk [vmem:[#allocation4 + $0xa4] ss:$8 sm:$0x3] %vm8275_vm10, %v4543_v19  ;;  %4603 = vst.msk [vmem:[#allocation4 + $0xd4] ss:$8 sm:$0x3] %vm8275_vm10, %v4542_v6  ;;  %v4772_v26 = vcombine.low %v4713_v49, %v4715_v44  ;;  %v4773_v50 = vcombine.high %v4713_v49, %v4715_v44 }
 0x3eb   : > { %4606 = vst.msk [vmem:[#allocation4 + $0xe4] ss:$8 sm:$0x3] %vm8275_vm10, %v4544_v22  ;;  %v4760_v14 = vrot.slane %v4738_v21, %v8270_v42  ;;  %v4767_v52 = vrot.slane %v4739_v41, %v8270_v42  ;;  %v4768_v24 = vcombine.high %v4746_v32, %v4746_v32  ;;  %v4769_v12 = vcombine.high %v4753_v61, %v4753_v61  ;;  %v4982_v23 = vpop.f32.mrb[40].mxu1 }
 0x3ec   : > { %4839 = vst.msk [vmem:[#allocation4 + $0x5] ss:$8 sm:$0x3] %vm8275_vm10, %v4746_v32  ;;  %4851 = vst.msk [vmem:[#allocation4 + $0x45] ss:$8 sm:$0x3] %vm8275_vm10, %v4753_v61  ;;  %v4780_v8 = vrot.slane %v4772_v26, %v8270_v42  ;;  %v4787_v0 = vrot.slane %v4773_v50, %v8270_v42 }
 0x3ed   : > { %4597 = vst.msk [vmem:[#allocation4 + $0xb4] ss:$8 sm:$0x3] %vm8275_vm10, %v4545_v17  ;;  %4609 = vst.msk [vmem:[#allocation4 + $0xf4] ss:$8 sm:$0x3] %vm8275_vm10, %v4546_v57  ;;  %v4770_v18 = vcombine.high %v4760_v14, %v4760_v14  ;;  %v4771_v33 = vcombine.high %v4767_v52, %v4767_v52 }
 0x3ee   : > { %v4984_v27 = vpop.f32.mrb[41].mxu1  ;;  %4842 = vst.msk [vmem:[#allocation4 + $0x15] ss:$8 sm:$0x3] %vm8275_vm10, %v4760_v14  ;;  %v4788_v11 = vcombine.high %v4780_v8, %v4780_v8  ;;  %v4789_v15 = vcombine.high %v4787_v0, %v4787_v0  ;;  %v4796_v28 = vrot.slane %v4780_v8, %v8270_v42  ;;  %v4803_v51 = vrot.slane %v4787_v0, %v8270_v42 }
 0x3ef   : > { %4845 = vst.msk [vmem:[#allocation4 + $0x25] ss:$8 sm:$0x3] %vm8275_vm10, %v4768_v24  ;;  %4854 = vst.msk [vmem:[#allocation4 + $0x55] ss:$8 sm:$0x3] %vm8275_vm10, %v4767_v52  ;;  %v4997_v45 = vcombine.low %v4982_v23, %v4984_v27  ;;  %v4998_v40 = vcombine.high %v4982_v23, %v4984_v27 }
 0x3f0   : > { %4857 = vst.msk [vmem:[#allocation4 + $0x65] ss:$8 sm:$0x3] %vm8275_vm10, %v4769_v12  ;;  %4848 = vst.msk [vmem:[#allocation4 + $0x35] ss:$8 sm:$0x3] %vm8275_vm10, %v4770_v18  ;;  %v4810_v47 = vrot.slane %v4788_v11, %v8270_v42  ;;  %v4817_v56 = vrot.slane %v4789_v15, %v8270_v42  ;;  %v4818_v63 = vcombine.high %v4796_v28, %v4796_v28 }
 0x3f1   : > { %4860 = vst.msk [vmem:[#allocation4 + $0x75] ss:$8 sm:$0x3] %vm8275_vm10, %v4771_v33  ;;  %v5005_v54 = vrot.slane %v4997_v45, %v8270_v42  ;;  %v5012_v37 = vrot.slane %v4998_v40, %v8270_v42  ;;  %v4988_v58 = vpop.f32.mrb[42].mxu1  ;;  %v4819_v29 = vcombine.high %v4803_v51, %v4803_v51 }
 0x3f2   : > { %4863 = vst.msk [vmem:[#allocation4 + $0x85] ss:$8 sm:$0x3] %vm8275_vm10, %v4796_v28  ;;  %4875 = vst.msk [vmem:[#allocation4 + $0xc5] ss:$8 sm:$0x3] %vm8275_vm10, %v4803_v51  ;;  %v4820_v55 = vcombine.high %v4810_v47, %v4810_v47  ;;  %v4821_v10 = vcombine.high %v4817_v56, %v4817_v56 }
 0x3f3   : > { %v4990_v53 = vpop.f32.mrb[43].mxu1  ;;  %v5013_v7 = vcombine.high %v5005_v54, %v5005_v54  ;;  %v5014_v9 = vcombine.high %v5012_v37, %v5012_v37  ;;  %v5021_v4 = vrot.slane %v5005_v54, %v8270_v42  ;;  %v5028_v5 = vrot.slane %v5012_v37, %v8270_v42  ;;  %4866 = vst.msk [vmem:[#allocation4 + $0x95] ss:$8 sm:$0x3] %vm8275_vm10, %v4810_v47 }
 0x3f4   : > { %4869 = vst.msk [vmem:[#allocation4 + $0xa5] ss:$8 sm:$0x3] %vm8275_vm10, %v4818_v63  ;;  %4878 = vst.msk [vmem:[#allocation4 + $0xd5] ss:$8 sm:$0x3] %vm8275_vm10, %v4817_v56  ;;  %v5047_v46 = vcombine.low %v4988_v58, %v4990_v53  ;;  %v5048_v31 = vcombine.high %v4988_v58, %v4990_v53 }
 0x3f5   : > { %4881 = vst.msk [vmem:[#allocation4 + $0xe5] ss:$8 sm:$0x3] %vm8275_vm10, %v4819_v29  ;;  %v5035_v60 = vrot.slane %v5013_v7, %v8270_v42  ;;  %v5042_v36 = vrot.slane %v5014_v9, %v8270_v42  ;;  %v5043_v20 = vcombine.high %v5021_v4, %v5021_v4  ;;  %v5044_v38 = vcombine.high %v5028_v5, %v5028_v5  ;;  %v5257_v35 = vpop.f32.mrb[44].mxu1 }
 0x3f6   : > { %5114 = vst.msk [vmem:[#allocation4 + $0x6] ss:$8 sm:$0x3] %vm8275_vm10, %v5021_v4  ;;  %5126 = vst.msk [vmem:[#allocation4 + $0x46] ss:$8 sm:$0x3] %vm8275_vm10, %v5028_v5  ;;  %v5055_v16 = vrot.slane %v5047_v46, %v8270_v42  ;;  %v5062_v43 = vrot.slane %v5048_v31, %v8270_v42 }
 0x3f7   : > { %4872 = vst.msk [vmem:[#allocation4 + $0xb5] ss:$8 sm:$0x3] %vm8275_vm10, %v4820_v55  ;;  %4884 = vst.msk [vmem:[#allocation4 + $0xf5] ss:$8 sm:$0x3] %vm8275_vm10, %v4821_v10  ;;  %v5045_v48 = vcombine.high %v5035_v60, %v5035_v60  ;;  %v5046_v25 = vcombine.high %v5042_v36, %v5042_v36 }
 0x3f8   : > { %v5259_v34 = vpop.f32.mrb[45].mxu1  ;;  %5117 = vst.msk [vmem:[#allocation4 + $0x16] ss:$8 sm:$0x3] %vm8275_vm10, %v5035_v60  ;;  %v5063_v62 = vcombine.high %v5055_v16, %v5055_v16  ;;  %v5064_v3 = vcombine.high %v5062_v43, %v5062_v43  ;;  %v5071_v49 = vrot.slane %v5055_v16, %v8270_v42  ;;  %v5078_v30 = vrot.slane %v5062_v43, %v8270_v42 }
 0x3f9   : > { %5120 = vst.msk [vmem:[#allocation4 + $0x26] ss:$8 sm:$0x3] %vm8275_vm10, %v5043_v20  ;;  %5129 = vst.msk [vmem:[#allocation4 + $0x56] ss:$8 sm:$0x3] %vm8275_vm10, %v5042_v36  ;;  %v5272_v59 = vcombine.low %v5257_v35, %v5259_v34  ;;  %v5273_v39 = vcombine.high %v5257_v35, %v5259_v34 }
 0x3fa   : > { %5132 = vst.msk [vmem:[#allocation4 + $0x66] ss:$8 sm:$0x3] %vm8275_vm10, %v5044_v38  ;;  %5123 = vst.msk [vmem:[#allocation4 + $0x36] ss:$8 sm:$0x3] %vm8275_vm10, %v5045_v48  ;;  %v5085_v44 = vrot.slane %v5063_v62, %v8270_v42  ;;  %v5092_v21 = vrot.slane %v5064_v3, %v8270_v42  ;;  %v5093_v41 = vcombine.high %v5071_v49, %v5071_v49 }
 0x3fb   : > { %5135 = vst.msk [vmem:[#allocation4 + $0x76] ss:$8 sm:$0x3] %vm8275_vm10, %v5046_v25  ;;  %v5280_v6 = vrot.slane %v5272_v59, %v8270_v42  ;;  %v5287_v19 = vrot.slane %v5273_v39, %v8270_v42  ;;  %v5263_v22 = vpop.f32.mrb[46].mxu1  ;;  %v5094_v32 = vcombine.high %v5078_v30, %v5078_v30  ;;  %v6972_v29 = vmov 0.0  }
 0x3fc   : > { %5138 = vst.msk [vmem:[#allocation4 + $0x86] ss:$8 sm:$0x3] %vm8275_vm10, %v5071_v49  ;;  %5150 = vst.msk [vmem:[#allocation4 + $0xc6] ss:$8 sm:$0x3] %vm8275_vm10, %v5078_v30  ;;  %v5095_v14 = vcombine.high %v5085_v44, %v5085_v44  ;;  %v5096_v52 = vcombine.high %v5092_v21, %v5092_v21 }
 0x3fd   : > { %v5265_v61 = vpop.f32.mrb[47].mxu1  ;;  %v5288_v17 = vcombine.high %v5280_v6, %v5280_v6  ;;  %v5289_v57 = vcombine.high %v5287_v19, %v5287_v19  ;;  %v5296_v26 = vrot.slane %v5280_v6, %v8270_v42  ;;  %v5303_v50 = vrot.slane %v5287_v19, %v8270_v42  ;;  %5141 = vst.msk [vmem:[#allocation4 + $0x96] ss:$8 sm:$0x3] %vm8275_vm10, %v5085_v44 }
 0x3fe   : > { %5144 = vst.msk [vmem:[#allocation4 + $0xa6] ss:$8 sm:$0x3] %vm8275_vm10, %v5093_v41  ;;  %5153 = vst.msk [vmem:[#allocation4 + $0xd6] ss:$8 sm:$0x3] %vm8275_vm10, %v5092_v21  ;;  %v5322_v24 = vcombine.low %v5263_v22, %v5265_v61  ;;  %v5323_v12 = vcombine.high %v5263_v22, %v5265_v61 }
 0x3ff   : > { %5156 = vst.msk [vmem:[#allocation4 + $0xe6] ss:$8 sm:$0x3] %vm8275_vm10, %v5094_v32  ;;  %v5310_v23 = vrot.slane %v5288_v17, %v8270_v42  ;;  %v5317_v8 = vrot.slane %v5289_v57, %v8270_v42  ;;  %v5318_v0 = vcombine.high %v5296_v26, %v5296_v26  ;;  %v5319_v27 = vcombine.high %v5303_v50, %v5303_v50 }
 0x400   : > { %5389 = vst.msk [vmem:[#allocation4 + $0x7] ss:$8 sm:$0x3] %vm8275_vm10, %v5296_v26  ;;  %5401 = vst.msk [vmem:[#allocation4 + $0x47] ss:$8 sm:$0x3] %vm8275_vm10, %v5303_v50  ;;  %v5330_v18 = vrot.slane %v5322_v24, %v8270_v42  ;;  %v5337_v33 = vrot.slane %v5323_v12, %v8270_v42 }
 0x401   : > { %5147 = vst.msk [vmem:[#allocation4 + $0xb6] ss:$8 sm:$0x3] %vm8275_vm10, %v5095_v14  ;;  %5159 = vst.msk [vmem:[#allocation4 + $0xf6] ss:$8 sm:$0x3] %vm8275_vm10, %v5096_v52  ;;  %v5320_v45 = vcombine.high %v5310_v23, %v5310_v23  ;;  %v5321_v40 = vcombine.high %v5317_v8, %v5317_v8 }
 0x402   : > { %5392 = vst.msk [vmem:[#allocation4 + $0x17] ss:$8 sm:$0x3] %vm8275_vm10, %v5310_v23  ;;  %5395 = vst.msk [vmem:[#allocation4 + $0x27] ss:$8 sm:$0x3] %vm8275_vm10, %v5318_v0  ;;  %v5338_v11 = vcombine.high %v5330_v18, %v5330_v18  ;;  %v5339_v15 = vcombine.high %v5337_v33, %v5337_v33  ;;  %v5346_v28 = vrot.slane %v5330_v18, %v8270_v42 }
 0x403   : > { %5404 = vst.msk [vmem:[#allocation4 + $0x57] ss:$8 sm:$0x3] %vm8275_vm10, %v5317_v8  ;;  %5407 = vst.msk [vmem:[#allocation4 + $0x67] ss:$8 sm:$0x3] %vm8275_vm10, %v5319_v27  ;;  %v5353_v51 = vrot.slane %v5337_v33, %v8270_v42 }
 0x404   : > { %5398 = vst.msk [vmem:[#allocation4 + $0x37] ss:$8 sm:$0x3] %vm8275_vm10, %v5320_v45  ;;  %5410 = vst.msk [vmem:[#allocation4 + $0x77] ss:$8 sm:$0x3] %vm8275_vm10, %v5321_v40  ;;  %v5360_v54 = vrot.slane %v5338_v11, %v8270_v42  ;;  %v5367_v37 = vrot.slane %v5339_v15, %v8270_v42  ;;  %v5368_v58 = vcombine.high %v5346_v28, %v5346_v28 }
 0x405   : > { %v5369_v47 = vcombine.high %v5353_v51, %v5353_v51  ;;  %5413 = vst.msk [vmem:[#allocation4 + $0x87] ss:$8 sm:$0x3] %vm8275_vm10, %v5346_v28  ;;  %5425 = vst.msk [vmem:[#allocation4 + $0xc7] ss:$8 sm:$0x3] %vm8275_vm10, %v5353_v51 }
 0x406   : > { %v5370_v56 = vcombine.high %v5360_v54, %v5360_v54  ;;  %v5371_v63 = vcombine.high %v5367_v37, %v5367_v37  ;;  %5416 = vst.msk [vmem:[#allocation4 + $0x97] ss:$8 sm:$0x3] %vm8275_vm10, %v5360_v54  ;;  %5419 = vst.msk [vmem:[#allocation4 + $0xa7] ss:$8 sm:$0x3] %vm8275_vm10, %v5368_v58 }
 0x407   : > { %5428 = vst.msk [vmem:[#allocation4 + $0xd7] ss:$8 sm:$0x3] %vm8275_vm10, %v5367_v37  ;;  %5431 = vst.msk [vmem:[#allocation4 + $0xe7] ss:$8 sm:$0x3] %vm8275_vm10, %v5369_v47 }
 0x408   : > { %5422 = vst.msk [vmem:[#allocation4 + $0xb7] ss:$8 sm:$0x3] %vm8275_vm10, %v5370_v56  ;;  %5434 = vst.msk [vmem:[#allocation4 + $0xf7] ss:$8 sm:$0x3] %vm8275_vm10, %v5371_v63 }
 0x409   : > { %v6968_v42 = vmov 0.0  }
 0x40a LB: >> { %v6991_v53 = vmov 0.0   ;;  %s5828_s1 = sshll.u32 %s6978_s13, 4  ;;  %s5441_s13 = sadd.s32 1, %s6978_s13   ;;  %s6978_s13 = sphi %s8630_s13, %s5441_s13   ;;  %v6974_v29 = vphi %v6972_v29, %v6973_v29   ;;  %v6970_v42 = vphi %v6968_v42, %v6969_v42  }
 0x40b   : >> { %5519 = vmatprep.mubr.f32.mxu0 %v6991_v53  ;;  %5525 = vmatprep.mubr.f32.mxu1 %v6991_v53  ;;  %s5446_s22 = scalar_lea.vmem [#allocation4], %s5828_s1  ;;  %p5438_p4 = scmp.ge.s32.totalorder %s5441_s13, 16  }
 0x40c   : > { %v5570_v19 = vld [vmem:[#allocation11 + $0x80] sm:$0xff] (%p5438_p4)  ;;  %v5571_v22 = vld [vmem:[#allocation11 + $0x88] sm:$0xff] (%p5438_p4)  ;;  %v5572_v61 = vld [vmem:[#allocation11 + $0x90] sm:$0xff] (%p5438_p4)  ;;  %s5824_s18 = sshll.u32 (%p5438_p4), %s7054_s28, 4  ;;  %s5671_s15 = sshll.u32 (%p5438_p4), %s349_s12, 4  ;;  %s8655_s15 = int_to_ptr.vmem [resolvable:$true] %s5671_s15 }
 0x40d   : > { %v5554_v44 = vld [vmem:[#allocation11] sm:$0xff] (%p5438_p4)  ;;  %v6440_v41 = vpack.c.bf16 (%p5438_p4), %v5571_v22, %v5570_v19  ;;  %v5555_v32 = vld [vmem:[#allocation11 + $0x8] sm:$0xff] (%p5438_p4)  ;;  %v5573_v17 = vld [vmem:[#allocation11 + $0x98] sm:$0xff] (%p5438_p4)  ;;  %s8653_s23 = scalar_lea.hbm (%p5438_p4), %s8706_s7, %s5824_s18  ;;  %s5659_s19 = scalar_lea.sflag (%p5438_p4), [#allocation7], %s7255_s17 }
 0x40e   : > { %v6442_v57 = vpack.c.bf16 (%p5438_p4), %v5555_v32, %v5554_v44  ;;  %v6444_v26 = vpack.c.bf16 (%p5438_p4), %v5573_v17, %v5572_v61  ;;  %v5556_v50 = vld [vmem:[#allocation11 + $0x10] sm:$0xff] (%p5438_p4)  ;;  %v5557_v14 = vld [vmem:[#allocation11 + $0x18] sm:$0xff] (%p5438_p4)  ;;  %v5574_v52 = vld [vmem:[#allocation11 + $0xa0] sm:$0xff] (%p5438_p4)  ;;  %s6880_s16 = scalar_lea.vmem (%p5438_p4), %s8655_s15, 16  ;;  %s6992_s28 = smov (%p5438_p4), [#allocation14]  }
 0x40f   : >> { %v5448_v13 = vld [vmem:[%s5446_s22 + $0x8] sm:$0xff]  ;;  %v5447_v7 = vld [vmem:[%s5446_s22] sm:$0xff]  ;;  %v6446_v12 = vpack.c.bf16 (%p5438_p4), %v5557_v14, %v5556_v50  ;;  %v5576_v8 = vld [vmem:[#allocation11 + $0xb0] sm:$0xff] (%p5438_p4)  ;;  %p6881_p5 = scmp.ne.s32.totalorder (%p5438_p4), %s8655_s15, %s6880_s16  ;;  %s6884_s14 = sshll.u32 (%p5438_p4), %s6992_s28, 4  ;;  %s6885_s14 = int_to_ptr.vmem [resolvable:$false] %s6884_s14 }
 0x410   : >> { %5455 = vmatprep.subr.mxu0 %v5448_v13  ;;  %6616 = vmatprep.subr.mxu1 %v5448_v13  ;;  %v5575_v24 = vld [vmem:[#allocation11 + $0xa8] sm:$0xff] (%p5438_p4)  ;;  %v5577_v0 = vld [vmem:[#allocation11 + $0xb8] sm:$0xff] (%p5438_p4)  ;;  %v5560_v33 = vld [vmem:[#allocation11 + $0x30] sm:$0xff] (%p5438_p4)  ;;  %s6886_s21 = scalar_lea.vmem (%p5438_p4), %s6885_s14, 32  ;;  %p6887_p1 = scmp.lt.s32.totalorder (%p5438_p4), %s8655_s15, %s6885_s14 }
 0x411   : >> { %5456 = vmatpush1.msra.mxu0 %v5447_v7  ;;  %6617 = vmatpush1.msra.mxu1 %v5447_v7  ;;  %v6448_v23 = vpack.c.bf16 (%p5438_p4), %v5575_v24, %v5574_v52  ;;  %v6452_v18 = vpack.c.bf16 (%p5438_p4), %v5577_v0, %v5576_v8  ;;  %v5561_v45 = vld [vmem:[#allocation11 + $0x38] sm:$0xff] (%p5438_p4)  ;;  %v5578_v40 = vld [vmem:[#allocation11 + $0xc0] sm:$0xff] (%p5438_p4)  ;;  %v5579_v11 = vld [vmem:[#allocation11 + $0xc8] sm:$0xff] (%p5438_p4)  ;;  %p6882_p7 = pnand (%p5438_p4), %p6881_p5, %p7203_p8  ;;  %p6888_p2 = scmp.lt.s32.totalorder (%p5438_p4), %s6886_s21, %s6880_s16 }
 0x412   : >> { %5822 = vmatmul.mubr.msk.f32.vlgmr.msra.gmra.mrb[0].mxu0 %vm3256_vm9, %v7317_v1  ;;  %5823 = vmatmul.mubr.msk.f32.vlgmr.msra.gmra.mrb[0].mxu1 %vm3256_vm9, %v7322_v2  ;;  %v5558_v1 = vld [vmem:[#allocation11 + $0x20] sm:$0xff] (%p5438_p4)  ;;  %v5559_v2 = vld [vmem:[#allocation11 + $0x28] sm:$0xff] (%p5438_p4)  ;;  %v6454_v15 = vpack.c.bf16 (%p5438_p4), %v5561_v45, %v5560_v33  ;;  %v6456_v28 = vpack.c.bf16 (%p5438_p4), %v5579_v11, %v5578_v40  ;;  %v5580_v37 = vld [vmem:[#allocation11 + $0xd0] sm:$0xff] (%p5438_p4) }
 0x413   : > { %6441 = vmatprep.subr.bf16.mxu0 (%p5438_p4), %v6440_v41  ;;  %v6450_v27 = vpack.c.bf16 (%p5438_p4), %v5559_v2, %v5558_v1  ;;  %v5562_v51 = vld [vmem:[#allocation11 + $0x40] sm:$0xff] (%p5438_p4)  ;;  %v5563_v54 = vld [vmem:[#allocation11 + $0x48] sm:$0xff] (%p5438_p4)  ;;  %v5581_v58 = vld [vmem:[#allocation11 + $0xd8] sm:$0xff] (%p5438_p4)  ;;  %p6883_p12 = pneg (%p5438_p4), %p6882_p7  ;;  %p6889_p13 = por (%p5438_p4), %p6888_p2, %p6887_p1 }
 0x414   : > { %6443 = vmatpush3.bf16.msra.mxu0 (%p5438_p4), %v6442_v57  ;;  %v6458_v47 = vpack.c.bf16 (%p5438_p4), %v5563_v54, %v5562_v51  ;;  %v6460_v56 = vpack.c.bf16 (%p5438_p4), %v5581_v58, %v5580_v37  ;;  %v5564_v63 = vld [vmem:[#allocation11 + $0x50] sm:$0xff] (%p5438_p4)  ;;  %v5583_v53 = vld [vmem:[#allocation11 + $0xe8] sm:$0xff] (%p5438_p4) }
 0x415   : > { %6445 = vmatprep.subr.bf16.mxu0 (%p5438_p4), %v6444_v26  ;;  %p6890_p9 = pnand (%p5438_p4), %p6889_p13, %p6883_p12 }
 0x418   : > { %6447 = vmatpush3.bf16.msra.mxu0 (%p5438_p4), %v6446_v12 }
 0x419   : > { %6449 = vmatprep.subr.bf16.mxu0 (%p5438_p4), %v6448_v23 }
 0x41c   : > { %6451 = vmatpush3.bf16.msra.mxu0 (%p5438_p4), %v6450_v27 }
 0x41d   : > { %6453 = vmatprep.subr.bf16.mxu0 (%p5438_p4), %v6452_v18 }
 0x420   : > { %6455 = vmatpush3.bf16.msra.mxu0 (%p5438_p4), %v6454_v15 }
 0x421   : > { %6457 = vmatprep.subr.bf16.mxu0 (%p5438_p4), %v6456_v28 }
 0x424   : > { %6459 = vmatpush3.bf16.msra.mxu0 (%p5438_p4), %v6458_v47 }
 0x425   : > { %6461 = vmatprep.subr.bf16.mxu0 (%p5438_p4), %v6460_v56 }
 0x4e5   : >> { %v5521_v9 = vpop.f32.mrb[0].mxu0  ;;  %v5527_v4 = vpop.f32.mrb[0].mxu1 }
 0x4e6   : >> { %v5532_v5 = vmax.f32 %v5521_v9, 0.0  ;;  %v5534_v55 = vmax.f32 %v5527_v4, 0.0  ;;  %v5523_v10 = vpop.f32.mrb[1].mxu0  ;;  %v5529_v46 = vpop.f32.mrb[1].mxu1  ;;  %v5566_v9 = vld [vmem:[#allocation11 + $0x60] sm:$0xff] (%p5438_p4)  ;;  %v5567_v4 = vld [vmem:[#allocation11 + $0x68] sm:$0xff] (%p5438_p4) }
 0x4e7   : >> { %v5533_v31 = vmax.f32 %v5523_v10, 0.0  ;;  %v5535_v60 = vmax.f32 %v5529_v46, 0.0  ;;  %v6466_v10 = vpack.c.bf16 (%p5438_p4), %v5567_v4, %v5566_v9 }
 0x4e8   : >> { %v5536_v36 = vadd.f32 %v5534_v55, %v5532_v5  ;;  %v5584_v5 = vld [vmem:[#allocation11 + $0xf0] sm:$0xff] (%p5438_p4)  ;;  %v5585_v55 = vld [vmem:[#allocation11 + $0xf8] sm:$0xff] (%p5438_p4) }
 0x4e9   : >> { %v5543_v20 = vadd.f32 %v5535_v60, %v5533_v31  ;;  %v6468_v46 = vpack.c.bf16 (%p5438_p4), %v5585_v55, %v5584_v5  ;;  %v5568_v31 = vld [vmem:[#allocation11 + $0x70] sm:$0xff] (%p5438_p4)  ;;  %v5569_v60 = vld [vmem:[#allocation11 + $0x78] sm:$0xff] (%p5438_p4) }
 0x4ea   : >> { %v5537_v38 = vrot.slane %v5536_v36, 4 }
 0x4eb   : >> { %v5544_v35 = vrot.slane %v5543_v20, 4 }
 0x4ec   : >> { %v5538_v16 = vadd.f32 %v5537_v38, %v5536_v36  ;;  %v6470_v36 = vpack.c.bf16 (%p5438_p4), %v5569_v60, %v5568_v31 }
 0x4ed   : >> { %v5545_v43 = vadd.f32 %v5544_v35, %v5543_v20  ;;  %v5586_v35 = vld [vmem:[#allocation13] sm:$0x1] (%p5438_p4) }
 0x4ee   : >> { %v5539_v34 = vrot.slane %v5538_v16, 2 }
 0x4ef   : >> { %v5546_v48 = vrot.slane %v5545_v43, 2 }
 0x4f0   : >> { %v5540_v25 = vadd.f32 %v5539_v34, %v5538_v16 }
 0x4f1   : >> { %v5547_v59 = vadd.f32 %v5546_v48, %v5545_v43 }
 0x4f2   : >> { %v5541_v39 = vrot.slane %v5540_v25, 1 }
 0x4f3   : >> { %v5548_v62 = vrot.slane %v5547_v59, 1  ;;  %5440 = sbr.rel (!%p5438_p4) target bundleno = 1034 (0x40a), region = 246 }
 0x4f4   : >> { %v5542_v3 = vadd.f32 %v5541_v39, %v5540_v25 }
 0x4f5   : >> { %v5549_v49 = vadd.f32 %v5548_v62, %v5547_v59 }
 0x4f6   : >> { %v8640_v29 = vadd.f32 %v6974_v29, %v5542_v3  }
 0x4f7   : >> { %v5551_v6 = vadd.f32 %v6970_v42, %v5549_v49  }
 0x4f8   : >> { %v8732_v30 = vmov %v8640_v29 }
 0x4f9   : >> { %v6969_v42 = vmov %v5551_v6   ;;  %v6973_v29 = vmov %v8732_v30   ;;  %v5553_v21 = vmul.f32 (%p5438_p4), 0.00390625, %v5551_v6  ;;  %v5552_v20 = vmul.f32 (%p5438_p4), 0.00390625, %v8732_v30 }
 0x4fa   : > { %v5565_v42 = vld [vmem:[#allocation11 + $0x58] sm:$0xff]  ;;  %v5582_v29 = vld [vmem:[#allocation11 + $0xe0] sm:$0xff] }
 0x4fb   : > { %5651 = vmatprep.mubr.f32.mxu0 %v5553_v21  ;;  %v6462_v13 = vpack.c.bf16 %v5565_v42, %v5564_v63  ;;  %v6464_v7 = vpack.c.bf16 %v5583_v53, %v5582_v29 }
 0x4fd   : > { %6463 = vmatpush3.bf16.msra.mxu0 %v6462_v13 }
 0x4fe   : > { %6465 = vmatprep.subr.bf16.mxu0 %v6464_v7 }
 0x501   : > { %6467 = vmatpush3.bf16.msra.mxu0 %v6466_v10 }
 0x502   : > { %6469 = vmatprep.subr.bf16.mxu0 %v6468_v46 }
 0x505   : > { %6471 = vmatpush3.bf16.msra.mxu0 %v6470_v36 }
 0x508   : > { %5652 = vmatmul.mubr.f32.vlgmr.msra.gmra.mrb[0].mxu0 %v5552_v20 }
 0x5db   : > { %v5861_v38 = vpop.f32.mrb[0].mxu0 }
 0x5dc   : > { %v5862_v16 = vpop.f32.mrb[1].mxu0 }
 0x5dd   : > { %v5863_v43 = vadd.f32 %v5862_v16, %v5861_v38 }
 0x5df   : > { %v5654_v34 = vadd.f32 %v5863_v43, %v5586_v35 }
 0x5e1   : > { %5657 = vst [vmem:[%s349_s12] sm:$0x1] %v5654_v34 }
 0x5e2   : > { %6893 = shalt.err (!%p6890_p9)
}
 0x5e3   : > { %s6894_s17 = scalar_lea.hbm %s8653_s23, 16  ;;  %s6898_s13 = scalar_lea.hbm %s8706_s7, 32 }
 0x5e4   : > { %p6895_p0 = scmp.ne.s32.totalorder %s8653_s23, %s6894_s17  ;;  %p6899_p10 = scmp.lt.u32.totalorder %s8653_s23, %s8706_s7 }
 0x5e5   : > { %p6900_p3 = scmp.lt.u32.totalorder %s6898_s13, %s6894_s17  ;;  %p6902_p5 = scmp.lt.u32.totalorder %s6894_s17, %s8653_s23 }
 0x5e6   : > { %p6896_p11 = pnand %p6895_p0, %p7203_p8 }
 0x5e7   : > { %p6901_p4 = por %p6900_p3, %p6899_p10 }
 0x5e8   : > { %p6897_p6 = pneg %p6896_p11 }
 0x5e9   : > { %p6903_p7 = por %p6902_p5, %p6901_p4 }
 0x5eb   : > { %p6904_p12 = pnand %p6903_p7, %p6897_p6 }
 0x5ed   : > { %6907 = shalt.err (!%p6904_p12)
}
 0x5ee   : > { %6636 = dma.vmem_to_hbm [thread:$0]  (%p7203_p8), %s8655_s15, 16, %s8653_s23, %s5659_s19  }
 0x5ef PF: > { %s5683_s18 = sand.u32 1, %s6954_s24   ;;  %p8733_p1 = scmp.ne.s32.totalorder %s8714_s8, 0 }
 0x5f0   : > { %p8734_p2 = scmp.ge.s32.totalorder %s6966_s27, 2  ;;  %s5684_s30 = scalar_lea.sflag [#allocation7], %s5683_s18 }
 0x5f2   : > { %p6656_p13 = pnand %p8734_p2, %p8733_p1 }
 0x5f4   : > { %6949 = dma.done.wait (!%p6656_p13), %s5684_s30, 16  }
 0x5f5   : > { %6951 = vsyncadd (!%p6656_p13), %s5684_s30, 4294967280  ;;  %p22_p9 = scmp.ge.s32.totalorder %s7190_s20, 4   ;;  %s8735_s24 = smov %s6958_s25 }
 0x5f6   : > { %s8736_s25 = smov %s6962_s26  ;;  %s8737_s26 = smov %s7199_s10 }
 0x5f7   : > { %s8738_s27 = smov %s7190_s20  ;;  %24 = sbr.rel (!%p22_p9) target bundleno = 9 (0x9), region = 257 }
 0x5fe   :  { %5688 = vsyncpa [#allocation6], 1 }
 0x5ff   :  { %5690 = vsyncpa [#allocation6 + $0x1], 1 }
 0x600   :  { %5691 = vsyncpa [#allocation9], 1 }
 0x601   :  { %5692 = vsyncpa [#allocation12], 1 }
 0x602   :  { %5693 = vsyncpa [#allocation7], 1 }
 0x603   :  { %5695 = vsyncpa [#allocation7 + $0x1], 1 }

</bundles_post_ra>
